<compile_context>
chip_gen: v7x
topology: tpu7x:2x2x1
jax: 0.10.0
libtpu: 0.0.40
codegen_flags: <defaults>
</compile_context>

<pallas_src>
import functools
import math

import jax
import jax.numpy as jnp
from jax import lax
from jax.experimental import pallas as pl
from jax.experimental.pallas import tpu as pltpu


# -----------------------------------------------------------------------------
# small helpers
# -----------------------------------------------------------------------------
def _round_up(x, m):
    return (x + m - 1) // m * m


def _choose_tm(m):
    """Rows per grid step: sublane-aligned, capped at 128, >=2 steps when possible."""
    half = _round_up(m, 16) // 2
    return max(8, min(128, half))


# -----------------------------------------------------------------------------
# Pallas kernels
# -----------------------------------------------------------------------------
def _attention_kernel(q_ref, k_ref, v_ref, kval_ref,
                      wq_ref, wk_ref, wv_ref, wo_ref, bo_ref, o_ref,
                      *, scale, heads, causal):
    """Fused multi-head attention for one batch element.

    Block shapes:
      q/k/v : (1, H, L, D)   activations, f32
      kval  : (1, 1, Lk)     key-validity vector (padding mask), f32
      wq/wk/wv : (D, D)      shared per-head projection weights (in, out)
      wo    : (H, D, E)      output projection, split per head (in, out)
      bo    : (1, E)
      out   : (1, Lq, E)
    """
    _, _, Lq, _ = q_ref.shape
    Lk = k_ref.shape[2]
    E = o_ref.shape[2]

    q_all = q_ref[...][0]                        # (H, Lq, D) f32
    k_all = k_ref[...][0]                        # (H, Lk, D)
    v_all = v_ref[...][0]                        # (H, Lk, D)
    wq = wq_ref[...].astype(jnp.bfloat16)        # (D, D)
    wk = wk_ref[...].astype(jnp.bfloat16)
    wv = wv_ref[...].astype(jnp.bfloat16)
    wo = wo_ref[...].astype(jnp.bfloat16)        # (H, D, E)

    # Mask built in-kernel, shared across heads.
    kvalid = kval_ref[...][0]                    # (1, Lk) f32
    mask = kvalid != 0.0                         # (1, Lk) -> broadcasts over Lq
    if causal:
        rows = lax.broadcasted_iota(jnp.int32, (Lq, Lk), 0)
        cols = lax.broadcasted_iota(jnp.int32, (Lq, Lk), 1)
        mask = jnp.logical_and(mask, cols <= rows)       # (Lq, Lk)
    neg = jnp.float32(-1e20)

    acc = jnp.zeros((Lq, E), jnp.float32)
    for h in range(heads):                       # static unroll; all ops are 2-D
        qh = jnp.dot(q_all[h].astype(jnp.bfloat16), wq,
                     preferred_element_type=jnp.float32)          # (Lq, D)
        kh = jnp.dot(k_all[h].astype(jnp.bfloat16), wk,
                     preferred_element_type=jnp.float32)          # (Lk, D)
        vh = jnp.dot(v_all[h].astype(jnp.bfloat16), wv,
                     preferred_element_type=jnp.float32)          # (Lk, D)

        # scores q . k^T (contract last dims; bf16 operands, f32 accumulate)
        energy = lax.dot_general(qh.astype(jnp.bfloat16),
                                 kh.astype(jnp.bfloat16),
                                 (((1,), (1,)), ((), ())),
                                 preferred_element_type=jnp.float32)  # (Lq, Lk)
        energy = jnp.where(mask, energy, neg) * scale     # masked_fill then /sqrt(E)

        emax = jnp.max(energy, axis=-1, keepdims=True)
        p = jnp.exp(energy - emax)
        denom = jnp.sum(p, axis=-1, keepdims=True)
        attn = p * pl.reciprocal(denom, approx=True)      # EUP slot, ~free

        ctx = jnp.dot(attn.astype(jnp.bfloat16), vh.astype(jnp.bfloat16),
                      preferred_element_type=jnp.float32)          # (Lq, D)
        # fused fc_out: per-head slice of Wo, accumulated in f32
        acc = acc + jnp.dot(ctx.astype(jnp.bfloat16), wo[h],
                            preferred_element_type=jnp.float32)    # (Lq, E)

    o_ref[0] = (acc + bo_ref[...]).astype(o_ref.dtype)


def _add_layernorm_kernel(x_ref, r_ref, g_ref, b_ref, o_ref, *, eps):
    # fused residual add + layer norm, all f32 element-wise math
    x = x_ref[...] + r_ref[...]                           # (tm, E)
    mean = jnp.mean(x, axis=-1, keepdims=True)
    var = jnp.mean((x - mean) ** 2, axis=-1, keepdims=True)
    o_ref[...] = ((x - mean) * lax.rsqrt(var + eps)) * g_ref[...] + b_ref[...]


def _ffn_ln_kernel(x_ref, w1_ref, b1_ref, w2_ref, b2_ref, g_ref, b_ref, o_ref,
                   *, eps):
    # fused: linear1 -> ReLU -> linear2 -> +residual(x) -> layer norm
    x = x_ref[...]                                        # (tm, E) f32
    h = jnp.dot(x.astype(jnp.bfloat16), w1_ref[...].astype(jnp.bfloat16),
                preferred_element_type=jnp.float32) + b1_ref[...]   # (tm, 4E)
    h = jnp.maximum(h, 0.0)                               # ReLU in f32
    ff = jnp.dot(h.astype(jnp.bfloat16), w2_ref[...].astype(jnp.bfloat16),
                 preferred_element_type=jnp.float32) + b2_ref[...]  # (tm, E)
    y = ff + x
    mean = jnp.mean(y, axis=-1, keepdims=True)
    var = jnp.mean((y - mean) ** 2, axis=-1, keepdims=True)
    o_ref[...] = ((y - mean) * lax.rsqrt(var + eps)) * g_ref[...] + b_ref[...]


def _linear_kernel(x_ref, w_ref, b_ref, o_ref):
    y = jnp.dot(x_ref[...].astype(jnp.bfloat16), w_ref[...].astype(jnp.bfloat16),
                preferred_element_type=jnp.float32)
    o_ref[...] = (y + b_ref[...]).astype(o_ref.dtype)


# -----------------------------------------------------------------------------
# Kernel wrappers
# -----------------------------------------------------------------------------
def self_attention(values, keys, query, key_valid, p, embed_size, heads, causal):
    """Fused SelfAttention: per-head QKV proj + masked softmax + fc_out."""
    N, Lv, E = values.shape
    Lk = keys.shape[1]
    Lq = query.shape[1]
    D = E // heads

    def split_heads(x, L):
        return jnp.transpose(x.reshape(N, L, heads, D), (0, 2, 1, 3))

    q = split_heads(query, Lq)                    # (N, H, Lq, D)
    k = split_heads(keys, Lk)
    v = split_heads(values, Lv)
    kval = key_valid.reshape(N, 1, Lk).astype(jnp.float32)

    scale = 1.0 / math.sqrt(embed_size)           # module divides by sqrt(embed_size)
    out = pl.pallas_call(
        functools.partial(_attention_kernel, scale=scale, heads=heads,
                          causal=causal),
        grid=(N,),
        in_specs=[
            pl.BlockSpec((1, heads, Lq, D), lambda b: (b, 0, 0, 0)),
            pl.BlockSpec((1, heads, Lk, D), lambda b: (b, 0, 0, 0)),
            pl.BlockSpec((1, heads, Lv, D), lambda b: (b, 0, 0, 0)),
            pl.BlockSpec((1, 1, Lk), lambda b: (b, 0, 0)),
            pl.BlockSpec((D, D), lambda b: (0, 0)),
            pl.BlockSpec((D, D), lambda b: (0, 0)),
            pl.BlockSpec((D, D), lambda b: (0, 0)),
            pl.BlockSpec((heads, D, E), lambda b: (0, 0, 0)),
            pl.BlockSpec((1, E), lambda b: (0, 0)),
        ],
        out_specs=pl.BlockSpec((1, Lq, E), lambda b: (b, 0, 0)),
        out_shape=jax.ShapeDtypeStruct((N, Lq, E), jnp.float32),
        compiler_params=pltpu.CompilerParams(dimension_semantics=("parallel",)),
    )(q, k, v, kval, p["Wq"], p["Wk"], p["Wv"], p["Wo"], p["bo"])
    return out


def add_layernorm(x, res, gamma, beta, eps=1e-5):
    lead = x.shape[:-1]
    E = x.shape[-1]
    M = int(math.prod(lead))
    x2 = x.reshape(M, E)
    r2 = res.reshape(M, E)
    tm = _choose_tm(M)
    Mp = _round_up(M, tm)
    if Mp != M:
        pad = ((0, Mp - M), (0, 0))
        x2 = jnp.pad(x2, pad)
        r2 = jnp.pad(r2, pad)

    out = pl.pallas_call(
        functools.partial(_add_layernorm_kernel, eps=eps),
        grid=(Mp // tm,),
        in_specs=[
            pl.BlockSpec((tm, E), lambda i: (i, 0)),
            pl.BlockSpec((tm, E), lambda i: (i, 0)),
            pl.BlockSpec((1, E), lambda i: (0, 0)),
            pl.BlockSpec((1, E), lambda i: (0, 0)),
        ],
        out_specs=pl.BlockSpec((tm, E), lambda i: (i, 0)),
        out_shape=jax.ShapeDtypeStruct((Mp, E), jnp.float32),
        compiler_params=pltpu.CompilerParams(dimension_semantics=("parallel",)),
    )(x2, r2, gamma, beta)
    return out[:M].reshape(lead + (E,))


def ffn_block(x, p, eps=1e-5):
    """Fused feed-forward + residual + norm2 of a TransformerBlock."""
    lead = x.shape[:-1]
    E = x.shape[-1]
    Hd = p["W1"].shape[1]                          # hidden = forward_expansion * E
    M = int(math.prod(lead))
    x2 = x.reshape(M, E)
    tm = _choose_tm(M)
    Mp = _round_up(M, tm)
    if Mp != M:
        x2 = jnp.pad(x2, ((0, Mp - M), (0, 0)))

    out = pl.pallas_call(
        functools.partial(_ffn_ln_kernel, eps=eps),
        grid=(Mp // tm,),
        in_specs=[
            pl.BlockSpec((tm, E), lambda i: (i, 0)),
            pl.BlockSpec((E, Hd), lambda i: (0, 0)),
            pl.BlockSpec((1, Hd), lambda i: (0, 0)),
            pl.BlockSpec((Hd, E), lambda i: (0, 0)),
            pl.BlockSpec((1, E), lambda i: (0, 0)),
            pl.BlockSpec((1, E), lambda i: (0, 0)),
            pl.BlockSpec((1, E), lambda i: (0, 0)),
        ],
        out_specs=pl.BlockSpec((tm, E), lambda i: (i, 0)),
        out_shape=jax.ShapeDtypeStruct((Mp, E), jnp.float32),
        compiler_params=pltpu.CompilerParams(dimension_semantics=("parallel",)),
    )(x2, p["W1"], p["b1"], p["W2"], p["b2"], p["norm2_g"], p["norm2_b"])
    return out[:M].reshape(lead + (E,))


def output_linear(x, w, b, n_out):
    """Vocab projection. `w` is (E, Np) with Np padded to a lane-dense 128 multiple."""
    lead = x.shape[:-1]
    E = x.shape[-1]
    Np = w.shape[1]
    M = int(math.prod(lead))
    x2 = x.reshape(M, E)
    tm = _choose_tm(M)
    Mp = _round_up(M, tm)
    if Mp != M:
        x2 = jnp.pad(x2, ((0, Mp - M), (0, 0)))

    out = pl.pallas_call(
        _linear_kernel,
        grid=(Mp // tm,),
        in_specs=[
            pl.BlockSpec((tm, E), lambda i: (i, 0)),
            pl.BlockSpec((E, Np), lambda i: (0, 0)),
            pl.BlockSpec((1, Np), lambda i: (0, 0)),
        ],
        out_specs=pl.BlockSpec((tm, Np), lambda i: (i, 0)),
        out_shape=jax.ShapeDtypeStruct((Mp, Np), jnp.float32),
        compiler_params=pltpu.CompilerParams(dimension_semantics=("parallel",)),
    )(x2, w, b)
    return out[:M, :n_out].reshape(lead + (n_out,))


def transformer_block(value, key_, query, key_valid, p, embed_size, heads):
    attn = self_attention(value, key_, query, key_valid, p["attn"],
                          embed_size, heads, causal=False)
    x = add_layernorm(attn, query, p["norm1_g"], p["norm1_b"])
    return ffn_block(x, p)                         # linear-ReLU-linear + res + norm2


# -----------------------------------------------------------------------------
# Parameter initialization (deterministic, synthetic; weights pre-laid-out)
# -----------------------------------------------------------------------------
def _init_attn(key, E, heads):
    D = E // heads
    ks = jax.random.split(key, 5)
    s = 0.05
    wq = jax.random.normal(ks[0], (D, D), jnp.float32) * s   # torch (out, in)
    wk = jax.random.normal(ks[1], (D, D), jnp.float32) * s
    wv = jax.random.normal(ks[2], (D, D), jnp.float32) * s
    wo = jax.random.normal(ks[3], (E, E), jnp.float32) * s   # torch (out, in)
    bo = jax.random.normal(ks[4], (E,), jnp.float32) * s
    return {
        "Wq": wq.T,                            # (in, out), pre-transposed at init
        "Wk": wk.T,
        "Wv": wv.T,
        "Wo": wo.T.reshape(heads, D, E),       # (in=H*D, out=E) split per head
        "bo": bo.reshape(1, E),
    }


def _init_tblock(key, E, heads, FE):
    ks = jax.random.split(key, 5)
    s = 0.05
    Hd = FE * E
    return {
        "attn": _init_attn(ks[0], E, heads),
        "norm1_g": jnp.ones((1, E), jnp.float32),
        "norm1_b": jnp.zeros((1, E), jnp.float32),
        "norm2_g": jnp.ones((1, E), jnp.float32),
        "norm2_b": jnp.zeros((1, E), jnp.float32),
        "W1": (jax.random.normal(ks[1], (Hd, E), jnp.float32) * s).T,   # (E, 4E)
        "b1": (jax.random.normal(ks[2], (Hd,), jnp.float32) * s).reshape(1, Hd),
        "W2": (jax.random.normal(ks[3], (E, Hd), jnp.float32) * s).T,   # (4E, E)
        "b2": (jax.random.normal(ks[4], (E,), jnp.float32) * s).reshape(1, E),
    }


def init_transformer_params(key, src_vocab, trg_vocab, E, heads, num_layers,
                            FE, max_length):
    s = 0.05
    keys = jax.random.split(key, 8 + 2 * num_layers)
    enc_layers = [_init_tblock(keys[4 + i], E, heads, FE) for i in range(num_layers)]
    dec_layers = []
    for i in range(num_layers):
        ks = jax.random.split(keys[4 + num_layers + i], 2)
        dec_layers.append({
            "attn": _init_attn(ks[0], E, heads),
            "norm_g": jnp.ones((1, E), jnp.float32),
            "norm_b": jnp.zeros((1, E), jnp.float32),
            "tblock": _init_tblock(ks[1], E, heads, FE),
        })

    v_pad = _round_up(trg_vocab, 128)              # lane-dense vocab projection
    wout = jax.random.normal(keys[-2], (trg_vocab, E), jnp.float32) * s
    bout = jax.random.normal(keys[-1], (trg_vocab,), jnp.float32) * s
    Wout = jnp.zeros((E, v_pad), jnp.float32).at[:, :trg_vocab].set(wout.T)
    Bout = jnp.zeros((1, v_pad), jnp.float32).at[0, :trg_vocab].set(bout)

    return {
        "encoder": {
            "word_emb": jax.random.normal(keys[0], (src_vocab, E), jnp.float32) * s,
            "pos_emb": jax.random.normal(keys[1], (max_length, E), jnp.float32) * s,
            "layers": enc_layers,
        },
        "decoder": {
            "word_emb": jax.random.normal(keys[2], (trg_vocab, E), jnp.float32) * s,
            "pos_emb": jax.random.normal(keys[3], (max_length, E), jnp.float32) * s,
            "layers": dec_layers,
            "Wout": Wout,
            "bout": Bout,
        },
    }


# -----------------------------------------------------------------------------
# Full forward pass (dropout p=0 -> identity)
# -----------------------------------------------------------------------------
def transformer_forward(params, src, trg, src_pad_idx, trg_pad_idx,
                        embed_size, heads, trg_vocab):
    N, Ls = src.shape
    _, Lt = trg.shape

    # key-padding validity for the encoder / cross attention; causal mask is
    # generated inside the attention kernel (no (N,1,Lq,Lk) tensor in HBM).
    src_key_valid = (src != src_pad_idx).astype(jnp.float32)       # (N, Ls)
    trg_key_valid = jnp.ones((N, Lt), jnp.float32)

    # ---- Encoder ----
    enc = params["encoder"]
    x = jnp.take(enc["word_emb"], src, axis=0) + enc["pos_emb"][None, :Ls, :]
    for lp in enc["layers"]:
        x = transformer_block(x, x, x, src_key_valid, lp, embed_size, heads)
    enc_out = x

    # ---- Decoder ----
    dec = params["decoder"]
    y = jnp.take(dec["word_emb"], trg, axis=0) + dec["pos_emb"][None, :Lt, :]
    for lp in dec["layers"]:
        attn = self_attention(y, y, y, trg_key_valid, lp["attn"],
                              embed_size, heads, causal=True)
        q = add_layernorm(attn, y, lp["norm_g"], lp["norm_b"])
        y = transformer_block(enc_out, enc_out, q, src_key_valid, lp["tblock"],
                              embed_size, heads)

    return output_linear(y, dec["Wout"], dec["bout"], trg_vocab)


# -----------------------------------------------------------------------------
# Main
# -----------------------------------------------------------------------------
if __name__ == "__main__":
    SRC_VOCAB, TRG_VOCAB = 50, 60
    SRC_PAD_IDX, TRG_PAD_IDX = 0, 0
    EMBED = 32
    HEADS = 4
    NUM_LAYERS = 2
    FWD_EXP = 4
    MAX_LEN = 16
    N, L_SRC, L_TRG = 2, 8, 8

    root = jax.random.PRNGKey(0)
    k_par, k_src, k_trg = jax.random.split(root, 3)

    params = init_transformer_params(k_par, SRC_VOCAB, TRG_VOCAB, EMBED, HEADS,
                                     NUM_LAYERS, FWD_EXP, MAX_LEN)

    src = jax.random.randint(k_src, (N, L_SRC), 1, SRC_VOCAB, dtype=jnp.int32)
    trg = jax.random.randint(k_trg, (N, L_TRG), 1, TRG_VOCAB, dtype=jnp.int32)
    # put a couple of pad tokens into src so the padding mask is exercised
    src = src.at[:, -1].set(SRC_PAD_IDX)

    fwd = jax.jit(functools.partial(transformer_forward,
                                    src_pad_idx=SRC_PAD_IDX,
                                    trg_pad_idx=TRG_PAD_IDX,
                                    embed_size=EMBED,
                                    heads=HEADS,
                                    trg_vocab=TRG_VOCAB))
    out = jax.block_until_ready(fwd(params, src, trg))

    assert out.shape == (N, L_TRG, TRG_VOCAB), out.shape
    assert bool(jnp.all(jnp.isfinite(out)))
    print("KERNEL_OK")
</pallas_src>

<mosaic_0001>
module attributes {stable_mosaic.version = 11 : i64} {
  func.func @_add_layernorm_kernel(%arg0: i32, %arg1: memref<8x32xf32, #tpu.memory_space<vmem>>, %arg2: memref<8x32xf32, #tpu.memory_space<vmem>>, %arg3: memref<1x32xf32, #tpu.memory_space<vmem>>, %arg4: memref<1x32xf32, #tpu.memory_space<vmem>>, %arg5: memref<8x32xf32, #tpu.memory_space<vmem>>) attributes {dimension_semantics = [#tpu.dimension_semantics<parallel>], iteration_bounds = array<i64: 2>, scalar_prefetch = 0 : i64, scratch_operands = 0 : i64, tpu.core_type = #tpu.core_type<tc>, window_params = [{transform_indices = @transform_0, window_bounds = array<i64: 8, 32>}, {transform_indices = @transform_1, window_bounds = array<i64: 8, 32>}, {pipeline_mode = #tpu.pipeline_mode<synchronous>, transform_indices = @transform_2, window_bounds = array<i64: 1, 32>}, {pipeline_mode = #tpu.pipeline_mode<synchronous>, transform_indices = @transform_3, window_bounds = array<i64: 1, 32>}, {transform_indices = @transform_4, window_bounds = array<i64: 8, 32>}]} {
    %c0 = arith.constant 0 : index
    %c0_0 = arith.constant 0 : index
    %0 = vector.load %arg1[%c0, %c0_0] : memref<8x32xf32, #tpu.memory_space<vmem>>, vector<8x32xf32>
    %c0_1 = arith.constant 0 : index
    %c0_2 = arith.constant 0 : index
    %1 = vector.load %arg2[%c0_1, %c0_2] : memref<8x32xf32, #tpu.memory_space<vmem>>, vector<8x32xf32>
    %2 = arith.addf %0, %1 : vector<8x32xf32>
    %cst = arith.constant dense<0.000000e+00> : vector<8xf32>
    %3 = vector.multi_reduction <add>, %2, %cst [1] : vector<8x32xf32> to vector<8xf32>
    %4 = vector.shape_cast %3 : vector<8xf32> to vector<8x1xf32>
    %cst_3 = arith.constant 3.200000e+01 : f32
    %5 = vector.broadcast %cst_3 : f32 to vector<8x1xf32>
    %6 = arith.divf %4, %5 : vector<8x1xf32>
    %7 = vector.broadcast %6 : vector<8x1xf32> to vector<8x32xf32>
    %8 = arith.subf %2, %7 : vector<8x32xf32>
    %9 = arith.mulf %8, %8 : vector<8x32xf32>
    %cst_4 = arith.constant dense<0.000000e+00> : vector<8xf32>
    %10 = vector.multi_reduction <add>, %9, %cst_4 [1] : vector<8x32xf32> to vector<8xf32>
    %11 = vector.shape_cast %10 : vector<8xf32> to vector<8x1xf32>
    %cst_5 = arith.constant 3.200000e+01 : f32
    %12 = vector.broadcast %cst_5 : f32 to vector<8x1xf32>
    %13 = arith.divf %11, %12 : vector<8x1xf32>
    %14 = vector.broadcast %6 : vector<8x1xf32> to vector<8x32xf32>
    %15 = arith.subf %2, %14 : vector<8x32xf32>
    %cst_6 = arith.constant 9.99999974E-6 : f32
    %16 = vector.broadcast %cst_6 : f32 to vector<8x1xf32>
    %17 = arith.addf %13, %16 : vector<8x1xf32>
    %18 = math.rsqrt %17 : vector<8x1xf32>
    %19 = vector.broadcast %18 : vector<8x1xf32> to vector<8x32xf32>
    %20 = arith.mulf %15, %19 : vector<8x32xf32>
    %c0_7 = arith.constant 0 : index
    %c0_8 = arith.constant 0 : index
    %21 = vector.load %arg3[%c0_7, %c0_8] : memref<1x32xf32, #tpu.memory_space<vmem>>, vector<1x32xf32>
    %22 = vector.broadcast %21 : vector<1x32xf32> to vector<8x32xf32>
    %23 = arith.mulf %20, %22 : vector<8x32xf32>
    %c0_9 = arith.constant 0 : index
    %c0_10 = arith.constant 0 : index
    %24 = vector.load %arg4[%c0_9, %c0_10] : memref<1x32xf32, #tpu.memory_space<vmem>>, vector<1x32xf32>
    %25 = vector.broadcast %24 : vector<1x32xf32> to vector<8x32xf32>
    %26 = arith.addf %23, %25 : vector<8x32xf32>
    %c0_11 = arith.constant 0 : index
    %c0_12 = arith.constant 0 : index
    %27 = vector.load %arg5[%c0_11, %c0_12] : memref<8x32xf32, #tpu.memory_space<vmem>>, vector<8x32xf32>
    tpu.vector_store %arg5[%c0_11, %c0_12], %26 {strides = array<i32>} : memref<8x32xf32, #tpu.memory_space<vmem>>, vector<8x32xf32>,
    return
  }
  func.func @transform_0(%arg0: i32) -> (i32, i32) {
    %c0_i32 = arith.constant 0 : i32
    %c0_i32_0 = arith.constant 0 : i32
    return %arg0, %c0_i32 : i32, i32
  }
  func.func @transform_1(%arg0: i32) -> (i32, i32) {
    %c0_i32 = arith.constant 0 : i32
    %c0_i32_0 = arith.constant 0 : i32
    return %arg0, %c0_i32 : i32, i32
  }
  func.func @transform_2(%arg0: i32) -> (i32, i32) {
    %c0_i32 = arith.constant 0 : i32
    %c0_i32_0 = arith.constant 0 : i32
    %c0_i32_1 = arith.constant 0 : i32
    return %c0_i32, %c0_i32_0 : i32, i32
  }
  func.func @transform_3(%arg0: i32) -> (i32, i32) {
    %c0_i32 = arith.constant 0 : i32
    %c0_i32_0 = arith.constant 0 : i32
    %c0_i32_1 = arith.constant 0 : i32
    return %c0_i32, %c0_i32_0 : i32, i32
  }
  func.func @transform_4(%arg0: i32) -> (i32, i32) {
    %c0_i32 = arith.constant 0 : i32
    %c0_i32_0 = arith.constant 0 : i32
    return %arg0, %c0_i32 : i32, i32
  }
}

module attributes {stable_mosaic.version = 11 : i64} {
  func.func @_ffn_ln_kernel(%arg0: i32, %arg1: memref<8x32xf32, #tpu.memory_space<vmem>>, %arg2: memref<32x128xf32, #tpu.memory_space<vmem>>, %arg3: memref<1x128xf32, #tpu.memory_space<vmem>>, %arg4: memref<128x32xf32, #tpu.memory_space<vmem>>, %arg5: memref<1x32xf32, #tpu.memory_space<vmem>>, %arg6: memref<1x32xf32, #tpu.memory_space<vmem>>, %arg7: memref<1x32xf32, #tpu.memory_space<vmem>>, %arg8: memref<8x32xf32, #tpu.memory_space<vmem>>) attributes {dimension_semantics = [#tpu.dimension_semantics<parallel>], iteration_bounds = array<i64: 2>, scalar_prefetch = 0 : i64, scratch_operands = 0 : i64, tpu.core_type = #tpu.core_type<tc>, window_params = [{transform_indices = @transform_0, window_bounds = array<i64: 8, 32>}, {pipeline_mode = #tpu.pipeline_mode<synchronous>, transform_indices = @transform_1, window_bounds = array<i64: 32, 128>}, {pipeline_mode = #tpu.pipeline_mode<synchronous>, transform_indices = @transform_2, window_bounds = array<i64: 1, 128>}, {pipeline_mode = #tpu.pipeline_mode<synchronous>, transform_indices = @transform_3, window_bounds = array<i64: 128, 32>}, {pipeline_mode = #tpu.pipeline_mode<synchronous>, transform_indices = @transform_4, window_bounds = array<i64: 1, 32>}, {pipeline_mode = #tpu.pipeline_mode<synchronous>, transform_indices = @transform_5, window_bounds = array<i64: 1, 32>}, {pipeline_mode = #tpu.pipeline_mode<synchronous>, transform_indices = @transform_6, window_bounds = array<i64: 1, 32>}, {transform_indices = @transform_7, window_bounds = array<i64: 8, 32>}]} {
    %c0 = arith.constant 0 : index
    %c0_0 = arith.constant 0 : index
    %0 = vector.load %arg1[%c0, %c0_0] : memref<8x32xf32, #tpu.memory_space<vmem>>, vector<8x32xf32>
    %1 = arith.truncf %0 : vector<8x32xf32> to vector<8x32xbf16>
    %c0_1 = arith.constant 0 : index
    %c0_2 = arith.constant 0 : index
    %2 = vector.load %arg2[%c0_1, %c0_2] : memref<32x128xf32, #tpu.memory_space<vmem>>, vector<32x128xf32>
    %3 = arith.truncf %2 : vector<32x128xf32> to vector<32x128xbf16>
    %cst = arith.constant dense<0.000000e+00> : vector<8x128xf32>
    %4 = tpu.matmul %1, %3, %cst {dimension_numbers = #tpu.dot_dimension_numbers<[1], [0], [0], [1], [0, 0, 1, 1], [], []>} : vector<8x32xbf16>, vector<32x128xbf16>, vector<8x128xf32> -> vector<8x128xf32>
    %c0_3 = arith.constant 0 : index
    %c0_4 = arith.constant 0 : index
    %5 = vector.load %arg3[%c0_3, %c0_4] : memref<1x128xf32, #tpu.memory_space<vmem>>, vector<1x128xf32>
    %6 = vector.broadcast %5 : vector<1x128xf32> to vector<8x128xf32>
    %7 = arith.addf %4, %6 : vector<8x128xf32>
    %cst_5 = arith.constant 0.000000e+00 : f32
    %8 = vector.broadcast %cst_5 : f32 to vector<8x128xf32>
    %9 = arith.maximumf %7, %8 : vector<8x128xf32>
    %10 = arith.truncf %9 : vector<8x128xf32> to vector<8x128xbf16>
    %c0_6 = arith.constant 0 : index
    %c0_7 = arith.constant 0 : index
    %11 = vector.load %arg4[%c0_6, %c0_7] : memref<128x32xf32, #tpu.memory_space<vmem>>, vector<128x32xf32>
    %12 = arith.truncf %11 : vector<128x32xf32> to vector<128x32xbf16>
    %cst_8 = arith.constant dense<0.000000e+00> : vector<8x32xf32>
    %13 = tpu.matmul %10, %12, %cst_8 {dimension_numbers = #tpu.dot_dimension_numbers<[1], [0], [0], [1], [0, 0, 1, 1], [], []>} : vector<8x128xbf16>, vector<128x32xbf16>, vector<8x32xf32> -> vector<8x32xf32>
    %c0_9 = arith.constant 0 : index
    %c0_10 = arith.constant 0 : index
    %14 = vector.load %arg5[%c0_9, %c0_10] : memref<1x32xf32, #tpu.memory_space<vmem>>, vector<1x32xf32>
    %15 = vector.broadcast %14 : vector<1x32xf32> to vector<8x32xf32>
    %16 = arith.addf %13, %15 : vector<8x32xf32>
    %17 = arith.addf %16, %0 : vector<8x32xf32>
    %cst_11 = arith.constant dense<0.000000e+00> : vector<8xf32>
    %18 = vector.multi_reduction <add>, %17, %cst_11 [1] : vector<8x32xf32> to vector<8xf32>
    %19 = vector.shape_cast %18 : vector<8xf32> to vector<8x1xf32>
    %cst_12 = arith.constant 3.200000e+01 : f32
    %20 = vector.broadcast %cst_12 : f32 to vector<8x1xf32>
    %21 = arith.divf %19, %20 : vector<8x1xf32>
    %22 = vector.broadcast %21 : vector<8x1xf32> to vector<8x32xf32>
    %23 = arith.subf %17, %22 : vector<8x32xf32>
    %24 = arith.mulf %23, %23 : vector<8x32xf32>
    %cst_13 = arith.constant dense<0.000000e+00> : vector<8xf32>
    %25 = vector.multi_reduction <add>, %24, %cst_13 [1] : vector<8x32xf32> to vector<8xf32>
    %26 = vector.shape_cast %25 : vector<8xf32> to vector<8x1xf32>
    %cst_14 = arith.constant 3.200000e+01 : f32
    %27 = vector.broadcast %cst_14 : f32 to vector<8x1xf32>
    %28 = arith.divf %26, %27 : vector<8x1xf32>
    %29 = vector.broadcast %21 : vector<8x1xf32> to vector<8x32xf32>
    %30 = arith.subf %17, %29 : vector<8x32xf32>
    %cst_15 = arith.constant 9.99999974E-6 : f32
    %31 = vector.broadcast %cst_15 : f32 to vector<8x1xf32>
    %32 = arith.addf %28, %31 : vector<8x1xf32>
    %33 = math.rsqrt %32 : vector<8x1xf32>
    %34 = vector.broadcast %33 : vector<8x1xf32> to vector<8x32xf32>
    %35 = arith.mulf %30, %34 : vector<8x32xf32>
    %c0_16 = arith.constant 0 : index
    %c0_17 = arith.constant 0 : index
    %36 = vector.load %arg6[%c0_16, %c0_17] : memref<1x32xf32, #tpu.memory_space<vmem>>, vector<1x32xf32>
    %37 = vector.broadcast %36 : vector<1x32xf32> to vector<8x32xf32>
    %38 = arith.mulf %35, %37 : vector<8x32xf32>
    %c0_18 = arith.constant 0 : index
    %c0_19 = arith.constant 0 : index
    %39 = vector.load %arg7[%c0_18, %c0_19] : memref<1x32xf32, #tpu.memory_space<vmem>>, vector<1x32xf32>
    %40 = vector.broadcast %39 : vector<1x32xf32> to vector<8x32xf32>
    %41 = arith.addf %38, %40 : vector<8x32xf32>
    %c0_20 = arith.constant 0 : index
    %c0_21 = arith.constant 0 : index
    %42 = vector.load %arg8[%c0_20, %c0_21] : memref<8x32xf32, #tpu.memory_space<vmem>>, vector<8x32xf32>
    tpu.vector_store %arg8[%c0_20, %c0_21], %41 {strides = array<i32>} : memref<8x32xf32, #tpu.memory_space<vmem>>, vector<8x32xf32>,
    return
  }
  func.func @transform_0(%arg0: i32) -> (i32, i32) {
    %c0_i32 = arith.constant 0 : i32
    %c0_i32_0 = arith.constant 0 : i32
    return %arg0, %c0_i32 : i32, i32
  }
  func.func @transform_1(%arg0: i32) -> (i32, i32) {
    %c0_i32 = arith.constant 0 : i32
    %c0_i32_0 = arith.constant 0 : i32
    %c0_i32_1 = arith.constant 0 : i32
    return %c0_i32, %c0_i32_0 : i32, i32
  }
  func.func @transform_2(%arg0: i32) -> (i32, i32) {
    %c0_i32 = arith.constant 0 : i32
    %c0_i32_0 = arith.constant 0 : i32
    %c0_i32_1 = arith.constant 0 : i32
    return %c0_i32, %c0_i32_0 : i32, i32
  }
  func.func @transform_3(%arg0: i32) -> (i32, i32) {
    %c0_i32 = arith.constant 0 : i32
    %c0_i32_0 = arith.constant 0 : i32
    %c0_i32_1 = arith.constant 0 : i32
    return %c0_i32, %c0_i32_0 : i32, i32
  }
  func.func @transform_4(%arg0: i32) -> (i32, i32) {
    %c0_i32 = arith.constant 0 : i32
    %c0_i32_0 = arith.constant 0 : i32
    %c0_i32_1 = arith.constant 0 : i32
    return %c0_i32, %c0_i32_0 : i32, i32
  }
  func.func @transform_5(%arg0: i32) -> (i32, i32) {
    %c0_i32 = arith.constant 0 : i32
    %c0_i32_0 = arith.constant 0 : i32
    %c0_i32_1 = arith.constant 0 : i32
    return %c0_i32, %c0_i32_0 : i32, i32
  }
  func.func @transform_6(%arg0: i32) -> (i32, i32) {
    %c0_i32 = arith.constant 0 : i32
    %c0_i32_0 = arith.constant 0 : i32
    %c0_i32_1 = arith.constant 0 : i32
    return %c0_i32, %c0_i32_0 : i32, i32
  }
  func.func @transform_7(%arg0: i32) -> (i32, i32) {
    %c0_i32 = arith.constant 0 : i32
    %c0_i32_0 = arith.constant 0 : i32
    return %arg0, %c0_i32 : i32, i32
  }
}

module attributes {stable_mosaic.version = 11 : i64} {
  func.func @_attention_kernel(%arg0: i32, %arg1: memref<1x4x8x8xf32, #tpu.memory_space<vmem>>, %arg2: memref<1x4x8x8xf32, #tpu.memory_space<vmem>>, %arg3: memref<1x4x8x8xf32, #tpu.memory_space<vmem>>, %arg4: memref<1x1x8xf32, #tpu.memory_space<vmem>>, %arg5: memref<8x8xf32, #tpu.memory_space<vmem>>, %arg6: memref<8x8xf32, #tpu.memory_space<vmem>>, %arg7: memref<8x8xf32, #tpu.memory_space<vmem>>, %arg8: memref<4x8x32xf32, #tpu.memory_space<vmem>>, %arg9: memref<1x32xf32, #tpu.memory_space<vmem>>, %arg10: memref<1x8x32xf32, #tpu.memory_space<vmem>>) attributes {dimension_semantics = [#tpu.dimension_semantics<parallel>], iteration_bounds = array<i64: 2>, scalar_prefetch = 0 : i64, scratch_operands = 0 : i64, tpu.core_type = #tpu.core_type<tc>, window_params = [{transform_indices = @transform_0, window_bounds = array<i64: 1, 4, 8, 8>}, {transform_indices = @transform_1, window_bounds = array<i64: 1, 4, 8, 8>}, {transform_indices = @transform_2, window_bounds = array<i64: 1, 4, 8, 8>}, {transform_indices = @transform_3, window_bounds = array<i64: 1, 1, 8>}, {pipeline_mode = #tpu.pipeline_mode<synchronous>, transform_indices = @transform_4, window_bounds = array<i64: 8, 8>}, {pipeline_mode = #tpu.pipeline_mode<synchronous>, transform_indices = @transform_5, window_bounds = array<i64: 8, 8>}, {pipeline_mode = #tpu.pipeline_mode<synchronous>, transform_indices = @transform_6, window_bounds = array<i64: 8, 8>}, {pipeline_mode = #tpu.pipeline_mode<synchronous>, transform_indices = @transform_7, window_bounds = array<i64: 4, 8, 32>}, {pipeline_mode = #tpu.pipeline_mode<synchronous>, transform_indices = @transform_8, window_bounds = array<i64: 1, 32>}, {transform_indices = @transform_9, window_bounds = array<i64: 1, 8, 32>}]} {
    %c0 = arith.constant 0 : index
    %c0_0 = arith.constant 0 : index
    %c0_1 = arith.constant 0 : index
    %c0_2 = arith.constant 0 : index
    %0 = vector.load %arg1[%c0, %c0_0, %c0_1, %c0_2] : memref<1x4x8x8xf32, #tpu.memory_space<vmem>>, vector<1x4x8x8xf32>
    %1 = vector.shape_cast %0 : vector<1x4x8x8xf32> to vector<4x8x8xf32>
    %c0_3 = arith.constant 0 : index
    %c0_4 = arith.constant 0 : index
    %c0_5 = arith.constant 0 : index
    %c0_6 = arith.constant 0 : index
    %2 = vector.load %arg2[%c0_3, %c0_4, %c0_5, %c0_6] : memref<1x4x8x8xf32, #tpu.memory_space<vmem>>, vector<1x4x8x8xf32>
    %3 = vector.shape_cast %2 : vector<1x4x8x8xf32> to vector<4x8x8xf32>
    %c0_7 = arith.constant 0 : index
    %c0_8 = arith.constant 0 : index
    %c0_9 = arith.constant 0 : index
    %c0_10 = arith.constant 0 : index
    %4 = vector.load %arg3[%c0_7, %c0_8, %c0_9, %c0_10] : memref<1x4x8x8xf32, #tpu.memory_space<vmem>>, vector<1x4x8x8xf32>
    %5 = vector.shape_cast %4 : vector<1x4x8x8xf32> to vector<4x8x8xf32>
    %c0_11 = arith.constant 0 : index
    %c0_12 = arith.constant 0 : index
    %6 = vector.load %arg5[%c0_11, %c0_12] : memref<8x8xf32, #tpu.memory_space<vmem>>, vector<8x8xf32>
    %7 = arith.truncf %6 : vector<8x8xf32> to vector<8x8xbf16>
    %c0_13 = arith.constant 0 : index
    %c0_14 = arith.constant 0 : index
    %8 = vector.load %arg6[%c0_13, %c0_14] : memref<8x8xf32, #tpu.memory_space<vmem>>, vector<8x8xf32>
    %9 = arith.truncf %8 : vector<8x8xf32> to vector<8x8xbf16>
    %c0_15 = arith.constant 0 : index
    %c0_16 = arith.constant 0 : index
    %10 = vector.load %arg7[%c0_15, %c0_16] : memref<8x8xf32, #tpu.memory_space<vmem>>, vector<8x8xf32>
    %11 = arith.truncf %10 : vector<8x8xf32> to vector<8x8xbf16>
    %c0_17 = arith.constant 0 : index
    %c0_18 = arith.constant 0 : index
    %c0_19 = arith.constant 0 : index
    %12 = vector.load %arg8[%c0_17, %c0_18, %c0_19] : memref<4x8x32xf32, #tpu.memory_space<vmem>>, vector<4x8x32xf32>
    %13 = arith.truncf %12 : vector<4x8x32xf32> to vector<4x8x32xbf16>
    %c0_20 = arith.constant 0 : index
    %c0_21 = arith.constant 0 : index
    %c0_22 = arith.constant 0 : index
    %14 = vector.load %arg4[%c0_20, %c0_21, %c0_22] : memref<1x1x8xf32, #tpu.memory_space<vmem>>, vector<1x1x8xf32>
    %15 = vector.shape_cast %14 : vector<1x1x8xf32> to vector<1x8xf32>
    %cst = arith.constant 0.000000e+00 : f32
    %16 = vector.broadcast %cst : f32 to vector<1x8xf32>
    %17 = arith.cmpf one, %15, %16 : vector<1x8xf32>
    %cst_23 = arith.constant 0.000000e+00 : f32
    %18 = vector.broadcast %cst_23 : f32 to vector<8x32xf32>
    %19 = vector.extract_strided_slice %1 {offsets = [0, 0, 0], sizes = [1, 8, 8], strides = [1, 1, 1]} : vector<4x8x8xf32> to vector<1x8x8xf32>
    %20 = vector.shape_cast %19 : vector<1x8x8xf32> to vector<8x8xf32>
    %21 = arith.truncf %20 : vector<8x8xf32> to vector<8x8xbf16>
    %cst_24 = arith.constant dense<0.000000e+00> : vector<8x8xf32>
    %22 = tpu.matmul %21, %7, %cst_24 {dimension_numbers = #tpu.dot_dimension_numbers<[1], [0], [0], [1], [0, 0, 1, 1], [], []>} : vector<8x8xbf16>, vector<8x8xbf16>, vector<8x8xf32> -> vector<8x8xf32>
    %23 = vector.extract_strided_slice %3 {offsets = [0, 0, 0], sizes = [1, 8, 8], strides = [1, 1, 1]} : vector<4x8x8xf32> to vector<1x8x8xf32>
    %24 = vector.shape_cast %23 : vector<1x8x8xf32> to vector<8x8xf32>
    %25 = arith.truncf %24 : vector<8x8xf32> to vector<8x8xbf16>
    %cst_25 = arith.constant dense<0.000000e+00> : vector<8x8xf32>
    %26 = tpu.matmul %25, %9, %cst_25 {dimension_numbers = #tpu.dot_dimension_numbers<[1], [0], [0], [1], [0, 0, 1, 1], [], []>} : vector<8x8xbf16>, vector<8x8xbf16>, vector<8x8xf32> -> vector<8x8xf32>
    %27 = vector.extract_strided_slice %5 {offsets = [0, 0, 0], sizes = [1, 8, 8], strides = [1, 1, 1]} : vector<4x8x8xf32> to vector<1x8x8xf32>
    %28 = vector.shape_cast %27 : vector<1x8x8xf32> to vector<8x8xf32>
    %29 = arith.truncf %28 : vector<8x8xf32> to vector<8x8xbf16>
    %cst_26 = arith.constant dense<0.000000e+00> : vector<8x8xf32>
    %30 = tpu.matmul %29, %11, %cst_26 {dimension_numbers = #tpu.dot_dimension_numbers<[1], [0], [0], [1], [0, 0, 1, 1], [], []>} : vector<8x8xbf16>, vector<8x8xbf16>, vector<8x8xf32> -> vector<8x8xf32>
    %31 = arith.truncf %22 : vector<8x8xf32> to vector<8x8xbf16>
    %32 = arith.truncf %26 : vector<8x8xf32> to vector<8x8xbf16>
    %cst_27 = arith.constant dense<0.000000e+00> : vector<8x8xf32>
    %33 = tpu.matmul %31, %32, %cst_27 {dimension_numbers = #tpu.dot_dimension_numbers<[1], [1], [0], [0], [0, 0, 1, 0], [], []>} : vector<8x8xbf16>, vector<8x8xbf16>, vector<8x8xf32> -> vector<8x8xf32>
    %cst_28 = arith.constant -1.000000e+20 : f32
    %34 = vector.shape_cast %17 : vector<1x8xi1> to vector<1x8xi1>
    %35 = vector.broadcast %34 : vector<1x8xi1> to vector<8x8xi1>
    %36 = vector.broadcast %cst_28 : f32 to vector<8x8xf32>
    %37 = arith.select %35, %33, %36 : vector<8x8xi1>, vector<8x8xf32>
    %cst_29 = arith.constant 0.176776692 : f32
    %38 = vector.broadcast %cst_29 : f32 to vector<8x8xf32>
    %39 = arith.mulf %37, %38 : vector<8x8xf32>
    %cst_30 = arith.constant dense<0xFF800000> : vector<8xf32>
    %40 = vector.multi_reduction <maximumf>, %39, %cst_30 [1] : vector<8x8xf32> to vector<8xf32>
    %41 = vector.shape_cast %40 : vector<8xf32> to vector<8x1xf32>
    %42 = vector.broadcast %41 : vector<8x1xf32> to vector<8x8xf32>
    %43 = arith.subf %39, %42 : vector<8x8xf32>
    %44 = math.exp %43 : vector<8x8xf32>
    %cst_31 = arith.constant dense<0.000000e+00> : vector<8xf32>
    %45 = vector.multi_reduction <add>, %44, %cst_31 [1] : vector<8x8xf32> to vector<8xf32>
    %46 = vector.shape_cast %45 : vector<8xf32> to vector<8x1xf32>
    %47 = tpu.reciprocal %46 {approx = true} : vector<8x1xf32> -> vector<8x1xf32>
    %48 = vector.broadcast %47 : vector<8x1xf32> to vector<8x8xf32>
    %49 = arith.mulf %44, %48 : vector<8x8xf32>
    %50 = arith.truncf %49 : vector<8x8xf32> to vector<8x8xbf16>
    %51 = arith.truncf %30 : vector<8x8xf32> to vector<8x8xbf16>
    %cst_32 = arith.constant dense<0.000000e+00> : vector<8x8xf32>
    %52 = tpu.matmul %50, %51, %cst_32 {dimension_numbers = #tpu.dot_dimension_numbers<[1], [0], [0], [1], [0, 0, 1, 1], [], []>} : vector<8x8xbf16>, vector<8x8xbf16>, vector<8x8xf32> -> vector<8x8xf32>
    %53 = arith.truncf %52 : vector<8x8xf32> to vector<8x8xbf16>
    %54 = vector.extract_strided_slice %13 {offsets = [0, 0, 0], sizes = [1, 8, 32], strides = [1, 1, 1]} : vector<4x8x32xbf16> to vector<1x8x32xbf16>
    %55 = vector.shape_cast %54 : vector<1x8x32xbf16> to vector<8x32xbf16>
    %cst_33 = arith.constant dense<0.000000e+00> : vector<8x32xf32>
    %56 = tpu.matmul %53, %55, %cst_33 {dimension_numbers = #tpu.dot_dimension_numbers<[1], [0], [0], [1], [0, 0, 1, 1], [], []>} : vector<8x8xbf16>, vector<8x32xbf16>, vector<8x32xf32> -> vector<8x32xf32>
    %57 = arith.addf %18, %56 : vector<8x32xf32>
    %58 = vector.extract_strided_slice %1 {offsets = [1, 0, 0], sizes = [1, 8, 8], strides = [1, 1, 1]} : vector<4x8x8xf32> to vector<1x8x8xf32>
    %59 = vector.shape_cast %58 : vector<1x8x8xf32> to vector<8x8xf32>
    %60 = arith.truncf %59 : vector<8x8xf32> to vector<8x8xbf16>
    %cst_34 = arith.constant dense<0.000000e+00> : vector<8x8xf32>
    %61 = tpu.matmul %60, %7, %cst_34 {dimension_numbers = #tpu.dot_dimension_numbers<[1], [0], [0], [1], [0, 0, 1, 1], [], []>} : vector<8x8xbf16>, vector<8x8xbf16>, vector<8x8xf32> -> vector<8x8xf32>
    %62 = vector.extract_strided_slice %3 {offsets = [1, 0, 0], sizes = [1, 8, 8], strides = [1, 1, 1]} : vector<4x8x8xf32> to vector<1x8x8xf32>
    %63 = vector.shape_cast %62 : vector<1x8x8xf32> to vector<8x8xf32>
    %64 = arith.truncf %63 : vector<8x8xf32> to vector<8x8xbf16>
    %cst_35 = arith.constant dense<0.000000e+00> : vector<8x8xf32>
    %65 = tpu.matmul %64, %9, %cst_35 {dimension_numbers = #tpu.dot_dimension_numbers<[1], [0], [0], [1], [0, 0, 1, 1], [], []>} : vector<8x8xbf16>, vector<8x8xbf16>, vector<8x8xf32> -> vector<8x8xf32>
    %66 = vector.extract_strided_slice %5 {offsets = [1, 0, 0], sizes = [1, 8, 8], strides = [1, 1, 1]} : vector<4x8x8xf32> to vector<1x8x8xf32>
    %67 = vector.shape_cast %66 : vector<1x8x8xf32> to vector<8x8xf32>
    %68 = arith.truncf %67 : vector<8x8xf32> to vector<8x8xbf16>
    %cst_36 = arith.constant dense<0.000000e+00> : vector<8x8xf32>
    %69 = tpu.matmul %68, %11, %cst_36 {dimension_numbers = #tpu.dot_dimension_numbers<[1], [0], [0], [1], [0, 0, 1, 1], [], []>} : vector<8x8xbf16>, vector<8x8xbf16>, vector<8x8xf32> -> vector<8x8xf32>
    %70 = arith.truncf %61 : vector<8x8xf32> to vector<8x8xbf16>
    %71 = arith.truncf %65 : vector<8x8xf32> to vector<8x8xbf16>
    %cst_37 = arith.constant dense<0.000000e+00> : vector<8x8xf32>
    %72 = tpu.matmul %70, %71, %cst_37 {dimension_numbers = #tpu.dot_dimension_numbers<[1], [1], [0], [0], [0, 0, 1, 0], [], []>} : vector<8x8xbf16>, vector<8x8xbf16>, vector<8x8xf32> -> vector<8x8xf32>
    %cst_38 = arith.constant -1.000000e+20 : f32
    %73 = vector.shape_cast %17 : vector<1x8xi1> to vector<1x8xi1>
    %74 = vector.broadcast %73 : vector<1x8xi1> to vector<8x8xi1>
    %75 = vector.broadcast %cst_38 : f32 to vector<8x8xf32>
    %76 = arith.select %74, %72, %75 : vector<8x8xi1>, vector<8x8xf32>
    %cst_39 = arith.constant 0.176776692 : f32
    %77 = vector.broadcast %cst_39 : f32 to vector<8x8xf32>
    %78 = arith.mulf %76, %77 : vector<8x8xf32>
    %cst_40 = arith.constant dense<0xFF800000> : vector<8xf32>
    %79 = vector.multi_reduction <maximumf>, %78, %cst_40 [1] : vector<8x8xf32> to vector<8xf32>
    %80 = vector.shape_cast %79 : vector<8xf32> to vector<8x1xf32>
    %81 = vector.broadcast %80 : vector<8x1xf32> to vector<8x8xf32>
    %82 = arith.subf %78, %81 : vector<8x8xf32>
    %83 = math.exp %82 : vector<8x8xf32>
    %cst_41 = arith.constant dense<0.000000e+00> : vector<8xf32>
    %84 = vector.multi_reduction <add>, %83, %cst_41 [1] : vector<8x8xf32> to vector<8xf32>
    %85 = vector.shape_cast %84 : vector<8xf32> to vector<8x1xf32>
    %86 = tpu.reciprocal %85 {approx = true} : vector<8x1xf32> -> vector<8x1xf32>
    %87 = vector.broadcast %86 : vector<8x1xf32> to vector<8x8xf32>
    %88 = arith.mulf %83, %87 : vector<8x8xf32>
    %89 = arith.truncf %88 : vector<8x8xf32> to vector<8x8xbf16>
    %90 = arith.truncf %69 : vector<8x8xf32> to vector<8x8xbf16>
    %cst_42 = arith.constant dense<0.000000e+00> : vector<8x8xf32>
    %91 = tpu.matmul %89, %90, %cst_42 {dimension_numbers = #tpu.dot_dimension_numbers<[1], [0], [0], [1], [0, 0, 1, 1], [], []>} : vector<8x8xbf16>, vector<8x8xbf16>, vector<8x8xf32> -> vector<8x8xf32>
    %92 = arith.truncf %91 : vector<8x8xf32> to vector<8x8xbf16>
    %93 = vector.extract_strided_slice %13 {offsets = [1, 0, 0], sizes = [1, 8, 32], strides = [1, 1, 1]} : vector<4x8x32xbf16> to vector<1x8x32xbf16>
    %94 = vector.shape_cast %93 : vector<1x8x32xbf16> to vector<8x32xbf16>
    %cst_43 = arith.constant dense<0.000000e+00> : vector<8x32xf32>
    %95 = tpu.matmul %92, %94, %cst_43 {dimension_numbers = #tpu.dot_dimension_numbers<[1], [0], [0], [1], [0, 0, 1, 1], [], []>} : vector<8x8xbf16>, vector<8x32xbf16>, vector<8x32xf32> -> vector<8x32xf32>
    %96 = arith.addf %57, %95 : vector<8x32xf32>
    %97 = vector.extract_strided_slice %1 {offsets = [2, 0, 0], sizes = [1, 8, 8], strides = [1, 1, 1]} : vector<4x8x8xf32> to vector<1x8x8xf32>
    %98 = vector.shape_cast %97 : vector<1x8x8xf32> to vector<8x8xf32>
    %99 = arith.truncf %98 : vector<8x8xf32> to vector<8x8xbf16>
    %cst_44 = arith.constant dense<0.000000e+00> : vector<8x8xf32>
    %100 = tpu.matmul %99, %7, %cst_44 {dimension_numbers = #tpu.dot_dimension_numbers<[1], [0], [0], [1], [0, 0, 1, 1], [], []>} : vector<8x8xbf16>, vector<8x8xbf16>, vector<8x8xf32> -> vector<8x8xf32>
    %101 = vector.extract_strided_slice %3 {offsets = [2, 0, 0], sizes = [1, 8, 8], strides = [1, 1, 1]} : vector<4x8x8xf32> to vector<1x8x8xf32>
    %102 = vector.shape_cast %101 : vector<1x8x8xf32> to vector<8x8xf32>
    %103 = arith.truncf %102 : vector<8x8xf32> to vector<8x8xbf16>
    %cst_45 = arith.constant dense<0.000000e+00> : vector<8x8xf32>
    %104 = tpu.matmul %103, %9, %cst_45 {dimension_numbers = #tpu.dot_dimension_numbers<[1], [0], [0], [1], [0, 0, 1, 1], [], []>} : vector<8x8xbf16>, vector<8x8xbf16>, vector<8x8xf32> -> vector<8x8xf32>
    %105 = vector.extract_strided_slice %5 {offsets = [2, 0, 0], sizes = [1, 8, 8], strides = [1, 1, 1]} : vector<4x8x8xf32> to vector<1x8x8xf32>
    %106 = vector.shape_cast %105 : vector<1x8x8xf32> to vector<8x8xf32>
    %107 = arith.truncf %106 : vector<8x8xf32> to vector<8x8xbf16>
    %cst_46 = arith.constant dense<0.000000e+00> : vector<8x8xf32>
    %108 = tpu.matmul %107, %11, %cst_46 {dimension_numbers = #tpu.dot_dimension_numbers<[1], [0], [0], [1], [0, 0, 1, 1], [], []>} : vector<8x8xbf16>, vector<8x8xbf16>, vector<8x8xf32> -> vector<8x8xf32>
    %109 = arith.truncf %100 : vector<8x8xf32> to vector<8x8xbf16>
    %110 = arith.truncf %104 : vector<8x8xf32> to vector<8x8xbf16>
    %cst_47 = arith.constant dense<0.000000e+00> : vector<8x8xf32>
    %111 = tpu.matmul %109, %110, %cst_47 {dimension_numbers = #tpu.dot_dimension_numbers<[1], [1], [0], [0], [0, 0, 1, 0], [], []>} : vector<8x8xbf16>, vector<8x8xbf16>, vector<8x8xf32> -> vector<8x8xf32>
    %cst_48 = arith.constant -1.000000e+20 : f32
    %112 = vector.shape_cast %17 : vector<1x8xi1> to vector<1x8xi1>
    %113 = vector.broadcast %112 : vector<1x8xi1> to vector<8x8xi1>
    %114 = vector.broadcast %cst_48 : f32 to vector<8x8xf32>
    %115 = arith.select %113, %111, %114 : vector<8x8xi1>, vector<8x8xf32>
    %cst_49 = arith.constant 0.176776692 : f32
    %116 = vector.broadcast %cst_49 : f32 to vector<8x8xf32>
    %117 = arith.mulf %115, %116 : vector<8x8xf32>
    %cst_50 = arith.constant dense<0xFF800000> : vector<8xf32>
    %118 = vector.multi_reduction <maximumf>, %117, %cst_50 [1] : vector<8x8xf32> to vector<8xf32>
    %119 = vector.shape_cast %118 : vector<8xf32> to vector<8x1xf32>
    %120 = vector.broadcast %119 : vector<8x1xf32> to vector<8x8xf32>
    %121 = arith.subf %117, %120 : vector<8x8xf32>
    %122 = math.exp %121 : vector<8x8xf32>
    %cst_51 = arith.constant dense<0.000000e+00> : vector<8xf32>
    %123 = vector.multi_reduction <add>, %122, %cst_51 [1] : vector<8x8xf32> to vector<8xf32>
    %124 = vector.shape_cast %123 : vector<8xf32> to vector<8x1xf32>
    %125 = tpu.reciprocal %124 {approx = true} : vector<8x1xf32> -> vector<8x1xf32>
    %126 = vector.broadcast %125 : vector<8x1xf32> to vector<8x8xf32>
    %127 = arith.mulf %122, %126 : vector<8x8xf32>
    %128 = arith.truncf %127 : vector<8x8xf32> to vector<8x8xbf16>
    %129 = arith.truncf %108 : vector<8x8xf32> to vector<8x8xbf16>
    %cst_52 = arith.constant dense<0.000000e+00> : vector<8x8xf32>
    %130 = tpu.matmul %128, %129, %cst_52 {dimension_numbers = #tpu.dot_dimension_numbers<[1], [0], [0], [1], [0, 0, 1, 1], [], []>} : vector<8x8xbf16>, vector<8x8xbf16>, vector<8x8xf32> -> vector<8x8xf32>
    %131 = arith.truncf %130 : vector<8x8xf32> to vector<8x8xbf16>
    %132 = vector.extract_strided_slice %13 {offsets = [2, 0, 0], sizes = [1, 8, 32], strides = [1, 1, 1]} : vector<4x8x32xbf16> to vector<1x8x32xbf16>
    %133 = vector.shape_cast %132 : vector<1x8x32xbf16> to vector<8x32xbf16>
    %cst_53 = arith.constant dense<0.000000e+00> : vector<8x32xf32>
    %134 = tpu.matmul %131, %133, %cst_53 {dimension_numbers = #tpu.dot_dimension_numbers<[1], [0], [0], [1], [0, 0, 1, 1], [], []>} : vector<8x8xbf16>, vector<8x32xbf16>, vector<8x32xf32> -> vector<8x32xf32>
    %135 = arith.addf %96, %134 : vector<8x32xf32>
    %136 = vector.extract_strided_slice %1 {offsets = [3, 0, 0], sizes = [1, 8, 8], strides = [1, 1, 1]} : vector<4x8x8xf32> to vector<1x8x8xf32>
    %137 = vector.shape_cast %136 : vector<1x8x8xf32> to vector<8x8xf32>
    %138 = arith.truncf %137 : vector<8x8xf32> to vector<8x8xbf16>
    %cst_54 = arith.constant dense<0.000000e+00> : vector<8x8xf32>
    %139 = tpu.matmul %138, %7, %cst_54 {dimension_numbers = #tpu.dot_dimension_numbers<[1], [0], [0], [1], [0, 0, 1, 1], [], []>} : vector<8x8xbf16>, vector<8x8xbf16>, vector<8x8xf32> -> vector<8x8xf32>
    %140 = vector.extract_strided_slice %3 {offsets = [3, 0, 0], sizes = [1, 8, 8], strides = [1, 1, 1]} : vector<4x8x8xf32> to vector<1x8x8xf32>
    %141 = vector.shape_cast %140 : vector<1x8x8xf32> to vector<8x8xf32>
    %142 = arith.truncf %141 : vector<8x8xf32> to vector<8x8xbf16>
    %cst_55 = arith.constant dense<0.000000e+00> : vector<8x8xf32>
    %143 = tpu.matmul %142, %9, %cst_55 {dimension_numbers = #tpu.dot_dimension_numbers<[1], [0], [0], [1], [0, 0, 1, 1], [], []>} : vector<8x8xbf16>, vector<8x8xbf16>, vector<8x8xf32> -> vector<8x8xf32>
    %144 = vector.extract_strided_slice %5 {offsets = [3, 0, 0], sizes = [1, 8, 8], strides = [1, 1, 1]} : vector<4x8x8xf32> to vector<1x8x8xf32>
    %145 = vector.shape_cast %144 : vector<1x8x8xf32> to vector<8x8xf32>
    %146 = arith.truncf %145 : vector<8x8xf32> to vector<8x8xbf16>
    %cst_56 = arith.constant dense<0.000000e+00> : vector<8x8xf32>
    %147 = tpu.matmul %146, %11, %cst_56 {dimension_numbers = #tpu.dot_dimension_numbers<[1], [0], [0], [1], [0, 0, 1, 1], [], []>} : vector<8x8xbf16>, vector<8x8xbf16>, vector<8x8xf32> -> vector<8x8xf32>
    %148 = arith.truncf %139 : vector<8x8xf32> to vector<8x8xbf16>
    %149 = arith.truncf %143 : vector<8x8xf32> to vector<8x8xbf16>
    %cst_57 = arith.constant dense<0.000000e+00> : vector<8x8xf32>
    %150 = tpu.matmul %148, %149, %cst_57 {dimension_numbers = #tpu.dot_dimension_numbers<[1], [1], [0], [0], [0, 0, 1, 0], [], []>} : vector<8x8xbf16>, vector<8x8xbf16>, vector<8x8xf32> -> vector<8x8xf32>
    %cst_58 = arith.constant -1.000000e+20 : f32
    %151 = vector.shape_cast %17 : vector<1x8xi1> to vector<1x8xi1>
    %152 = vector.broadcast %151 : vector<1x8xi1> to vector<8x8xi1>
    %153 = vector.broadcast %cst_58 : f32 to vector<8x8xf32>
    %154 = arith.select %152, %150, %153 : vector<8x8xi1>, vector<8x8xf32>
    %cst_59 = arith.constant 0.176776692 : f32
    %155 = vector.broadcast %cst_59 : f32 to vector<8x8xf32>
    %156 = arith.mulf %154, %155 : vector<8x8xf32>
    %cst_60 = arith.constant dense<0xFF800000> : vector<8xf32>
    %157 = vector.multi_reduction <maximumf>, %156, %cst_60 [1] : vector<8x8xf32> to vector<8xf32>
    %158 = vector.shape_cast %157 : vector<8xf32> to vector<8x1xf32>
    %159 = vector.broadcast %158 : vector<8x1xf32> to vector<8x8xf32>
    %160 = arith.subf %156, %159 : vector<8x8xf32>
    %161 = math.exp %160 : vector<8x8xf32>
    %cst_61 = arith.constant dense<0.000000e+00> : vector<8xf32>
    %162 = vector.multi_reduction <add>, %161, %cst_61 [1] : vector<8x8xf32> to vector<8xf32>
    %163 = vector.shape_cast %162 : vector<8xf32> to vector<8x1xf32>
    %164 = tpu.reciprocal %163 {approx = true} : vector<8x1xf32> -> vector<8x1xf32>
    %165 = vector.broadcast %164 : vector<8x1xf32> to vector<8x8xf32>
    %166 = arith.mulf %161, %165 : vector<8x8xf32>
    %167 = arith.truncf %166 : vector<8x8xf32> to vector<8x8xbf16>
    %168 = arith.truncf %147 : vector<8x8xf32> to vector<8x8xbf16>
    %cst_62 = arith.constant dense<0.000000e+00> : vector<8x8xf32>
    %169 = tpu.matmul %167, %168, %cst_62 {dimension_numbers = #tpu.dot_dimension_numbers<[1], [0], [0], [1], [0, 0, 1, 1], [], []>} : vector<8x8xbf16>, vector<8x8xbf16>, vector<8x8xf32> -> vector<8x8xf32>
    %170 = arith.truncf %169 : vector<8x8xf32> to vector<8x8xbf16>
    %171 = vector.extract_strided_slice %13 {offsets = [3, 0, 0], sizes = [1, 8, 32], strides = [1, 1, 1]} : vector<4x8x32xbf16> to vector<1x8x32xbf16>
    %172 = vector.shape_cast %171 : vector<1x8x32xbf16> to vector<8x32xbf16>
    %cst_63 = arith.constant dense<0.000000e+00> : vector<8x32xf32>
    %173 = tpu.matmul %170, %172, %cst_63 {dimension_numbers = #tpu.dot_dimension_numbers<[1], [0], [0], [1], [0, 0, 1, 1], [], []>} : vector<8x8xbf16>, vector<8x32xbf16>, vector<8x32xf32> -> vector<8x32xf32>
    %174 = arith.addf %135, %173 : vector<8x32xf32>
    %c0_64 = arith.constant 0 : index
    %c0_65 = arith.constant 0 : index
    %175 = vector.load %arg9[%c0_64, %c0_65] : memref<1x32xf32, #tpu.memory_space<vmem>>, vector<1x32xf32>
    %176 = vector.broadcast %175 : vector<1x32xf32> to vector<8x32xf32>
    %177 = arith.addf %174, %176 : vector<8x32xf32>
    %c0_66 = arith.constant 0 : index
    %c0_67 = arith.constant 0 : index
    %c0_68 = arith.constant 0 : index
    %178 = vector.load %arg10[%c0_66, %c0_67, %c0_68] : memref<1x8x32xf32, #tpu.memory_space<vmem>>, vector<1x8x32xf32>
    %179 = vector.shape_cast %178 : vector<1x8x32xf32> to vector<8x32xf32>
    %180 = vector.shape_cast %177 : vector<8x32xf32> to vector<1x8x32xf32>
    tpu.vector_store %arg10[%c0_66, %c0_67, %c0_68], %180 {strides = array<i32>} : memref<1x8x32xf32, #tpu.memory_space<vmem>>, vector<1x8x32xf32>,
    return
  }
  func.func @transform_0(%arg0: i32) -> (i32, i32, i32, i32) {
    %c0_i32 = arith.constant 0 : i32
    %c0_i32_0 = arith.constant 0 : i32
    %c0_i32_1 = arith.constant 0 : i32
    %c0_i32_2 = arith.constant 0 : i32
    return %arg0, %c0_i32, %c0_i32_0, %c0_i32_1 : i32, i32, i32, i32
  }
  func.func @transform_1(%arg0: i32) -> (i32, i32, i32, i32) {
    %c0_i32 = arith.constant 0 : i32
    %c0_i32_0 = arith.constant 0 : i32
    %c0_i32_1 = arith.constant 0 : i32
    %c0_i32_2 = arith.constant 0 : i32
    return %arg0, %c0_i32, %c0_i32_0, %c0_i32_1 : i32, i32, i32, i32
  }
  func.func @transform_2(%arg0: i32) -> (i32, i32, i32, i32) {
    %c0_i32 = arith.constant 0 : i32
    %c0_i32_0 = arith.constant 0 : i32
    %c0_i32_1 = arith.constant 0 : i32
    %c0_i32_2 = arith.constant 0 : i32
    return %arg0, %c0_i32, %c0_i32_0, %c0_i32_1 : i32, i32, i32, i32
  }
  func.func @transform_3(%arg0: i32) -> (i32, i32, i32) {
    %c0_i32 = arith.constant 0 : i32
    %c0_i32_0 = arith.constant 0 : i32
    %c0_i32_1 = arith.constant 0 : i32
    return %arg0, %c0_i32, %c0_i32_0 : i32, i32, i32
  }
  func.func @transform_4(%arg0: i32) -> (i32, i32) {
    %c0_i32 = arith.constant 0 : i32
    %c0_i32_0 = arith.constant 0 : i32
    %c0_i32_1 = arith.constant 0 : i32
    return %c0_i32, %c0_i32_0 : i32, i32
  }
  func.func @transform_5(%arg0: i32) -> (i32, i32) {
    %c0_i32 = arith.constant 0 : i32
    %c0_i32_0 = arith.constant 0 : i32
    %c0_i32_1 = arith.constant 0 : i32
    return %c0_i32, %c0_i32_0 : i32, i32
  }
  func.func @transform_6(%arg0: i32) -> (i32, i32) {
    %c0_i32 = arith.constant 0 : i32
    %c0_i32_0 = arith.constant 0 : i32
    %c0_i32_1 = arith.constant 0 : i32
    return %c0_i32, %c0_i32_0 : i32, i32
  }
  func.func @transform_7(%arg0: i32) -> (i32, i32, i32) {
    %c0_i32 = arith.constant 0 : i32
    %c0_i32_0 = arith.constant 0 : i32
    %c0_i32_1 = arith.constant 0 : i32
    %c0_i32_2 = arith.constant 0 : i32
    return %c0_i32, %c0_i32_0, %c0_i32_1 : i32, i32, i32
  }
  func.func @transform_8(%arg0: i32) -> (i32, i32) {
    %c0_i32 = arith.constant 0 : i32
    %c0_i32_0 = arith.constant 0 : i32
    %c0_i32_1 = arith.constant 0 : i32
    return %c0_i32, %c0_i32_0 : i32, i32
  }
  func.func @transform_9(%arg0: i32) -> (i32, i32, i32) {
    %c0_i32 = arith.constant 0 : i32
    %c0_i32_0 = arith.constant 0 : i32
    %c0_i32_1 = arith.constant 0 : i32
    return %arg0, %c0_i32, %c0_i32_0 : i32, i32, i32
  }
}

module attributes {stable_mosaic.version = 11 : i64} {
  func.func @_attention_kernel(%arg0: i32, %arg1: memref<1x4x8x8xf32, #tpu.memory_space<vmem>>, %arg2: memref<1x4x8x8xf32, #tpu.memory_space<vmem>>, %arg3: memref<1x4x8x8xf32, #tpu.memory_space<vmem>>, %arg4: memref<1x1x8xf32, #tpu.memory_space<vmem>>, %arg5: memref<8x8xf32, #tpu.memory_space<vmem>>, %arg6: memref<8x8xf32, #tpu.memory_space<vmem>>, %arg7: memref<8x8xf32, #tpu.memory_space<vmem>>, %arg8: memref<4x8x32xf32, #tpu.memory_space<vmem>>, %arg9: memref<1x32xf32, #tpu.memory_space<vmem>>, %arg10: memref<1x8x32xf32, #tpu.memory_space<vmem>>) attributes {dimension_semantics = [#tpu.dimension_semantics<parallel>], iteration_bounds = array<i64: 2>, scalar_prefetch = 0 : i64, scratch_operands = 0 : i64, tpu.core_type = #tpu.core_type<tc>, window_params = [{transform_indices = @transform_0, window_bounds = array<i64: 1, 4, 8, 8>}, {transform_indices = @transform_1, window_bounds = array<i64: 1, 4, 8, 8>}, {transform_indices = @transform_2, window_bounds = array<i64: 1, 4, 8, 8>}, {transform_indices = @transform_3, window_bounds = array<i64: 1, 1, 8>}, {pipeline_mode = #tpu.pipeline_mode<synchronous>, transform_indices = @transform_4, window_bounds = array<i64: 8, 8>}, {pipeline_mode = #tpu.pipeline_mode<synchronous>, transform_indices = @transform_5, window_bounds = array<i64: 8, 8>}, {pipeline_mode = #tpu.pipeline_mode<synchronous>, transform_indices = @transform_6, window_bounds = array<i64: 8, 8>}, {pipeline_mode = #tpu.pipeline_mode<synchronous>, transform_indices = @transform_7, window_bounds = array<i64: 4, 8, 32>}, {pipeline_mode = #tpu.pipeline_mode<synchronous>, transform_indices = @transform_8, window_bounds = array<i64: 1, 32>}, {transform_indices = @transform_9, window_bounds = array<i64: 1, 8, 32>}]} {
    %c0 = arith.constant 0 : index
    %c0_0 = arith.constant 0 : index
    %c0_1 = arith.constant 0 : index
    %c0_2 = arith.constant 0 : index
    %0 = vector.load %arg1[%c0, %c0_0, %c0_1, %c0_2] : memref<1x4x8x8xf32, #tpu.memory_space<vmem>>, vector<1x4x8x8xf32>
    %1 = vector.shape_cast %0 : vector<1x4x8x8xf32> to vector<4x8x8xf32>
    %c0_3 = arith.constant 0 : index
    %c0_4 = arith.constant 0 : index
    %c0_5 = arith.constant 0 : index
    %c0_6 = arith.constant 0 : index
    %2 = vector.load %arg2[%c0_3, %c0_4, %c0_5, %c0_6] : memref<1x4x8x8xf32, #tpu.memory_space<vmem>>, vector<1x4x8x8xf32>
    %3 = vector.shape_cast %2 : vector<1x4x8x8xf32> to vector<4x8x8xf32>
    %c0_7 = arith.constant 0 : index
    %c0_8 = arith.constant 0 : index
    %c0_9 = arith.constant 0 : index
    %c0_10 = arith.constant 0 : index
    %4 = vector.load %arg3[%c0_7, %c0_8, %c0_9, %c0_10] : memref<1x4x8x8xf32, #tpu.memory_space<vmem>>, vector<1x4x8x8xf32>
    %5 = vector.shape_cast %4 : vector<1x4x8x8xf32> to vector<4x8x8xf32>
    %c0_11 = arith.constant 0 : index
    %c0_12 = arith.constant 0 : index
    %6 = vector.load %arg5[%c0_11, %c0_12] : memref<8x8xf32, #tpu.memory_space<vmem>>, vector<8x8xf32>
    %7 = arith.truncf %6 : vector<8x8xf32> to vector<8x8xbf16>
    %c0_13 = arith.constant 0 : index
    %c0_14 = arith.constant 0 : index
    %8 = vector.load %arg6[%c0_13, %c0_14] : memref<8x8xf32, #tpu.memory_space<vmem>>, vector<8x8xf32>
    %9 = arith.truncf %8 : vector<8x8xf32> to vector<8x8xbf16>
    %c0_15 = arith.constant 0 : index
    %c0_16 = arith.constant 0 : index
    %10 = vector.load %arg7[%c0_15, %c0_16] : memref<8x8xf32, #tpu.memory_space<vmem>>, vector<8x8xf32>
    %11 = arith.truncf %10 : vector<8x8xf32> to vector<8x8xbf16>
    %c0_17 = arith.constant 0 : index
    %c0_18 = arith.constant 0 : index
    %c0_19 = arith.constant 0 : index
    %12 = vector.load %arg8[%c0_17, %c0_18, %c0_19] : memref<4x8x32xf32, #tpu.memory_space<vmem>>, vector<4x8x32xf32>
    %13 = arith.truncf %12 : vector<4x8x32xf32> to vector<4x8x32xbf16>
    %c0_20 = arith.constant 0 : index
    %c0_21 = arith.constant 0 : index
    %c0_22 = arith.constant 0 : index
    %14 = vector.load %arg4[%c0_20, %c0_21, %c0_22] : memref<1x1x8xf32, #tpu.memory_space<vmem>>, vector<1x1x8xf32>
    %15 = vector.shape_cast %14 : vector<1x1x8xf32> to vector<1x8xf32>
    %cst = arith.constant 0.000000e+00 : f32
    %16 = vector.broadcast %cst : f32 to vector<1x8xf32>
    %17 = arith.cmpf one, %15, %16 : vector<1x8xf32>
    %18 = tpu.iota {dimensions = array<i32: 0>} : vector<8x8xi32>
    %19 = tpu.iota {dimensions = array<i32: 1>} : vector<8x8xi32>
    %20 = arith.cmpi sle, %19, %18 : vector<8x8xi32>
    %21 = vector.broadcast %17 : vector<1x8xi1> to vector<8x8xi1>
    %22 = arith.andi %21, %20 : vector<8x8xi1>
    %cst_23 = arith.constant 0.000000e+00 : f32
    %23 = vector.broadcast %cst_23 : f32 to vector<8x32xf32>
    %24 = vector.extract_strided_slice %1 {offsets = [0, 0, 0], sizes = [1, 8, 8], strides = [1, 1, 1]} : vector<4x8x8xf32> to vector<1x8x8xf32>
    %25 = vector.shape_cast %24 : vector<1x8x8xf32> to vector<8x8xf32>
    %26 = arith.truncf %25 : vector<8x8xf32> to vector<8x8xbf16>
    %cst_24 = arith.constant dense<0.000000e+00> : vector<8x8xf32>
    %27 = tpu.matmul %26, %7, %cst_24 {dimension_numbers = #tpu.dot_dimension_numbers<[1], [0], [0], [1], [0, 0, 1, 1], [], []>} : vector<8x8xbf16>, vector<8x8xbf16>, vector<8x8xf32> -> vector<8x8xf32>
    %28 = vector.extract_strided_slice %3 {offsets = [0, 0, 0], sizes = [1, 8, 8], strides = [1, 1, 1]} : vector<4x8x8xf32> to vector<1x8x8xf32>
    %29 = vector.shape_cast %28 : vector<1x8x8xf32> to vector<8x8xf32>
    %30 = arith.truncf %29 : vector<8x8xf32> to vector<8x8xbf16>
    %cst_25 = arith.constant dense<0.000000e+00> : vector<8x8xf32>
    %31 = tpu.matmul %30, %9, %cst_25 {dimension_numbers = #tpu.dot_dimension_numbers<[1], [0], [0], [1], [0, 0, 1, 1], [], []>} : vector<8x8xbf16>, vector<8x8xbf16>, vector<8x8xf32> -> vector<8x8xf32>
    %32 = vector.extract_strided_slice %5 {offsets = [0, 0, 0], sizes = [1, 8, 8], strides = [1, 1, 1]} : vector<4x8x8xf32> to vector<1x8x8xf32>
    %33 = vector.shape_cast %32 : vector<1x8x8xf32> to vector<8x8xf32>
    %34 = arith.truncf %33 : vector<8x8xf32> to vector<8x8xbf16>
    %cst_26 = arith.constant dense<0.000000e+00> : vector<8x8xf32>
    %35 = tpu.matmul %34, %11, %cst_26 {dimension_numbers = #tpu.dot_dimension_numbers<[1], [0], [0], [1], [0, 0, 1, 1], [], []>} : vector<8x8xbf16>, vector<8x8xbf16>, vector<8x8xf32> -> vector<8x8xf32>
    %36 = arith.truncf %27 : vector<8x8xf32> to vector<8x8xbf16>
    %37 = arith.truncf %31 : vector<8x8xf32> to vector<8x8xbf16>
    %cst_27 = arith.constant dense<0.000000e+00> : vector<8x8xf32>
    %38 = tpu.matmul %36, %37, %cst_27 {dimension_numbers = #tpu.dot_dimension_numbers<[1], [1], [0], [0], [0, 0, 1, 0], [], []>} : vector<8x8xbf16>, vector<8x8xbf16>, vector<8x8xf32> -> vector<8x8xf32>
    %cst_28 = arith.constant -1.000000e+20 : f32
    %39 = vector.broadcast %cst_28 : f32 to vector<8x8xf32>
    %40 = arith.select %22, %38, %39 : vector<8x8xi1>, vector<8x8xf32>
    %cst_29 = arith.constant 0.176776692 : f32
    %41 = vector.broadcast %cst_29 : f32 to vector<8x8xf32>
    %42 = arith.mulf %40, %41 : vector<8x8xf32>
    %cst_30 = arith.constant dense<0xFF800000> : vector<8xf32>
    %43 = vector.multi_reduction <maximumf>, %42, %cst_30 [1] : vector<8x8xf32> to vector<8xf32>
    %44 = vector.shape_cast %43 : vector<8xf32> to vector<8x1xf32>
    %45 = vector.broadcast %44 : vector<8x1xf32> to vector<8x8xf32>
    %46 = arith.subf %42, %45 : vector<8x8xf32>
    %47 = math.exp %46 : vector<8x8xf32>
    %cst_31 = arith.constant dense<0.000000e+00> : vector<8xf32>
    %48 = vector.multi_reduction <add>, %47, %cst_31 [1] : vector<8x8xf32> to vector<8xf32>
    %49 = vector.shape_cast %48 : vector<8xf32> to vector<8x1xf32>
    %50 = tpu.reciprocal %49 {approx = true} : vector<8x1xf32> -> vector<8x1xf32>
    %51 = vector.broadcast %50 : vector<8x1xf32> to vector<8x8xf32>
    %52 = arith.mulf %47, %51 : vector<8x8xf32>
    %53 = arith.truncf %52 : vector<8x8xf32> to vector<8x8xbf16>
    %54 = arith.truncf %35 : vector<8x8xf32> to vector<8x8xbf16>
    %cst_32 = arith.constant dense<0.000000e+00> : vector<8x8xf32>
    %55 = tpu.matmul %53, %54, %cst_32 {dimension_numbers = #tpu.dot_dimension_numbers<[1], [0], [0], [1], [0, 0, 1, 1], [], []>} : vector<8x8xbf16>, vector<8x8xbf16>, vector<8x8xf32> -> vector<8x8xf32>
    %56 = arith.truncf %55 : vector<8x8xf32> to vector<8x8xbf16>
    %57 = vector.extract_strided_slice %13 {offsets = [0, 0, 0], sizes = [1, 8, 32], strides = [1, 1, 1]} : vector<4x8x32xbf16> to vector<1x8x32xbf16>
    %58 = vector.shape_cast %57 : vector<1x8x32xbf16> to vector<8x32xbf16>
    %cst_33 = arith.constant dense<0.000000e+00> : vector<8x32xf32>
    %59 = tpu.matmul %56, %58, %cst_33 {dimension_numbers = #tpu.dot_dimension_numbers<[1], [0], [0], [1], [0, 0, 1, 1], [], []>} : vector<8x8xbf16>, vector<8x32xbf16>, vector<8x32xf32> -> vector<8x32xf32>
    %60 = arith.addf %23, %59 : vector<8x32xf32>
    %61 = vector.extract_strided_slice %1 {offsets = [1, 0, 0], sizes = [1, 8, 8], strides = [1, 1, 1]} : vector<4x8x8xf32> to vector<1x8x8xf32>
    %62 = vector.shape_cast %61 : vector<1x8x8xf32> to vector<8x8xf32>
    %63 = arith.truncf %62 : vector<8x8xf32> to vector<8x8xbf16>
    %cst_34 = arith.constant dense<0.000000e+00> : vector<8x8xf32>
    %64 = tpu.matmul %63, %7, %cst_34 {dimension_numbers = #tpu.dot_dimension_numbers<[1], [0], [0], [1], [0, 0, 1, 1], [], []>} : vector<8x8xbf16>, vector<8x8xbf16>, vector<8x8xf32> -> vector<8x8xf32>
    %65 = vector.extract_strided_slice %3 {offsets = [1, 0, 0], sizes = [1, 8, 8], strides = [1, 1, 1]} : vector<4x8x8xf32> to vector<1x8x8xf32>
    %66 = vector.shape_cast %65 : vector<1x8x8xf32> to vector<8x8xf32>
    %67 = arith.truncf %66 : vector<8x8xf32> to vector<8x8xbf16>
    %cst_35 = arith.constant dense<0.000000e+00> : vector<8x8xf32>
    %68 = tpu.matmul %67, %9, %cst_35 {dimension_numbers = #tpu.dot_dimension_numbers<[1], [0], [0], [1], [0, 0, 1, 1], [], []>} : vector<8x8xbf16>, vector<8x8xbf16>, vector<8x8xf32> -> vector<8x8xf32>
    %69 = vector.extract_strided_slice %5 {offsets = [1, 0, 0], sizes = [1, 8, 8], strides = [1, 1, 1]} : vector<4x8x8xf32> to vector<1x8x8xf32>
    %70 = vector.shape_cast %69 : vector<1x8x8xf32> to vector<8x8xf32>
    %71 = arith.truncf %70 : vector<8x8xf32> to vector<8x8xbf16>
    %cst_36 = arith.constant dense<0.000000e+00> : vector<8x8xf32>
    %72 = tpu.matmul %71, %11, %cst_36 {dimension_numbers = #tpu.dot_dimension_numbers<[1], [0], [0], [1], [0, 0, 1, 1], [], []>} : vector<8x8xbf16>, vector<8x8xbf16>, vector<8x8xf32> -> vector<8x8xf32>
    %73 = arith.truncf %64 : vector<8x8xf32> to vector<8x8xbf16>
    %74 = arith.truncf %68 : vector<8x8xf32> to vector<8x8xbf16>
    %cst_37 = arith.constant dense<0.000000e+00> : vector<8x8xf32>
    %75 = tpu.matmul %73, %74, %cst_37 {dimension_numbers = #tpu.dot_dimension_numbers<[1], [1], [0], [0], [0, 0, 1, 0], [], []>} : vector<8x8xbf16>, vector<8x8xbf16>, vector<8x8xf32> -> vector<8x8xf32>
    %cst_38 = arith.constant -1.000000e+20 : f32
    %76 = vector.broadcast %cst_38 : f32 to vector<8x8xf32>
    %77 = arith.select %22, %75, %76 : vector<8x8xi1>, vector<8x8xf32>
    %cst_39 = arith.constant 0.176776692 : f32
    %78 = vector.broadcast %cst_39 : f32 to vector<8x8xf32>
    %79 = arith.mulf %77, %78 : vector<8x8xf32>
    %cst_40 = arith.constant dense<0xFF800000> : vector<8xf32>
    %80 = vector.multi_reduction <maximumf>, %79, %cst_40 [1] : vector<8x8xf32> to vector<8xf32>
    %81 = vector.shape_cast %80 : vector<8xf32> to vector<8x1xf32>
    %82 = vector.broadcast %81 : vector<8x1xf32> to vector<8x8xf32>
    %83 = arith.subf %79, %82 : vector<8x8xf32>
    %84 = math.exp %83 : vector<8x8xf32>
    %cst_41 = arith.constant dense<0.000000e+00> : vector<8xf32>
    %85 = vector.multi_reduction <add>, %84, %cst_41 [1] : vector<8x8xf32> to vector<8xf32>
    %86 = vector.shape_cast %85 : vector<8xf32> to vector<8x1xf32>
    %87 = tpu.reciprocal %86 {approx = true} : vector<8x1xf32> -> vector<8x1xf32>
    %88 = vector.broadcast %87 : vector<8x1xf32> to vector<8x8xf32>
    %89 = arith.mulf %84, %88 : vector<8x8xf32>
    %90 = arith.truncf %89 : vector<8x8xf32> to vector<8x8xbf16>
    %91 = arith.truncf %72 : vector<8x8xf32> to vector<8x8xbf16>
    %cst_42 = arith.constant dense<0.000000e+00> : vector<8x8xf32>
    %92 = tpu.matmul %90, %91, %cst_42 {dimension_numbers = #tpu.dot_dimension_numbers<[1], [0], [0], [1], [0, 0, 1, 1], [], []>} : vector<8x8xbf16>, vector<8x8xbf16>, vector<8x8xf32> -> vector<8x8xf32>
    %93 = arith.truncf %92 : vector<8x8xf32> to vector<8x8xbf16>
    %94 = vector.extract_strided_slice %13 {offsets = [1, 0, 0], sizes = [1, 8, 32], strides = [1, 1, 1]} : vector<4x8x32xbf16> to vector<1x8x32xbf16>
    %95 = vector.shape_cast %94 : vector<1x8x32xbf16> to vector<8x32xbf16>
    %cst_43 = arith.constant dense<0.000000e+00> : vector<8x32xf32>
    %96 = tpu.matmul %93, %95, %cst_43 {dimension_numbers = #tpu.dot_dimension_numbers<[1], [0], [0], [1], [0, 0, 1, 1], [], []>} : vector<8x8xbf16>, vector<8x32xbf16>, vector<8x32xf32> -> vector<8x32xf32>
    %97 = arith.addf %60, %96 : vector<8x32xf32>
    %98 = vector.extract_strided_slice %1 {offsets = [2, 0, 0], sizes = [1, 8, 8], strides = [1, 1, 1]} : vector<4x8x8xf32> to vector<1x8x8xf32>
    %99 = vector.shape_cast %98 : vector<1x8x8xf32> to vector<8x8xf32>
    %100 = arith.truncf %99 : vector<8x8xf32> to vector<8x8xbf16>
    %cst_44 = arith.constant dense<0.000000e+00> : vector<8x8xf32>
    %101 = tpu.matmul %100, %7, %cst_44 {dimension_numbers = #tpu.dot_dimension_numbers<[1], [0], [0], [1], [0, 0, 1, 1], [], []>} : vector<8x8xbf16>, vector<8x8xbf16>, vector<8x8xf32> -> vector<8x8xf32>
    %102 = vector.extract_strided_slice %3 {offsets = [2, 0, 0], sizes = [1, 8, 8], strides = [1, 1, 1]} : vector<4x8x8xf32> to vector<1x8x8xf32>
    %103 = vector.shape_cast %102 : vector<1x8x8xf32> to vector<8x8xf32>
    %104 = arith.truncf %103 : vector<8x8xf32> to vector<8x8xbf16>
    %cst_45 = arith.constant dense<0.000000e+00> : vector<8x8xf32>
    %105 = tpu.matmul %104, %9, %cst_45 {dimension_numbers = #tpu.dot_dimension_numbers<[1], [0], [0], [1], [0, 0, 1, 1], [], []>} : vector<8x8xbf16>, vector<8x8xbf16>, vector<8x8xf32> -> vector<8x8xf32>
    %106 = vector.extract_strided_slice %5 {offsets = [2, 0, 0], sizes = [1, 8, 8], strides = [1, 1, 1]} : vector<4x8x8xf32> to vector<1x8x8xf32>
    %107 = vector.shape_cast %106 : vector<1x8x8xf32> to vector<8x8xf32>
    %108 = arith.truncf %107 : vector<8x8xf32> to vector<8x8xbf16>
    %cst_46 = arith.constant dense<0.000000e+00> : vector<8x8xf32>
    %109 = tpu.matmul %108, %11, %cst_46 {dimension_numbers = #tpu.dot_dimension_numbers<[1], [0], [0], [1], [0, 0, 1, 1], [], []>} : vector<8x8xbf16>, vector<8x8xbf16>, vector<8x8xf32> -> vector<8x8xf32>
    %110 = arith.truncf %101 : vector<8x8xf32> to vector<8x8xbf16>
    %111 = arith.truncf %105 : vector<8x8xf32> to vector<8x8xbf16>
    %cst_47 = arith.constant dense<0.000000e+00> : vector<8x8xf32>
    %112 = tpu.matmul %110, %111, %cst_47 {dimension_numbers = #tpu.dot_dimension_numbers<[1], [1], [0], [0], [0, 0, 1, 0], [], []>} : vector<8x8xbf16>, vector<8x8xbf16>, vector<8x8xf32> -> vector<8x8xf32>
    %cst_48 = arith.constant -1.000000e+20 : f32
    %113 = vector.broadcast %cst_48 : f32 to vector<8x8xf32>
    %114 = arith.select %22, %112, %113 : vector<8x8xi1>, vector<8x8xf32>
    %cst_49 = arith.constant 0.176776692 : f32
    %115 = vector.broadcast %cst_49 : f32 to vector<8x8xf32>
    %116 = arith.mulf %114, %115 : vector<8x8xf32>
    %cst_50 = arith.constant dense<0xFF800000> : vector<8xf32>
    %117 = vector.multi_reduction <maximumf>, %116, %cst_50 [1] : vector<8x8xf32> to vector<8xf32>
    %118 = vector.shape_cast %117 : vector<8xf32> to vector<8x1xf32>
    %119 = vector.broadcast %118 : vector<8x1xf32> to vector<8x8xf32>
    %120 = arith.subf %116, %119 : vector<8x8xf32>
    %121 = math.exp %120 : vector<8x8xf32>
    %cst_51 = arith.constant dense<0.000000e+00> : vector<8xf32>
    %122 = vector.multi_reduction <add>, %121, %cst_51 [1] : vector<8x8xf32> to vector<8xf32>
    %123 = vector.shape_cast %122 : vector<8xf32> to vector<8x1xf32>
    %124 = tpu.reciprocal %123 {approx = true} : vector<8x1xf32> -> vector<8x1xf32>
    %125 = vector.broadcast %124 : vector<8x1xf32> to vector<8x8xf32>
    %126 = arith.mulf %121, %125 : vector<8x8xf32>
    %127 = arith.truncf %126 : vector<8x8xf32> to vector<8x8xbf16>
    %128 = arith.truncf %109 : vector<8x8xf32> to vector<8x8xbf16>
    %cst_52 = arith.constant dense<0.000000e+00> : vector<8x8xf32>
    %129 = tpu.matmul %127, %128, %cst_52 {dimension_numbers = #tpu.dot_dimension_numbers<[1], [0], [0], [1], [0, 0, 1, 1], [], []>} : vector<8x8xbf16>, vector<8x8xbf16>, vector<8x8xf32> -> vector<8x8xf32>
    %130 = arith.truncf %129 : vector<8x8xf32> to vector<8x8xbf16>
    %131 = vector.extract_strided_slice %13 {offsets = [2, 0, 0], sizes = [1, 8, 32], strides = [1, 1, 1]} : vector<4x8x32xbf16> to vector<1x8x32xbf16>
    %132 = vector.shape_cast %131 : vector<1x8x32xbf16> to vector<8x32xbf16>
    %cst_53 = arith.constant dense<0.000000e+00> : vector<8x32xf32>
    %133 = tpu.matmul %130, %132, %cst_53 {dimension_numbers = #tpu.dot_dimension_numbers<[1], [0], [0], [1], [0, 0, 1, 1], [], []>} : vector<8x8xbf16>, vector<8x32xbf16>, vector<8x32xf32> -> vector<8x32xf32>
    %134 = arith.addf %97, %133 : vector<8x32xf32>
    %135 = vector.extract_strided_slice %1 {offsets = [3, 0, 0], sizes = [1, 8, 8], strides = [1, 1, 1]} : vector<4x8x8xf32> to vector<1x8x8xf32>
    %136 = vector.shape_cast %135 : vector<1x8x8xf32> to vector<8x8xf32>
    %137 = arith.truncf %136 : vector<8x8xf32> to vector<8x8xbf16>
    %cst_54 = arith.constant dense<0.000000e+00> : vector<8x8xf32>
    %138 = tpu.matmul %137, %7, %cst_54 {dimension_numbers = #tpu.dot_dimension_numbers<[1], [0], [0], [1], [0, 0, 1, 1], [], []>} : vector<8x8xbf16>, vector<8x8xbf16>, vector<8x8xf32> -> vector<8x8xf32>
    %139 = vector.extract_strided_slice %3 {offsets = [3, 0, 0], sizes = [1, 8, 8], strides = [1, 1, 1]} : vector<4x8x8xf32> to vector<1x8x8xf32>
    %140 = vector.shape_cast %139 : vector<1x8x8xf32> to vector<8x8xf32>
    %141 = arith.truncf %140 : vector<8x8xf32> to vector<8x8xbf16>
    %cst_55 = arith.constant dense<0.000000e+00> : vector<8x8xf32>
    %142 = tpu.matmul %141, %9, %cst_55 {dimension_numbers = #tpu.dot_dimension_numbers<[1], [0], [0], [1], [0, 0, 1, 1], [], []>} : vector<8x8xbf16>, vector<8x8xbf16>, vector<8x8xf32> -> vector<8x8xf32>
    %143 = vector.extract_strided_slice %5 {offsets = [3, 0, 0], sizes = [1, 8, 8], strides = [1, 1, 1]} : vector<4x8x8xf32> to vector<1x8x8xf32>
    %144 = vector.shape_cast %143 : vector<1x8x8xf32> to vector<8x8xf32>
    %145 = arith.truncf %144 : vector<8x8xf32> to vector<8x8xbf16>
    %cst_56 = arith.constant dense<0.000000e+00> : vector<8x8xf32>
    %146 = tpu.matmul %145, %11, %cst_56 {dimension_numbers = #tpu.dot_dimension_numbers<[1], [0], [0], [1], [0, 0, 1, 1], [], []>} : vector<8x8xbf16>, vector<8x8xbf16>, vector<8x8xf32> -> vector<8x8xf32>
    %147 = arith.truncf %138 : vector<8x8xf32> to vector<8x8xbf16>
    %148 = arith.truncf %142 : vector<8x8xf32> to vector<8x8xbf16>
    %cst_57 = arith.constant dense<0.000000e+00> : vector<8x8xf32>
    %149 = tpu.matmul %147, %148, %cst_57 {dimension_numbers = #tpu.dot_dimension_numbers<[1], [1], [0], [0], [0, 0, 1, 0], [], []>} : vector<8x8xbf16>, vector<8x8xbf16>, vector<8x8xf32> -> vector<8x8xf32>
    %cst_58 = arith.constant -1.000000e+20 : f32
    %150 = vector.broadcast %cst_58 : f32 to vector<8x8xf32>
    %151 = arith.select %22, %149, %150 : vector<8x8xi1>, vector<8x8xf32>
    %cst_59 = arith.constant 0.176776692 : f32
    %152 = vector.broadcast %cst_59 : f32 to vector<8x8xf32>
    %153 = arith.mulf %151, %152 : vector<8x8xf32>
    %cst_60 = arith.constant dense<0xFF800000> : vector<8xf32>
    %154 = vector.multi_reduction <maximumf>, %153, %cst_60 [1] : vector<8x8xf32> to vector<8xf32>
    %155 = vector.shape_cast %154 : vector<8xf32> to vector<8x1xf32>
    %156 = vector.broadcast %155 : vector<8x1xf32> to vector<8x8xf32>
    %157 = arith.subf %153, %156 : vector<8x8xf32>
    %158 = math.exp %157 : vector<8x8xf32>
    %cst_61 = arith.constant dense<0.000000e+00> : vector<8xf32>
    %159 = vector.multi_reduction <add>, %158, %cst_61 [1] : vector<8x8xf32> to vector<8xf32>
    %160 = vector.shape_cast %159 : vector<8xf32> to vector<8x1xf32>
    %161 = tpu.reciprocal %160 {approx = true} : vector<8x1xf32> -> vector<8x1xf32>
    %162 = vector.broadcast %161 : vector<8x1xf32> to vector<8x8xf32>
    %163 = arith.mulf %158, %162 : vector<8x8xf32>
    %164 = arith.truncf %163 : vector<8x8xf32> to vector<8x8xbf16>
    %165 = arith.truncf %146 : vector<8x8xf32> to vector<8x8xbf16>
    %cst_62 = arith.constant dense<0.000000e+00> : vector<8x8xf32>
    %166 = tpu.matmul %164, %165, %cst_62 {dimension_numbers = #tpu.dot_dimension_numbers<[1], [0], [0], [1], [0, 0, 1, 1], [], []>} : vector<8x8xbf16>, vector<8x8xbf16>, vector<8x8xf32> -> vector<8x8xf32>
    %167 = arith.truncf %166 : vector<8x8xf32> to vector<8x8xbf16>
    %168 = vector.extract_strided_slice %13 {offsets = [3, 0, 0], sizes = [1, 8, 32], strides = [1, 1, 1]} : vector<4x8x32xbf16> to vector<1x8x32xbf16>
    %169 = vector.shape_cast %168 : vector<1x8x32xbf16> to vector<8x32xbf16>
    %cst_63 = arith.constant dense<0.000000e+00> : vector<8x32xf32>
    %170 = tpu.matmul %167, %169, %cst_63 {dimension_numbers = #tpu.dot_dimension_numbers<[1], [0], [0], [1], [0, 0, 1, 1], [], []>} : vector<8x8xbf16>, vector<8x32xbf16>, vector<8x32xf32> -> vector<8x32xf32>
    %171 = arith.addf %134, %170 : vector<8x32xf32>
    %c0_64 = arith.constant 0 : index
    %c0_65 = arith.constant 0 : index
    %172 = vector.load %arg9[%c0_64, %c0_65] : memref<1x32xf32, #tpu.memory_space<vmem>>, vector<1x32xf32>
    %173 = vector.broadcast %172 : vector<1x32xf32> to vector<8x32xf32>
    %174 = arith.addf %171, %173 : vector<8x32xf32>
    %c0_66 = arith.constant 0 : index
    %c0_67 = arith.constant 0 : index
    %c0_68 = arith.constant 0 : index
    %175 = vector.load %arg10[%c0_66, %c0_67, %c0_68] : memref<1x8x32xf32, #tpu.memory_space<vmem>>, vector<1x8x32xf32>
    %176 = vector.shape_cast %175 : vector<1x8x32xf32> to vector<8x32xf32>
    %177 = vector.shape_cast %174 : vector<8x32xf32> to vector<1x8x32xf32>
    tpu.vector_store %arg10[%c0_66, %c0_67, %c0_68], %177 {strides = array<i32>} : memref<1x8x32xf32, #tpu.memory_space<vmem>>, vector<1x8x32xf32>,
    return
  }
  func.func @transform_0(%arg0: i32) -> (i32, i32, i32, i32) {
    %c0_i32 = arith.constant 0 : i32
    %c0_i32_0 = arith.constant 0 : i32
    %c0_i32_1 = arith.constant 0 : i32
    %c0_i32_2 = arith.constant 0 : i32
    return %arg0, %c0_i32, %c0_i32_0, %c0_i32_1 : i32, i32, i32, i32
  }
  func.func @transform_1(%arg0: i32) -> (i32, i32, i32, i32) {
    %c0_i32 = arith.constant 0 : i32
    %c0_i32_0 = arith.constant 0 : i32
    %c0_i32_1 = arith.constant 0 : i32
    %c0_i32_2 = arith.constant 0 : i32
    return %arg0, %c0_i32, %c0_i32_0, %c0_i32_1 : i32, i32, i32, i32
  }
  func.func @transform_2(%arg0: i32) -> (i32, i32, i32, i32) {
    %c0_i32 = arith.constant 0 : i32
    %c0_i32_0 = arith.constant 0 : i32
    %c0_i32_1 = arith.constant 0 : i32
    %c0_i32_2 = arith.constant 0 : i32
    return %arg0, %c0_i32, %c0_i32_0, %c0_i32_1 : i32, i32, i32, i32
  }
  func.func @transform_3(%arg0: i32) -> (i32, i32, i32) {
    %c0_i32 = arith.constant 0 : i32
    %c0_i32_0 = arith.constant 0 : i32
    %c0_i32_1 = arith.constant 0 : i32
    return %arg0, %c0_i32, %c0_i32_0 : i32, i32, i32
  }
  func.func @transform_4(%arg0: i32) -> (i32, i32) {
    %c0_i32 = arith.constant 0 : i32
    %c0_i32_0 = arith.constant 0 : i32
    %c0_i32_1 = arith.constant 0 : i32
    return %c0_i32, %c0_i32_0 : i32, i32
  }
  func.func @transform_5(%arg0: i32) -> (i32, i32) {
    %c0_i32 = arith.constant 0 : i32
    %c0_i32_0 = arith.constant 0 : i32
    %c0_i32_1 = arith.constant 0 : i32
    return %c0_i32, %c0_i32_0 : i32, i32
  }
  func.func @transform_6(%arg0: i32) -> (i32, i32) {
    %c0_i32 = arith.constant 0 : i32
    %c0_i32_0 = arith.constant 0 : i32
    %c0_i32_1 = arith.constant 0 : i32
    return %c0_i32, %c0_i32_0 : i32, i32
  }
  func.func @transform_7(%arg0: i32) -> (i32, i32, i32) {
    %c0_i32 = arith.constant 0 : i32
    %c0_i32_0 = arith.constant 0 : i32
    %c0_i32_1 = arith.constant 0 : i32
    %c0_i32_2 = arith.constant 0 : i32
    return %c0_i32, %c0_i32_0, %c0_i32_1 : i32, i32, i32
  }
  func.func @transform_8(%arg0: i32) -> (i32, i32) {
    %c0_i32 = arith.constant 0 : i32
    %c0_i32_0 = arith.constant 0 : i32
    %c0_i32_1 = arith.constant 0 : i32
    return %c0_i32, %c0_i32_0 : i32, i32
  }
  func.func @transform_9(%arg0: i32) -> (i32, i32, i32) {
    %c0_i32 = arith.constant 0 : i32
    %c0_i32_0 = arith.constant 0 : i32
    %c0_i32_1 = arith.constant 0 : i32
    return %arg0, %c0_i32, %c0_i32_0 : i32, i32, i32
  }
}

module attributes {stable_mosaic.version = 11 : i64} {
  func.func @_linear_kernel(%arg0: i32, %arg1: memref<8x32xf32, #tpu.memory_space<vmem>>, %arg2: memref<32x128xf32, #tpu.memory_space<vmem>>, %arg3: memref<1x128xf32, #tpu.memory_space<vmem>>, %arg4: memref<8x128xf32, #tpu.memory_space<vmem>>) attributes {dimension_semantics = [#tpu.dimension_semantics<parallel>], iteration_bounds = array<i64: 2>, scalar_prefetch = 0 : i64, scratch_operands = 0 : i64, tpu.core_type = #tpu.core_type<tc>, window_params = [{transform_indices = @transform_0, window_bounds = array<i64: 8, 32>}, {pipeline_mode = #tpu.pipeline_mode<synchronous>, transform_indices = @transform_1, window_bounds = array<i64: 32, 128>}, {pipeline_mode = #tpu.pipeline_mode<synchronous>, transform_indices = @transform_2, window_bounds = array<i64: 1, 128>}, {transform_indices = @transform_3, window_bounds = array<i64: 8, 128>}]} {
    %c0 = arith.constant 0 : index
    %c0_0 = arith.constant 0 : index
    %0 = vector.load %arg1[%c0, %c0_0] : memref<8x32xf32, #tpu.memory_space<vmem>>, vector<8x32xf32>
    %1 = arith.truncf %0 : vector<8x32xf32> to vector<8x32xbf16>
    %c0_1 = arith.constant 0 : index
    %c0_2 = arith.constant 0 : index
    %2 = vector.load %arg2[%c0_1, %c0_2] : memref<32x128xf32, #tpu.memory_space<vmem>>, vector<32x128xf32>
    %3 = arith.truncf %2 : vector<32x128xf32> to vector<32x128xbf16>
    %cst = arith.constant dense<0.000000e+00> : vector<8x128xf32>
    %4 = tpu.matmul %1, %3, %cst {dimension_numbers = #tpu.dot_dimension_numbers<[1], [0], [0], [1], [0, 0, 1, 1], [], []>} : vector<8x32xbf16>, vector<32x128xbf16>, vector<8x128xf32> -> vector<8x128xf32>
    %c0_3 = arith.constant 0 : index
    %c0_4 = arith.constant 0 : index
    %5 = vector.load %arg3[%c0_3, %c0_4] : memref<1x128xf32, #tpu.memory_space<vmem>>, vector<1x128xf32>
    %6 = vector.broadcast %5 : vector<1x128xf32> to vector<8x128xf32>
    %7 = arith.addf %4, %6 : vector<8x128xf32>
    %c0_5 = arith.constant 0 : index
    %c0_6 = arith.constant 0 : index
    %8 = vector.load %arg4[%c0_5, %c0_6] : memref<8x128xf32, #tpu.memory_space<vmem>>, vector<8x128xf32>
    tpu.vector_store %arg4[%c0_5, %c0_6], %7 {strides = array<i32>} : memref<8x128xf32, #tpu.memory_space<vmem>>, vector<8x128xf32>,
    return
  }
  func.func @transform_0(%arg0: i32) -> (i32, i32) {
    %c0_i32 = arith.constant 0 : i32
    %c0_i32_0 = arith.constant 0 : i32
    return %arg0, %c0_i32 : i32, i32
  }
  func.func @transform_1(%arg0: i32) -> (i32, i32) {
    %c0_i32 = arith.constant 0 : i32
    %c0_i32_0 = arith.constant 0 : i32
    %c0_i32_1 = arith.constant 0 : i32
    return %c0_i32, %c0_i32_0 : i32, i32
  }
  func.func @transform_2(%arg0: i32) -> (i32, i32) {
    %c0_i32 = arith.constant 0 : i32
    %c0_i32_0 = arith.constant 0 : i32
    %c0_i32_1 = arith.constant 0 : i32
    return %c0_i32, %c0_i32_0 : i32, i32
  }
  func.func @transform_3(%arg0: i32) -> (i32, i32) {
    %c0_i32 = arith.constant 0 : i32
    %c0_i32_0 = arith.constant 0 : i32
    return %arg0, %c0_i32 : i32, i32
  }
}

</mosaic_0001>

<bundles_post_ra>
// kernel: transformer_forward.18
= control target key start
LH: loop header
LB: loop body
LE: loop exit
PB: predicated region body
PF: predicated region fallthrough
CT: control target
= control target key end

     0   :  { %s365_s15 = smov 0   ;;  %s394_s0 = inlined_call_operand.vmem [shape: f32[16,32], index: 0, kind: input, shape index: {}]   ;;  %s395_s1 = inlined_call_operand.vmem [shape: f32[16,32], index: 1, kind: input, shape index: {}]   ;;  %s396_s2 = inlined_call_operand.vmem [shape: f32[1,32], index: 2, kind: input, shape index: {}]   ;;  %s397_s3 = inlined_call_operand.vmem [shape: f32[1,32], index: 3, kind: input, shape index: {}]   ;;  %s398_s4 = inlined_call_operand.vmem [shape: f32[16,32], index: 4, kind: output, shape index: {}]  }
   0x1 LB: > { %s310_s16 = sadd.s32 4294967295, %s338_s15   ;;  %p314_p0 = scmp.ge.s32.totalorder %s338_s15, 1  ;;  %s338_s15 = sphi %s365_s15, %s14_s15  }
   0x2   : > { %p170_p1 = scmp.lt.s32.totalorder %s338_s15, 3 }
   0x4   : > { %p171_p2 = pnand %p314_p0, %p170_p1 }
   0x5   : > { %p198_p3 = scmp.lt.s32.totalorder (!%p171_p2), %s310_s16, 1  ;;  %vm213_vm0 = vcmask (!%p171_p2), 261120   ;;  %v318_v13 = vld [vmem:[%s396_s2] ss:$0 sm:$0xff] (!%p171_p2) }
   0x6   : > { %174 = sbr.rel (%p171_p2) target bundleno = 334 (0x14e), region = 36  ;;  %v319_v15 = vld [vmem:[%s397_s3] ss:$0 sm:$0xff] (!%p171_p2) }
   0xd   : > { %s400_s16 = smov (!%p198_p3, %s310_s16), 1 }
   0xe   : > { %s315_s17 = sshll.u32 %s400_s16, 3 }
   0xf   : > { %s201_s20 = scalar_lea.vmem %s394_s0, %s315_s17  ;;  %s205_s23 = scalar_lea.vmem %s395_s1, %s315_s17 }
  0x10   : > { %v210_v0 = vld [vmem:[%s201_s20] sm:$0xff]  ;;  %s209_s30 = scalar_lea.vmem %s398_s4, %s315_s17 }
  0x11   : > { %v211_v1 = vld [vmem:[%s205_s23] sm:$0xff] }
  0x12   : > { %v212_v2 = vadd.f32 %v211_v1, %v210_v0 }
  0x14   : > { %v214_v3 = vsel %vm213_vm0, %v212_v2, 0.0 }
  0x15   : > { %215 = vadd.xlane.f32.xlu0 %v214_v3 }
  0xa2   : > { %v216_v4 = vpop.xlane.xlu0 %215 }
  0xa3   : > { %v218_v5 = vmul.f32 0.03125, %v216_v4 }
  0xa5   : > { %v219_v6 = vsub.f32 %v212_v2, %v218_v5 }
  0xa7   : > { %v220_v7 = vmul.f32 %v219_v6, %v219_v6 }
  0xa9   : > { %v221_v8 = vsel %vm213_vm0, %v220_v7, 0.0 }
  0xaa   : > { %222 = vadd.xlane.f32.xlu0 %v221_v8 }
 0x137   : > { %v223_v9 = vpop.xlane.xlu0 %222 }
 0x138   : > { %v224_v10 = vmul.f32 0.03125, %v223_v9 }
 0x13a   : > { %v225_v11 = vadd.f32 1e-05, %v224_v10 }
 0x13c   : > { %330 = vrsqrt.f32 %v225_v11 }
 0x146   : > { %v331_v12 = vpop.eup %330 }
 0x147   : > { %v227_v14 = vmul.f32 %v331_v12, %v219_v6 }
 0x149   : > { %v235_v16 = vmul.f32 %v318_v13, %v227_v14 }
 0x14b   : > { %v243_v17 = vadd.f32 %v319_v15, %v235_v16 }
 0x14d   : > { %244 = vst.msk [vmem:[%s209_s30] sm:$0xff] %vm213_vm0, %v243_v17 }
 0x14e PF: > { %s14_s15 = sadd.s32 1, %s338_s15  }
 0x14f   : > { %p11_p4 = scmp.ge.s32.totalorder %s14_s15, 4  }
 0x151   :  { %13 = sbr.rel (!%p11_p4) target bundleno = 1 (0x1), region = 69 }

// kernel: transformer_forward.19
= control target key start
LH: loop header
LB: loop body
LE: loop exit
PB: predicated region body
PF: predicated region fallthrough
CT: control target
= control target key end

     0   :  { %s608_s24 = smov 0   ;;  %s708_s0 = inlined_call_operand.vmem [shape: f32[16,32], index: 0, kind: input, shape index: {}]   ;;  %s709_s1 = inlined_call_operand.vmem [shape: f32[32,128], index: 1, kind: input, shape index: {}]   ;;  %s710_s2 = inlined_call_operand.vmem [shape: f32[1,128], index: 2, kind: input, shape index: {}]   ;;  %s711_s3 = inlined_call_operand.vmem [shape: f32[128,32], index: 3, kind: input, shape index: {}]   ;;  %s712_s4 = inlined_call_operand.vmem [shape: f32[1,32], index: 4, kind: input, shape index: {}]   ;;  %s713_s5 = inlined_call_operand.vmem [shape: f32[1,32], index: 5, kind: input, shape index: {}]   ;;  %s714_s6 = inlined_call_operand.vmem [shape: f32[1,32], index: 6, kind: input, shape index: {}]   ;;  %s715_s7 = inlined_call_operand.vmem [shape: f32[16,32], index: 7, kind: output, shape index: {}]  }
   0x1 LB: > { %s492_s25 = sadd.s32 4294967295, %s564_s24   ;;  %p496_p0 = scmp.ge.s32.totalorder %s564_s24, 1  ;;  %s564_s24 = sphi %s608_s24, %s17_s24  }
   0x2   : > { %p236_p1 = scmp.lt.s32.totalorder %s564_s24, 3 }
   0x4   : > { %p237_p2 = pnand %p496_p0, %p236_p1 }
   0x5   : > { %v277_v0 = vld [vmem:[%s709_s1] sm:$0xff] (!%p237_p2)  ;;  %v278_v1 = vld [vmem:[%s709_s1 + $0x8] sm:$0xff] (!%p237_p2)  ;;  %v279_v2 = vld [vmem:[%s709_s1 + $0x10] sm:$0xff] (!%p237_p2)  ;;  %p266_p3 = scmp.lt.s32.totalorder (!%p237_p2), %s492_s25, 1  ;;  %v566_v3 = vmov (!%p237_p2), 0.0   ;;  %vm567_vm0 = vmmov (!%p237_p2), 0  }
   0x6   : > { %240 = sbr.rel (%p237_p2) target bundleno = 767 (0x2ff), region = 48  ;;  %518 = vmatprep.subr.bf16.mxu0 (!%p237_p2), %v566_v3  ;;  %v281_v4 = vpack.c.bf16 (!%p237_p2), %v278_v1, %v277_v0  ;;  %v280_v5 = vld [vmem:[%s709_s1 + $0x18] sm:$0xff] (!%p237_p2)  ;;  %522 = vmatprep.mubr.msk.bf16.mxu0 (!%p237_p2), %vm567_vm0, %v566_v3  ;;  %v336_v6 = vld [vmem:[%s711_s3] sm:$0xff] (!%p237_p2)  ;;  %v337_v7 = vld [vmem:[%s711_s3 + $0x8] sm:$0xff] (!%p237_p2)  ;;  %vm290_vm1 = vcmask (!%p237_p2), 261120  }
   0x7   : > { %526 = vmatprep.subr.bf16.mxu1 (!%p237_p2), %v566_v3  ;;  %v352_v8 = vpack.c.bf16 (!%p237_p2), %v337_v7, %v336_v6  ;;  %v338_v9 = vld [vmem:[%s711_s3 + $0x10] sm:$0xff] (!%p237_p2)  ;;  %v339_v10 = vld [vmem:[%s711_s3 + $0x18] sm:$0xff] (!%p237_p2)  ;;  %542 = vmatprep.mubr.msk.bf16.mxu1 (!%p237_p2), %vm567_vm0, %v566_v3  ;;  %v282_v11 = vpack.c.bf16 (!%p237_p2), %v280_v5, %v279_v2  ;;  %v340_v13 = vld [vmem:[%s711_s3 + $0x20] sm:$0xff] (!%p237_p2) }
   0x8   : > { %519 = vmatpush3.bf16.msra.mxu0 (!%p237_p2), %v281_v4  ;;  %v353_v12 = vpack.c.bf16 (!%p237_p2), %v339_v10, %v338_v9  ;;  %v341_v14 = vld [vmem:[%s711_s3 + $0x28] sm:$0xff] (!%p237_p2)  ;;  %v342_v18 = vld [vmem:[%s711_s3 + $0x30] sm:$0xff] (!%p237_p2)  ;;  %v343_v19 = vld [vmem:[%s711_s3 + $0x38] sm:$0xff] (!%p237_p2) }
   0x9   : > { %520 = vmatprep.subr.bf16.mxu0 (!%p237_p2), %v566_v3  ;;  %527 = vmatpush3.bf16.msra.mxu1 (!%p237_p2), %v352_v8  ;;  %v354_v17 = vpack.c.bf16 (!%p237_p2), %v341_v14, %v340_v13  ;;  %v355_v20 = vpack.c.bf16 (!%p237_p2), %v343_v19, %v342_v18  ;;  %v344_v21 = vld [vmem:[%s711_s3 + $0x40] sm:$0xff] (!%p237_p2)  ;;  %v345_v22 = vld [vmem:[%s711_s3 + $0x48] sm:$0xff] (!%p237_p2)  ;;  %v346_v24 = vld [vmem:[%s711_s3 + $0x50] sm:$0xff] (!%p237_p2) }
   0xa   : > { %528 = vmatprep.subr.bf16.mxu1 (!%p237_p2), %v566_v3  ;;  %v356_v23 = vpack.c.bf16 (!%p237_p2), %v345_v22, %v344_v21  ;;  %v347_v25 = vld [vmem:[%s711_s3 + $0x58] sm:$0xff] (!%p237_p2)  ;;  %v348_v27 = vld [vmem:[%s711_s3 + $0x60] sm:$0xff] (!%p237_p2)  ;;  %v349_v28 = vld [vmem:[%s711_s3 + $0x68] sm:$0xff] (!%p237_p2) }
   0xb   : > { %v357_v26 = vpack.c.bf16 (!%p237_p2), %v347_v25, %v346_v24  ;;  %v358_v29 = vpack.c.bf16 (!%p237_p2), %v349_v28, %v348_v27  ;;  %v350_v30 = vld [vmem:[%s711_s3 + $0x70] sm:$0xff] (!%p237_p2)  ;;  %v351_v31 = vld [vmem:[%s711_s3 + $0x78] sm:$0xff] (!%p237_p2)  ;;  %v499_v33 = vld [vmem:[%s710_s2] ss:$0 sm:$0xff] (!%p237_p2) }
   0xc   : > { %521 = vmatpush3.bf16.msra.mxu0 (!%p237_p2), %v282_v11  ;;  %v359_v32 = vpack.c.bf16 (!%p237_p2), %v351_v31, %v350_v30  ;;  %v501_v41 = vld [vmem:[%s712_s4] ss:$0 sm:$0xff] (!%p237_p2) }
   0xd   : > { %s717_s25 = smov (!%p266_p3, %s492_s25), 1  ;;  %529 = vmatpush3.bf16.msra.mxu1 %v353_v12  ;;  %v502_v58 = vld [vmem:[%s713_s5] ss:$0 sm:$0xff] }
   0xe   : > { %s497_s19 = sshll.u32 %s717_s25, 3  ;;  %530 = vmatprep.subr.bf16.mxu1 %v566_v3  ;;  %v503_v60 = vld [vmem:[%s714_s6] ss:$0 sm:$0xff] }
   0xf   : > { %s269_s22 = scalar_lea.vmem %s708_s0, %s497_s19  ;;  %s273_s16 = scalar_lea.vmem %s715_s7, %s497_s19 }
  0x10   : > { %v275_v15 = vld [vmem:[%s269_s22] sm:$0xff] }
  0x11   : > { %v276_v16 = vpack.c.bf16 %v275_v15, %v275_v15  ;;  %531 = vmatpush3.bf16.msra.mxu1 %v354_v17 }
  0x12   : > { %532 = vmatprep.subr.bf16.mxu1 %v566_v3 }
  0x13   : > { %523 = vmatmul.mubr.msk.bf16.vlgmr.msra.gmra.mrb[0].mxu0 %vm290_vm1, %v276_v16 }
  0x15   : > { %533 = vmatpush3.bf16.msra.mxu1 %v355_v20 }
  0x16   : > { %534 = vmatprep.subr.bf16.mxu1 %v566_v3 }
  0x19   : > { %535 = vmatpush3.bf16.msra.mxu1 %v356_v23 }
  0x1a   : > { %536 = vmatprep.subr.bf16.mxu1 %v566_v3 }
  0x1d   : > { %537 = vmatpush3.bf16.msra.mxu1 %v357_v26 }
  0x1e   : > { %538 = vmatprep.subr.bf16.mxu1 %v566_v3 }
  0x21   : > { %539 = vmatpush3.bf16.msra.mxu1 %v358_v29 }
  0x22   : > { %540 = vmatprep.subr.bf16.mxu1 %v566_v3 }
  0x25   : > { %541 = vmatpush3.bf16.msra.mxu1 %v359_v32 }
  0xe6   : > { %v328_v34 = vpop.f32.mrb[0].mxu0 }
  0xe7   : > { %v329_v35 = vadd.f32 %v499_v33, %v328_v34  ;;  %v524_v36 = vpop.f32.mrb[1].mxu0 }
  0xe8   : > { %v331_v37 = vpop.f32.mrb[2].mxu0 }
  0xe9   : > { %v334_v38 = vmax.f32 %v329_v35, 0.0  ;;  %v525_v39 = vpop.f32.mrb[3].mxu0 }
  0xeb   : > { %v335_v40 = vpack.c.bf16 %v334_v38, %v334_v38 }
  0xed   : > { %543 = vmatmul.mubr.bf16.vlgmr.msra.gmra.mrb[0].mxu1 %v335_v40 }
 0x1c0   : > { %v401_v42 = vpop.f32.mrb[0].mxu1 }
 0x1c1   : > { %v402_v43 = vadd.f32 %v501_v41, %v401_v42  ;;  %v544_v44 = vpop.f32.mrb[1].mxu1 }
 0x1c2   : > { %v404_v45 = vpop.f32.mrb[2].mxu1 }
 0x1c3   : > { %v545_v46 = vpop.f32.mrb[3].mxu1  ;;  %v407_v47 = vadd.f32 %v402_v43, %v275_v15 }
 0x1c5   : > { %v408_v48 = vsel %vm290_vm1, %v407_v47, 0.0 }
 0x1c6   : > { %409 = vadd.xlane.f32.xlu0 %v408_v48 }
 0x253   : > { %v410_v49 = vpop.xlane.xlu0 %409 }
 0x254   : > { %v412_v50 = vmul.f32 0.03125, %v410_v49 }
 0x256   : > { %v413_v51 = vsub.f32 %v407_v47, %v412_v50 }
 0x258   : > { %v414_v52 = vmul.f32 %v413_v51, %v413_v51 }
 0x25a   : > { %v415_v53 = vsel %vm290_vm1, %v414_v52, 0.0 }
 0x25b   : > { %416 = vadd.xlane.f32.xlu0 %v415_v53 }
 0x2e8   : > { %v417_v54 = vpop.xlane.xlu0 %416 }
 0x2e9   : > { %v418_v55 = vmul.f32 0.03125, %v417_v54 }
 0x2eb   : > { %v419_v56 = vadd.f32 1e-05, %v418_v55 }
 0x2ed   : > { %556 = vrsqrt.f32 %v419_v56 }
 0x2f7   : > { %v557_v57 = vpop.eup %556 }
 0x2f8   : > { %v421_v59 = vmul.f32 %v557_v57, %v413_v51 }
 0x2fa   : > { %v429_v61 = vmul.f32 %v502_v58, %v421_v59 }
 0x2fc   : > { %v437_v62 = vadd.f32 %v503_v60, %v429_v61 }
 0x2fe   : > { %438 = vst.msk [vmem:[%s273_s16] sm:$0xff] %vm290_vm1, %v437_v62 }
 0x2ff PF: > { %s17_s24 = sadd.s32 1, %s564_s24  }
 0x300   : > { %p14_p4 = scmp.ge.s32.totalorder %s17_s24, 4  }
 0x302   :  { %16 = sbr.rel (!%p14_p4) target bundleno = 1 (0x1), region = 78 }

// kernel: transformer_forward.17
= control target key start
LH: loop header
LB: loop body
LE: loop exit
PB: predicated region body
PF: predicated region fallthrough
CT: control target
= control target key end

     0   :  { %s2003_s30 = smov 0   ;;  %s2232_s0 = inlined_call_operand.vmem [shape: f32[2,4,8,8], index: 0, kind: input, shape index: {}, may-alias: {0,1,2}]   ;;  %s2233_s1 = inlined_call_operand.vmem [shape: f32[2,4,8,8], index: 1, kind: input, shape index: {}, may-alias: {0,1,2}]   ;;  %s2234_s2 = inlined_call_operand.vmem [shape: f32[2,4,8,8], index: 2, kind: input, shape index: {}, may-alias: {0,1,2}]   ;;  %s2235_s3 = inlined_call_operand.vmem [shape: f32[2,1,8], index: 3, kind: input, shape index: {}]   ;;  %s2236_s4 = inlined_call_operand.vmem [shape: f32[8,8], index: 4, kind: input, shape index: {}]   ;;  %s2237_s5 = inlined_call_operand.vmem [shape: f32[8,8], index: 5, kind: input, shape index: {}]   ;;  %s2238_s6 = inlined_call_operand.vmem [shape: f32[8,8], index: 6, kind: input, shape index: {}]   ;;  %s2239_s7 = inlined_call_operand.vmem [shape: f32[4,8,32], index: 7, kind: input, shape index: {}]   ;;  %s2240_s8 = inlined_call_operand.vmem [shape: f32[1,32], index: 8, kind: input, shape index: {}]   ;;  %s2241_s9 = inlined_call_operand.vmem [shape: f32[2,8,32], index: 9, kind: output, shape index: {}]  }
   0x1 LB: > { %s1681_s10 = sadd.s32 4294967295, %s1948_s30   ;;  %p1685_p0 = scmp.ge.s32.totalorder %s1948_s30, 1  ;;  %s1948_s30 = sphi %s2003_s30, %s19_s30  }
   0x2   : > { %p315_p1 = scmp.lt.s32.totalorder %s1948_s30, 3 }
   0x4   : > { %p316_p2 = pnand %p1685_p0, %p315_p1 }
   0x5   : > { %v400_v0 = vld [vmem:[%s2237_s5] sm:$0xff] (!%p316_p2)  ;;  %vm419_vm0 = vcmask (!%p316_p2), 1043456   ;;  %p363_p3 = scmp.lt.s32.totalorder (!%p316_p2), %s1681_s10, 1  ;;  %v1950_v1 = vmov (!%p316_p2), 0.0   ;;  %vm1951_vm1 = vmmov (!%p316_p2), 0   ;;  %vm415_vm2 = vcmask (!%p316_p2), 64512  }
   0x6   : > { %319 = sbr.rel (%p316_p2) target bundleno = 3906 (0xf42), region = 56  ;;  %1777 = vmatprep.subr.bf16.mxu1 (!%p316_p2), %v1950_v1  ;;  %v401_v2 = vpack.c.bf16 (!%p316_p2), %v400_v0, %v400_v0  ;;  %1779 = vmatprep.mubr.msk.bf16.mxu1 (!%p316_p2), %vm1951_vm1, %v1950_v1  ;;  %v398_v3 = vld [vmem:[%s2236_s4] sm:$0xff] (!%p316_p2)  ;;  %v606_v27 = vlaneseq (!%p316_p2)  ;;  %v1952_v31 = vmov (!%p316_p2), 0   ;;  %vm1593_vm5 = vcmask (!%p316_p2), 261120  }
   0x7   : > { %1771 = vmatprep.subr.bf16.mxu0 (!%p316_p2), %v1950_v1  ;;  %v399_v4 = vpack.c.bf16 (!%p316_p2), %v398_v3, %v398_v3  ;;  %1773 = vmatprep.mubr.msk.bf16.mxu0 (!%p316_p2), %vm1951_vm1, %v1950_v1  ;;  %v402_v22 = vld [vmem:[%s2238_s6] sm:$0xff] (!%p316_p2) }
   0x8   : > { %v2026_v5 = vsel (!%p316_p2), %vm419_vm0, %v401_v2, 0  ;;  %v403_v23 = vpack.c.bf16 (!%p316_p2), %v402_v22, %v402_v22  ;;  %v607_v29 = vshrl.u32 (!%p316_p2), %v606_v27, 7 }
   0x9   : > { %1778 = vmatpush3.bf16.msra.mxu1 (!%p316_p2), %v2026_v5  ;;  %v2033_v6 = vsel (!%p316_p2), %vm419_vm0, %v399_v4, 0 }
   0xa   : > { %1772 = vmatpush3.bf16.msra.mxu0 (!%p316_p2), %v2033_v6  ;;  %1789 = vmatprep.subr.bf16.mxu1 (!%p316_p2), %v1950_v1  ;;  %v2076_v25 = vsel (!%p316_p2), %vm419_vm0, %v403_v23, 0  ;;  %v608_v30 = vsub.s32 (!%p316_p2), 0, %v607_v29 }
   0xb   : > { %1783 = vmatprep.subr.bf16.mxu0 (!%p316_p2), %v1950_v1 }
   0xd   : > { %s2243_s10 = smov (!%p363_p3, %s1681_s10), 1 }
   0xe   : > { %s2030_s15 = sshll.u32 %s2243_s10, 5  ;;  %s380_s29 = scalar_lea.vmem %s2235_s3, %s2243_s10 }
   0xf   : > { %s2039_s18 = scalar_lea.vmem %s2233_s1, %s2030_s15  ;;  %s2046_s21 = scalar_lea.vmem %s2232_s0, %s2030_s15  ;;  %v412_v28 = vld [vmem:[%s380_s29] sm:$0x1] }
  0x10   : > { %v390_v7 = vld [vmem:[%s2039_s18] sm:$0xff]  ;;  %s2072_s26 = scalar_lea.vmem %s2234_s2, %s2030_s15  ;;  %vm413_vm3 = vcmp.ne.f32.partialorder %v412_v28, 0.0  ;;  %v387_v52 = vld [vmem:[%s2046_s21 + $0x8] sm:$0xff]  ;;  %s1692_s19 = sshll.u32 %s2243_s10, 3 }
  0x11   : > { %v386_v8 = vld [vmem:[%s2046_s21] sm:$0xff]  ;;  %v463_v9 = vpack.c.bf16 %v390_v7, %v390_v7  ;;  %v605_v32 = vsel %vm413_vm3, 1, %v1952_v31  ;;  %v673_v53 = vpack.c.bf16 %v387_v52, %v387_v52  ;;  %v391_v58 = vld [vmem:[%s2039_s18 + $0x8] sm:$0xff]  ;;  %s384_s24 = scalar_lea.vmem %s2241_s9, %s1692_s19 }
  0x12   : > { %v414_v10 = vpack.c.bf16 %v386_v8, %v386_v8  ;;  %v394_v24 = vld [vmem:[%s2072_s26] sm:$0xff]  ;;  %v2087_v33 = vrot.slane %v605_v32, %v608_v30  ;;  %v717_v59 = vpack.c.bf16 %v391_v58, %v391_v58 }
  0x13   : > { %1780 = vmatmul.mubr.msk.bf16.vlgmr.msra.gmra.mrb[0].mxu1 %vm415_vm2, %v463_v9  ;;  %v510_v26 = vpack.c.bf16 %v394_v24, %v394_v24 }
  0x14   : > { %1774 = vmatmul.mubr.msk.bf16.vlgmr.msra.gmra.mrb[0].mxu0 %vm415_vm2, %v414_v10  ;;  %1791 = vmatprep.mubr.msk.bf16.mxu1 %vm1951_vm1, %v1950_v1  ;;  %vm610_vm4 = vcmp.eq.s32.totalorder %v2087_v33, 1 }
  0x15   : > { %1785 = vmatprep.mubr.msk.bf16.mxu0 %vm1951_vm1, %v1950_v1  ;;  %1784 = vmatpush3.bf16.msra.mxu0 %v2076_v25 }
  0x16   : > { %1795 = vmatprep.subr.bf16.mxu0 %v1950_v1 }
  0x1c   : > { %1786 = vmatmul.mubr.msk.bf16.vlgmr.msra.gmra.mrb[4].mxu0 %vm415_vm2, %v510_v26 }
  0x1d   : > { %1797 = vmatprep.mubr.msk.bf16.mxu0 %vm1951_vm1, %v1950_v1 }
  0xe6   : > { %v504_v11 = vpop.f32.mrb[0].mxu1 }
  0xe7   : > { %v457_v12 = vpop.f32.mrb[0].mxu0  ;;  %v558_v13 = vpack.c.bf16 %v504_v11, %v504_v11  ;;  %v1781_v14 = vpop.f32.mrb[1].mxu1 }
  0xe8   : > { %v1775_v15 = vpop.f32.mrb[1].mxu0  ;;  %v507_v16 = vpop.f32.mrb[2].mxu1  ;;  %v557_v21 = vpack.c.bf16 %v457_v12, %v457_v12  ;;  %v395_v14 = vld [vmem:[%s2072_s26 + $0x8] sm:$0xff] }
  0xe9   : > { %v460_v17 = vpop.f32.mrb[2].mxu0  ;;  %v563_v18 = vsel %vm415_vm2, %v558_v13, 0  ;;  %v1782_v19 = vpop.f32.mrb[3].mxu1  ;;  %v761_v15 = vpack.c.bf16 %v395_v14, %v395_v14 }
  0xea   : > { %v1776_v20 = vpop.f32.mrb[3].mxu0  ;;  %1790 = vmatpush3.bf16.xpose.msra.mxu1 %v563_v18 }
  0xeb   : > { %1801 = vmatprep.subr.bf16.mxu1 %v1950_v1 }
  0xef   : > { %v551_v46 = vpop.f32.mrb[4].mxu0 }
  0xf0   : > { %v1787_v47 = vpop.f32.mrb[5].mxu0  ;;  %v625_v50 = vpack.c.bf16 %v551_v46, %v551_v46 }
  0xf1   : > { %1792 = vmatmul.mubr.msk.bf16.vlgmr.msra.gmra.mrb[4].mxu1 %vm415_vm2, %v557_v21  ;;  %v554_v48 = vpop.f32.mrb[6].mxu0  ;;  %v392_v47 = vld [vmem:[%s2039_s18 + $0x10] sm:$0xff] }
  0xf2   : > { %1802 = vmatpush3.bf16.msra.mxu1 %v2033_v6  ;;  %1803 = vmatprep.mubr.msk.bf16.mxu1 %vm1951_vm1, %v1950_v1  ;;  %v1788_v49 = vpop.f32.mrb[7].mxu0  ;;  %v630_v51 = vsel %vm419_vm0, %v625_v50, 0  ;;  %v1051_v48 = vpack.c.bf16 %v392_v47, %v392_v47 }
  0xf3   : > { %1813 = vmatprep.subr.bf16.mxu1 %v1950_v1  ;;  %1796 = vmatpush3.bf16.msra.mxu0 %v630_v51 }
  0xf4   : > { %1807 = vmatprep.subr.bf16.mxu0 %v1950_v1 }
  0xf9   : > { %1804 = vmatmul.mubr.msk.bf16.vlgmr.msra.gmra.mrb[8].mxu1 %vm415_vm2, %v673_v53 }
  0xfa   : > { %1814 = vmatpush3.bf16.msra.mxu1 %v2076_v25  ;;  %1815 = vmatprep.mubr.msk.bf16.mxu1 %vm1951_vm1, %v1950_v1 }
  0xfb   : > { %1825 = vmatprep.subr.bf16.mxu1 %v1950_v1 }
 0x101   : > { %1816 = vmatmul.mubr.msk.bf16.vlgmr.msra.gmra.mrb[12].mxu1 %vm415_vm2, %v761_v15  ;;  %v396_v15 = vld [vmem:[%s2072_s26 + $0x10] sm:$0xff] }
 0x102   : > { %1827 = vmatprep.mubr.msk.bf16.mxu1 %vm1951_vm1, %v1950_v1 }
 0x1c4   : > { %v599_v34 = vpop.f32.mrb[4].mxu1 }
 0x1c5   : > { %v611_v35 = vsel %vm610_vm4, %v599_v34, -1e+20  ;;  %v1793_v36 = vpop.f32.mrb[5].mxu1 }
 0x1c6   : > { %v612_v37 = vmul.f32 0.17677669, %v611_v35  ;;  %v602_v38 = vpop.f32.mrb[6].mxu1  ;;  %v405_v36 = vld [vmem:[%s2239_s7 + $0x8] sm:$0xff] }
 0x1c7   : > { %v1794_v39 = vpop.f32.mrb[7].mxu1 }
 0x1c8   : > { %v613_v40 = vsel %vm415_vm2, %v612_v37, -inf }
 0x1c9   : > { %614 = vmax.xlane.f32.xlu0 %v613_v40  ;;  %v404_v40 = vld [vmem:[%s2239_s7] sm:$0xff] }
 0x1cc   : > { %v711_v60 = vpop.f32.mrb[8].mxu1 }
 0x1cd   : > { %v1805_v61 = vpop.f32.mrb[9].mxu1  ;;  %v805_v13 = vpack.c.bf16 %v711_v60, %v711_v60 }
 0x1ce   : > { %v714_v62 = vpop.f32.mrb[10].mxu1 }
 0x1cf   : > { %v1806_v63 = vpop.f32.mrb[11].mxu1 }
 0x1d4   : > { %v799_v29 = vpop.f32.mrb[12].mxu1 }
 0x1d5   : > { %v1817_v30 = vpop.f32.mrb[13].mxu1  ;;  %v867_v34 = vpack.c.bf16 %v799_v29, %v799_v29 }
 0x1d6   : > { %v802_v31 = vpop.f32.mrb[14].mxu1 }
 0x1d7   : > { %v1818_v32 = vpop.f32.mrb[15].mxu1  ;;  %v872_v35 = vsel %vm419_vm0, %v867_v34, 0 }
 0x1d8   : > { %1826 = vmatpush3.bf16.msra.mxu1 %v872_v35 }
 0x1d9   : > { %1837 = vmatprep.subr.bf16.mxu1 %v1950_v1 }
 0x256   : > { %v615_v41 = vpop.xlane.xlu0 %614 }
 0x257   : > { %v616_v42 = vsub.f32 %v612_v37, %v615_v41  ;;  %v409_v37 = vpack.c.bf16 %v405_v36, %v405_v36  ;;  %v408_v41 = vpack.c.bf16 %v404_v40, %v404_v40 }
 0x259   : > { %v617_v43 = vmul.f32 1.442695, %v616_v42  ;;  %v919_v38 = vsel %vm419_vm0, %v409_v37, 0  ;;  %v406_v37 = vld [vmem:[%s2239_s7 + $0x10] sm:$0xff] }
 0x25b   : > { %1926 = vpow2.f32 %v617_v43 }
 0x265   : > { %v1927_v44 = vpop.eup %1926 }
 0x266   : > { %v619_v45 = vsel %vm415_vm2, %v1927_v44, 0.0 }
 0x267   : > { %620 = vadd.xlane.f32.xlu0 %v619_v45  ;;  %v965_v45 = vsel %vm419_vm0, %v408_v41, 0 }
 0x2f4   : > { %v621_v54 = vpop.xlane.xlu0 %620 }
 0x2f5   : > { %1928 = vrcp.f32 %v621_v54  ;;  %v388_v54 = vld [vmem:[%s2046_s21 + $0x10] sm:$0xff] }
 0x2ff   : > { %v1929_v55 = vpop.eup %1928 }
 0x300   : > { %v623_v56 = vmul.f32 %v1929_v55, %v1927_v44  ;;  %v1007_v55 = vpack.c.bf16 %v388_v54, %v388_v54 }
 0x302   : > { %v624_v57 = vpack.c.bf16 %v623_v56, %v623_v56 }
 0x304   : > { %1798 = vmatmul.mubr.msk.bf16.vlgmr.msra.gmra.mrb[8].mxu0 %vm415_vm2, %v624_v57 }
 0x305   : > { %1808 = vmatpush3.bf16.msra.mxu0 %v2026_v5  ;;  %1809 = vmatprep.mubr.msk.bf16.mxu0 %vm1951_vm1, %v1950_v1 }
 0x306   : > { %1819 = vmatprep.subr.bf16.mxu0 %v1950_v1 }
 0x30c   : > { %1810 = vmatmul.mubr.msk.bf16.vlgmr.msra.gmra.mrb[12].mxu0 %vm415_vm2, %v717_v59 }
 0x30d   : > { %1821 = vmatprep.mubr.msk.bf16.mxu0 %vm1951_vm1, %v1950_v1 }
 0x3d7   : > { %v666_v0 = vpop.f32.mrb[8].mxu0 }
 0x3d8   : > { %v1799_v2 = vpop.f32.mrb[9].mxu0  ;;  %v672_v46 = vpack.c.bf16 %v666_v0, %v666_v0 }
 0x3d9   : > { %v669_v3 = vpop.f32.mrb[10].mxu0 }
 0x3da   : > { %v1800_v4 = vpop.f32.mrb[11].mxu0 }
 0x3df   : > { %v755_v7 = vpop.f32.mrb[12].mxu0 }
 0x3e0   : > { %v806_v8 = vpack.c.bf16 %v755_v7, %v755_v7  ;;  %v1811_v9 = vpop.f32.mrb[13].mxu0 }
 0x3e1   : > { %v758_v10 = vpop.f32.mrb[14].mxu0 }
 0x3e2   : > { %v811_v11 = vsel %vm415_vm2, %v806_v8, 0  ;;  %v1812_v12 = vpop.f32.mrb[15].mxu0 }
 0x3e3   : > { %1820 = vmatpush3.bf16.xpose.msra.mxu0 %v811_v11 }
 0x3e4   : > { %1831 = vmatprep.subr.bf16.mxu0 %v1950_v1 }
 0x3ea   : > { %1822 = vmatmul.mubr.msk.bf16.vlgmr.msra.gmra.mrb[16].mxu0 %vm415_vm2, %v805_v13 }
 0x3eb   : > { %1833 = vmatprep.mubr.msk.bf16.mxu0 %vm1951_vm1, %v1950_v1  ;;  %1832 = vmatpush3.bf16.msra.mxu0 %v919_v38  ;;  %v410_v38 = vpack.c.bf16 %v406_v37, %v406_v37 }
 0x3ec   : > { %1843 = vmatprep.subr.bf16.mxu0 %v1950_v1 }
 0x4bd   : > { %v847_v16 = vpop.f32.mrb[16].mxu0 }
 0x4be   : > { %v853_v17 = vsel %vm610_vm4, %v847_v16, -1e+20  ;;  %v1823_v18 = vpop.f32.mrb[17].mxu0  ;;  %v1095_v16 = vpack.c.bf16 %v396_v15, %v396_v15 }
 0x4bf   : > { %v854_v19 = vmul.f32 0.17677669, %v853_v17  ;;  %v850_v20 = vpop.f32.mrb[18].mxu0 }
 0x4c0   : > { %v1824_v21 = vpop.f32.mrb[19].mxu0 }
 0x4c1   : > { %v855_v22 = vsel %vm415_vm2, %v854_v19, -inf }
 0x4c2   : > { %856 = vmax.xlane.f32.xlu1 %v855_v22 }
 0x54f   : > { %v857_v23 = vpop.xlane.xlu1 %856 }
 0x550   : > { %v858_v24 = vsub.f32 %v854_v19, %v857_v23 }
 0x552   : > { %v859_v26 = vmul.f32 1.442695, %v858_v24 }
 0x554   : > { %1930 = vpow2.f32 %v859_v26 }
 0x55e   : > { %v1931_v27 = vpop.eup %1930 }
 0x55f   : > { %v861_v28 = vsel %vm415_vm2, %v1931_v27, 0.0 }
 0x560   : > { %862 = vadd.xlane.f32.xlu1 %v861_v28 }
 0x5ed   : > { %v863_v39 = vpop.xlane.xlu1 %862 }
 0x5ee   : > { %1932 = vrcp.f32 %v863_v39  ;;  %v1253_v39 = vsel %vm419_vm0, %v410_v38, 0  ;;  %v1717_v38 = vld [vmem:[%s2240_s8] ss:$0 sm:$0xff] }
 0x5f8   : > { %v1933_v42 = vpop.eup %1932 }
 0x5f9   : > { %v865_v43 = vmul.f32 %v1933_v42, %v1931_v27 }
 0x5fb   : > { %v866_v44 = vpack.c.bf16 %v865_v43, %v865_v43 }
 0x5fd   : > { %1828 = vmatmul.mubr.msk.bf16.vlgmr.msra.gmra.mrb[16].mxu1 %vm415_vm2, %v866_v44  ;;  %v389_v44 = vld [vmem:[%s2046_s21 + $0x18] sm:$0xff] }
 0x5fe   : > { %1838 = vmatpush3.bf16.msra.mxu1 %v965_v45  ;;  %1839 = vmatprep.mubr.msk.bf16.mxu1 %vm1951_vm1, %v1950_v1  ;;  %v1296_v45 = vpack.c.bf16 %v389_v44, %v389_v44 }
 0x5ff   : > { %1849 = vmatprep.subr.bf16.mxu1 %v1950_v1 }
 0x605   : > { %1840 = vmatmul.mubr.msk.bf16.vlgmr.msra.gmra.mrb[20].mxu1 %vm415_vm2, %v672_v46 }
 0x606   : > { %1850 = vmatpush3.bf16.msra.mxu1 %v2026_v5  ;;  %1851 = vmatprep.mubr.msk.bf16.mxu1 %vm1951_vm1, %v1950_v1 }
 0x607   : > { %1861 = vmatprep.subr.bf16.mxu1 %v1950_v1 }
 0x60d   : > { %1852 = vmatmul.mubr.msk.bf16.vlgmr.msra.gmra.mrb[24].mxu1 %vm415_vm2, %v1051_v48 }
 0x60e   : > { %1863 = vmatprep.mubr.msk.bf16.mxu1 %vm1951_vm1, %v1950_v1 }
 0x6d0   : > { %v908_v49 = vpop.f32.mrb[16].mxu1 }
 0x6d1   : > { %v914_v50 = vpack.c.bf16 %v908_v49, %v908_v49  ;;  %v1829_v51 = vpop.f32.mrb[17].mxu1 }
 0x6d2   : > { %v911_v52 = vpop.f32.mrb[18].mxu1 }
 0x6d3   : > { %v1830_v53 = vpop.f32.mrb[19].mxu1  ;;  %1834 = vmatmul.mubr.msk.bf16.vlgmr.msra.gmra.mrb[20].mxu0 %vm415_vm2, %v914_v50  ;;  %v393_v50 = vld [vmem:[%s2039_s18 + $0x18] sm:$0xff] }
 0x6d4   : > { %1844 = vmatpush3.bf16.msra.mxu0 %v2033_v6  ;;  %1845 = vmatprep.mubr.msk.bf16.mxu0 %vm1951_vm1, %v1950_v1 }
 0x6d5   : > { %1855 = vmatprep.subr.bf16.mxu0 %v1950_v1 }
 0x6d8   : > { %v1001_v56 = vpop.f32.mrb[20].mxu1 }
 0x6d9   : > { %v1841_v57 = vpop.f32.mrb[21].mxu1 }
 0x6da   : > { %v1004_v58 = vpop.f32.mrb[22].mxu1 }
 0x6db   : > { %v1842_v59 = vpop.f32.mrb[23].mxu1  ;;  %1846 = vmatmul.mubr.msk.bf16.vlgmr.msra.gmra.mrb[24].mxu0 %vm415_vm2, %v1007_v55 }
 0x6dc   : > { %1856 = vmatpush3.bf16.msra.mxu0 %v2076_v25  ;;  %1857 = vmatprep.mubr.msk.bf16.mxu0 %vm1951_vm1, %v1950_v1 }
 0x6dd   : > { %1867 = vmatprep.subr.bf16.mxu0 %v1950_v1 }
 0x6e0   : > { %v1089_v60 = vpop.f32.mrb[24].mxu1 }
 0x6e1   : > { %v1140_v61 = vpack.c.bf16 %v1089_v60, %v1089_v60  ;;  %v1853_v62 = vpop.f32.mrb[25].mxu1 }
 0x6e2   : > { %v1092_v63 = vpop.f32.mrb[26].mxu1 }
 0x6e3   : > { %v1145_v0 = vsel %vm415_vm2, %v1140_v61, 0  ;;  %v1854_v2 = vpop.f32.mrb[27].mxu1  ;;  %1858 = vmatmul.mubr.msk.bf16.vlgmr.msra.gmra.mrb[28].mxu0 %vm415_vm2, %v1095_v16 }
 0x6e4   : > { %1862 = vmatpush3.bf16.xpose.msra.mxu1 %v1145_v0  ;;  %1869 = vmatprep.mubr.msk.bf16.mxu0 %vm1951_vm1, %v1950_v1 }
 0x6e5   : > { %1873 = vmatprep.subr.bf16.mxu1 %v1950_v1 }
 0x7a6   : > { %v955_v3 = vpop.f32.mrb[20].mxu0 }
 0x7a7   : > { %v2161_v4 = vadd.f32 %v1001_v56, %v955_v3  ;;  %v1835_v7 = vpop.f32.mrb[21].mxu0  ;;  %v397_v3 = vld [vmem:[%s2072_s26 + $0x18] sm:$0xff] }
 0x7a8   : > { %v958_v8 = vpop.f32.mrb[22].mxu0 }
 0x7a9   : > { %v1836_v9 = vpop.f32.mrb[23].mxu0 }
 0x7ae   : > { %v1045_v10 = vpop.f32.mrb[24].mxu0 }
 0x7af   : > { %v1139_v11 = vpack.c.bf16 %v1045_v10, %v1045_v10  ;;  %v1847_v12 = vpop.f32.mrb[25].mxu0 }
 0x7b0   : > { %v1048_v13 = vpop.f32.mrb[26].mxu0 }
 0x7b1   : > { %v1848_v14 = vpop.f32.mrb[27].mxu0  ;;  %1864 = vmatmul.mubr.msk.bf16.vlgmr.msra.gmra.mrb[28].mxu1 %vm415_vm2, %v1139_v11 }
 0x7b2   : > { %1875 = vmatprep.mubr.msk.bf16.mxu1 %vm1951_vm1, %v1950_v1  ;;  %1874 = vmatpush3.bf16.msra.mxu1 %v1253_v39 }
 0x7b3   : > { %1885 = vmatprep.subr.bf16.mxu1 %v1950_v1 }
 0x7b6   : > { %v1133_v30 = vpop.f32.mrb[28].mxu0 }
 0x7b7   : > { %v1859_v31 = vpop.f32.mrb[29].mxu0  ;;  %v1201_v35 = vpack.c.bf16 %v1133_v30, %v1133_v30 }
 0x7b8   : > { %v1136_v32 = vpop.f32.mrb[30].mxu0 }
 0x7b9   : > { %v1860_v34 = vpop.f32.mrb[31].mxu0  ;;  %v1206_v36 = vsel %vm419_vm0, %v1201_v35, 0 }
 0x7ba   : > { %1868 = vmatpush3.bf16.msra.mxu0 %v1206_v36 }
 0x7bb   : > { %1879 = vmatprep.subr.bf16.mxu0 %v1950_v1 }
 0x884   : > { %v1181_v17 = vpop.f32.mrb[28].mxu1 }
 0x885   : > { %v1187_v18 = vsel %vm610_vm4, %v1181_v17, -1e+20  ;;  %v1865_v19 = vpop.f32.mrb[29].mxu1 }
 0x886   : > { %v1188_v20 = vmul.f32 0.17677669, %v1187_v18  ;;  %v1184_v21 = vpop.f32.mrb[30].mxu1 }
 0x887   : > { %v1866_v22 = vpop.f32.mrb[31].mxu1 }
 0x888   : > { %v1189_v23 = vsel %vm415_vm2, %v1188_v20, -inf }
 0x889   : > { %1190 = vmax.xlane.f32.xlu0 %v1189_v23  ;;  %v407_v23 = vld [vmem:[%s2239_s7 + $0x18] sm:$0xff] }
 0x916   : > { %v1191_v24 = vpop.xlane.xlu0 %1190 }
 0x917   : > { %v1192_v26 = vsub.f32 %v1188_v20, %v1191_v24  ;;  %v411_v24 = vpack.c.bf16 %v407_v23, %v407_v23 }
 0x919   : > { %v1193_v27 = vmul.f32 1.442695, %v1192_v26  ;;  %v1542_v26 = vsel %vm419_vm0, %v411_v24, 0 }
 0x91b   : > { %1934 = vpow2.f32 %v1193_v27 }
 0x925   : > { %v1935_v28 = vpop.eup %1934 }
 0x926   : > { %v1195_v29 = vsel %vm415_vm2, %v1935_v28, 0.0 }
 0x927   : > { %1196 = vadd.xlane.f32.xlu1 %v1195_v29 }
 0x9b4   : > { %v1197_v40 = vpop.xlane.xlu1 %1196 }
 0x9b5   : > { %1936 = vrcp.f32 %v1197_v40 }
 0x9bf   : > { %v1937_v41 = vpop.eup %1936 }
 0x9c0   : > { %v1199_v42 = vmul.f32 %v1937_v41, %v1935_v28 }
 0x9c2   : > { %v1200_v43 = vpack.c.bf16 %v1199_v42, %v1199_v42 }
 0x9c4   : > { %1870 = vmatmul.mubr.msk.bf16.vlgmr.msra.gmra.mrb[32].mxu0 %vm415_vm2, %v1200_v43 }
 0x9c5   : > { %1880 = vmatpush3.bf16.msra.mxu0 %v2033_v6  ;;  %1881 = vmatprep.mubr.msk.bf16.mxu0 %vm1951_vm1, %v1950_v1 }
 0x9c6   : > { %1891 = vmatprep.subr.bf16.mxu0 %v1950_v1 }
 0x9cc   : > { %1882 = vmatmul.mubr.msk.bf16.vlgmr.msra.gmra.mrb[36].mxu0 %vm415_vm2, %v1296_v45 }
 0x9cd   : > { %1892 = vmatpush3.bf16.msra.mxu0 %v2076_v25  ;;  %1893 = vmatprep.mubr.msk.bf16.mxu0 %vm1951_vm1, %v1950_v1  ;;  %v1340_v25 = vpack.c.bf16 %v393_v50, %v393_v50 }
 0x9ce   : > { %1903 = vmatprep.subr.bf16.mxu0 %v1950_v1 }
 0xa97   : > { %v1242_v46 = vpop.f32.mrb[32].mxu0 }
 0xa98   : > { %v1248_v47 = vpack.c.bf16 %v1242_v46, %v1242_v46  ;;  %v1871_v6 = vpop.f32.mrb[33].mxu0 }
 0xa99   : > { %v1245_v48 = vpop.f32.mrb[34].mxu0 }
 0xa9a   : > { %v1872_v49 = vpop.f32.mrb[35].mxu0  ;;  %1876 = vmatmul.mubr.msk.bf16.vlgmr.msra.gmra.mrb[32].mxu1 %vm415_vm2, %v1248_v47 }
 0xa9b   : > { %1886 = vmatpush3.bf16.msra.mxu1 %v2026_v5  ;;  %1887 = vmatprep.mubr.msk.bf16.mxu1 %vm1951_vm1, %v1950_v1 }
 0xa9c   : > { %1897 = vmatprep.subr.bf16.mxu1 %v1950_v1 }
 0xa9f   : > { %v1334_v51 = vpop.f32.mrb[36].mxu0 }
 0xaa0   : > { %v1883_v52 = vpop.f32.mrb[37].mxu0  ;;  %v1428_v2 = vpack.c.bf16 %v1334_v51, %v1334_v51 }
 0xaa1   : > { %v1337_v53 = vpop.f32.mrb[38].mxu0 }
 0xaa2   : > { %1888 = vmatmul.mubr.msk.bf16.vlgmr.msra.gmra.mrb[36].mxu1 %vm415_vm2, %v1340_v25  ;;  %v1884_v54 = vpop.f32.mrb[39].mxu0 }
 0xaa3   : > { %1899 = vmatprep.mubr.msk.bf16.mxu1 %vm1951_vm1, %v1950_v1 }
 0xb6d   : > { %v1289_v55 = vpop.f32.mrb[32].mxu1 }
 0xb6e   : > { %v1295_v5 = vadd.f32 %v1289_v55, %v2161_v4  ;;  %v1877_v56 = vpop.f32.mrb[33].mxu1  ;;  %v1384_v4 = vpack.c.bf16 %v397_v3, %v397_v3 }
 0xb6f   : > { %v1292_v57 = vpop.f32.mrb[34].mxu1 }
 0xb70   : > { %v1878_v58 = vpop.f32.mrb[35].mxu1  ;;  %1894 = vmatmul.mubr.msk.bf16.vlgmr.msra.gmra.mrb[40].mxu0 %vm415_vm2, %v1384_v4 }
 0xb71   : > { %1905 = vmatprep.mubr.msk.bf16.mxu0 %vm1951_vm1, %v1950_v1 }
 0xb75   : > { %v1378_v59 = vpop.f32.mrb[36].mxu1 }
 0xb76   : > { %v1429_v60 = vpack.c.bf16 %v1378_v59, %v1378_v59  ;;  %v1889_v61 = vpop.f32.mrb[37].mxu1 }
 0xb77   : > { %v1381_v62 = vpop.f32.mrb[38].mxu1 }
 0xb78   : > { %v1434_v63 = vsel %vm415_vm2, %v1429_v60, 0  ;;  %v1890_v0 = vpop.f32.mrb[39].mxu1 }
 0xb79   : > { %1898 = vmatpush3.bf16.xpose.msra.mxu1 %v1434_v63 }
 0xb7a   : > { %1909 = vmatprep.subr.bf16.mxu1 %v1950_v1 }
 0xb80   : > { %1900 = vmatmul.mubr.msk.bf16.vlgmr.msra.gmra.mrb[40].mxu1 %vm415_vm2, %v1428_v2 }
 0xb81   : > { %1911 = vmatprep.mubr.msk.bf16.mxu1 %vm1951_vm1, %v1950_v1  ;;  %1910 = vmatpush3.bf16.msra.mxu1 %v1542_v26 }
 0xc43   : > { %v1422_v1 = vpop.f32.mrb[40].mxu0 }
 0xc44   : > { %v1895_v19 = vpop.f32.mrb[41].mxu0  ;;  %v1490_v21 = vpack.c.bf16 %v1422_v1, %v1422_v1 }
 0xc45   : > { %v1425_v20 = vpop.f32.mrb[42].mxu0 }
 0xc46   : > { %v1896_v33 = vpop.f32.mrb[43].mxu0  ;;  %v1495_v22 = vsel %vm419_vm0, %v1490_v21, 0 }
 0xc47   : > { %1904 = vmatpush3.bf16.msra.mxu0 %v1495_v22 }
 0xc53   : > { %v1470_v7 = vpop.f32.mrb[40].mxu1 }
 0xc54   : > { %v1476_v8 = vsel %vm610_vm4, %v1470_v7, -1e+20  ;;  %v1901_v9 = vpop.f32.mrb[41].mxu1 }
 0xc55   : > { %v1477_v10 = vmul.f32 0.17677669, %v1476_v8  ;;  %v1473_v11 = vpop.f32.mrb[42].mxu1 }
 0xc56   : > { %v1902_v12 = vpop.f32.mrb[43].mxu1 }
 0xc57   : > { %v1478_v13 = vsel %vm415_vm2, %v1477_v10, -inf }
 0xc58   : > { %1479 = vmax.xlane.f32.xlu0 %v1478_v13 }
 0xce5   : > { %v1480_v14 = vpop.xlane.xlu0 %1479 }
 0xce6   : > { %v1481_v15 = vsub.f32 %v1477_v10, %v1480_v14 }
 0xce8   : > { %v1482_v16 = vmul.f32 1.442695, %v1481_v15 }
 0xcea   : > { %1938 = vpow2.f32 %v1482_v16 }
 0xcf4   : > { %v1939_v17 = vpop.eup %1938 }
 0xcf5   : > { %v1484_v18 = vsel %vm415_vm2, %v1939_v17, 0.0 }
 0xcf6   : > { %1485 = vadd.xlane.f32.xlu1 %v1484_v18 }
 0xd83   : > { %v1486_v27 = vpop.xlane.xlu1 %1485 }
 0xd84   : > { %1940 = vrcp.f32 %v1486_v27 }
 0xd8e   : > { %v1941_v28 = vpop.eup %1940 }
 0xd8f   : > { %v1488_v29 = vmul.f32 %v1941_v28, %v1939_v17 }
 0xd91   : > { %v1489_v30 = vpack.c.bf16 %v1488_v29, %v1488_v29 }
 0xd93   : > { %1906 = vmatmul.mubr.msk.bf16.vlgmr.msra.gmra.mrb[44].mxu0 %vm415_vm2, %v1489_v30 }
 0xe66   : > { %v1531_v31 = vpop.f32.mrb[44].mxu0 }
 0xe67   : > { %v1537_v32 = vpack.c.bf16 %v1531_v31, %v1531_v31  ;;  %v1907_v34 = vpop.f32.mrb[45].mxu0 }
 0xe68   : > { %v1534_v35 = vpop.f32.mrb[46].mxu0 }
 0xe69   : > { %v1908_v36 = vpop.f32.mrb[47].mxu0  ;;  %1912 = vmatmul.mubr.msk.bf16.vlgmr.msra.gmra.mrb[44].mxu1 %vm415_vm2, %v1537_v32 }
 0xf3c   : > { %v1578_v37 = vpop.f32.mrb[44].mxu1 }
 0xf3d   : > { %v1584_v39 = vadd.f32 %v1578_v37, %v1295_v5  ;;  %v1913_v40 = vpop.f32.mrb[45].mxu1 }
 0xf3e   : > { %v1581_v41 = vpop.f32.mrb[46].mxu1 }
 0xf3f   : > { %v1592_v42 = vadd.f32 %v1717_v38, %v1584_v39  ;;  %v1914_v43 = vpop.f32.mrb[47].mxu1 }
 0xf41   : > { %1594 = vst.msk [vmem:[%s384_s24] sm:$0xff] %vm1593_vm5, %v1592_v42 }
 0xf42 PF: > { %s19_s30 = sadd.s32 1, %s1948_s30  }
 0xf43   : > { %p16_p4 = scmp.ge.s32.totalorder %s19_s30, 4  }
 0xf45   :  { %18 = sbr.rel (!%p16_p4) target bundleno = 1 (0x1), region = 95 }

// kernel: transformer_forward.33
= control target key start
LH: loop header
LB: loop body
LE: loop exit
PB: predicated region body
PF: predicated region fallthrough
CT: control target
= control target key end

     0   :  { %s342_s12 = smov 0   ;;  %s374_s0 = inlined_call_operand.vmem [shape: f32[16,32], index: 0, kind: input, shape index: {}]   ;;  %s375_s1 = inlined_call_operand.vmem [shape: f32[32,128], index: 1, kind: input, shape index: {}]   ;;  %s376_s2 = inlined_call_operand.vmem [shape: f32[1,128], index: 2, kind: input, shape index: {}]   ;;  %s377_s3 = inlined_call_operand.vmem [shape: f32[16,128], index: 3, kind: output, shape index: {}]  }
   0x1 LB: > { %s280_s13 = sadd.s32 4294967295, %s318_s12   ;;  %p284_p0 = scmp.ge.s32.totalorder %s318_s12, 1  ;;  %s318_s12 = sphi %s342_s12, %s13_s12  }
   0x2   : > { %p136_p1 = scmp.lt.s32.totalorder %s318_s12, 3 }
   0x4   : > { %p137_p2 = pnand %p284_p0, %p136_p1 }
   0x5   : > { %v169_v0 = vld [vmem:[%s375_s1] sm:$0xff] (!%p137_p2)  ;;  %v170_v1 = vld [vmem:[%s375_s1 + $0x8] sm:$0xff] (!%p137_p2)  ;;  %v171_v2 = vld [vmem:[%s375_s1 + $0x10] sm:$0xff] (!%p137_p2)  ;;  %p158_p3 = scmp.lt.s32.totalorder (!%p137_p2), %s280_s13, 1  ;;  %v320_v3 = vmov (!%p137_p2), 0.0   ;;  %vm321_vm0 = vmmov (!%p137_p2), 0  }
   0x6   : > { %140 = sbr.rel (%p137_p2) target bundleno = 234 (0xea), region = 32  ;;  %294 = vmatprep.subr.bf16.mxu0 (!%p137_p2), %v320_v3  ;;  %v173_v4 = vpack.c.bf16 (!%p137_p2), %v170_v1, %v169_v0  ;;  %v172_v5 = vld [vmem:[%s375_s1 + $0x18] sm:$0xff] (!%p137_p2)  ;;  %298 = vmatprep.mubr.msk.bf16.mxu0 (!%p137_p2), %vm321_vm0, %v320_v3  ;;  %vm182_vm1 = vcmask (!%p137_p2), 261120   ;;  %v287_v9 = vld [vmem:[%s376_s2] ss:$0 sm:$0xff] (!%p137_p2) }
   0x7   : > { %v174_v6 = vpack.c.bf16 (!%p137_p2), %v172_v5, %v171_v2 }
   0x8   : > { %295 = vmatpush3.bf16.msra.mxu0 (!%p137_p2), %v173_v4 }
   0x9   : > { %296 = vmatprep.subr.bf16.mxu0 (!%p137_p2), %v320_v3 }
   0xc   : > { %297 = vmatpush3.bf16.msra.mxu0 (!%p137_p2), %v174_v6 }
   0xd   : > { %s379_s13 = smov (!%p158_p3, %s280_s13), 1 }
   0xe   : > { %s285_s22 = sshll.u32 %s379_s13, 3 }
   0xf   : > { %s161_s25 = scalar_lea.vmem %s374_s0, %s285_s22  ;;  %s165_s30 = scalar_lea.vmem %s377_s3, %s285_s22 }
  0x10   : > { %v167_v7 = vld [vmem:[%s161_s25] sm:$0xff] }
  0x11   : > { %v168_v8 = vpack.c.bf16 %v167_v7, %v167_v7 }
  0x13   : > { %299 = vmatmul.mubr.msk.bf16.vlgmr.msra.gmra.mrb[0].mxu0 %vm182_vm1, %v168_v8 }
  0xe6   : > { %v220_v10 = vpop.f32.mrb[0].mxu0 }
  0xe7   : > { %v221_v11 = vadd.f32 %v287_v9, %v220_v10  ;;  %v300_v12 = vpop.f32.mrb[1].mxu0 }
  0xe8   : > { %v223_v13 = vpop.f32.mrb[2].mxu0 }
  0xe9   : > { %226 = vst [vmem:[%s165_s30] sm:$0xff] %v221_v11  ;;  %v301_v14 = vpop.f32.mrb[3].mxu0 }
  0xea PF: > { %s13_s12 = sadd.s32 1, %s318_s12  }
  0xeb   : > { %p10_p4 = scmp.ge.s32.totalorder %s13_s12, 4  }
  0xed   :  { %12 = sbr.rel (!%p10_p4) target bundleno = 1 (0x1), region = 62 }

// kernel: transformer_forward.23
= control target key start
LH: loop header
LB: loop body
LE: loop exit
PB: predicated region body
PF: predicated region fallthrough
CT: control target
= control target key end

     0   :  { %s2009_s30 = smov 0   ;;  %s2239_s0 = inlined_call_operand.vmem [shape: f32[2,4,8,8], index: 0, kind: input, shape index: {}, may-alias: {0,1,2}]   ;;  %s2240_s1 = inlined_call_operand.vmem [shape: f32[2,4,8,8], index: 1, kind: input, shape index: {}, may-alias: {0,1,2}]   ;;  %s2241_s2 = inlined_call_operand.vmem [shape: f32[2,4,8,8], index: 2, kind: input, shape index: {}, may-alias: {0,1,2}]   ;;  %s2242_s3 = inlined_call_operand.vmem [shape: f32[2,1,8], index: 3, kind: input, shape index: {}]   ;;  %s2243_s4 = inlined_call_operand.vmem [shape: f32[8,8], index: 4, kind: input, shape index: {}]   ;;  %s2244_s5 = inlined_call_operand.vmem [shape: f32[8,8], index: 5, kind: input, shape index: {}]   ;;  %s2245_s6 = inlined_call_operand.vmem [shape: f32[8,8], index: 6, kind: input, shape index: {}]   ;;  %s2246_s7 = inlined_call_operand.vmem [shape: f32[4,8,32], index: 7, kind: input, shape index: {}]   ;;  %s2247_s8 = inlined_call_operand.vmem [shape: f32[1,32], index: 8, kind: input, shape index: {}]   ;;  %s2248_s9 = inlined_call_operand.vmem [shape: f32[2,8,32], index: 9, kind: output, shape index: {}]  }
   0x1 LB: > { %s1687_s10 = sadd.s32 4294967295, %s1954_s30   ;;  %p1691_p0 = scmp.ge.s32.totalorder %s1954_s30, 1  ;;  %s1954_s30 = sphi %s2009_s30, %s19_s30  }
   0x2   : > { %p315_p1 = scmp.lt.s32.totalorder %s1954_s30, 3 }
   0x4   : > { %p316_p2 = pnand %p1691_p0, %p315_p1 }
   0x5   : > { %v400_v0 = vld [vmem:[%s2244_s5] sm:$0xff] (!%p316_p2)  ;;  %vm431_vm0 = vcmask (!%p316_p2), 1043456   ;;  %p363_p3 = scmp.lt.s32.totalorder (!%p316_p2), %s1687_s10, 1  ;;  %v1956_v1 = vmov (!%p316_p2), 0.0   ;;  %vm1957_vm1 = vmmov (!%p316_p2), 0   ;;  %vm427_vm2 = vcmask (!%p316_p2), 64512  }
   0x6   : > { %319 = sbr.rel (%p316_p2) target bundleno = 3906 (0xf42), region = 56  ;;  %1783 = vmatprep.subr.bf16.mxu1 (!%p316_p2), %v1956_v1  ;;  %v401_v2 = vpack.c.bf16 (!%p316_p2), %v400_v0, %v400_v0  ;;  %1785 = vmatprep.mubr.msk.bf16.mxu1 (!%p316_p2), %vm1957_vm1, %v1956_v1  ;;  %v398_v3 = vld [vmem:[%s2243_s4] sm:$0xff] (!%p316_p2)  ;;  %v414_v27 = vlaneseq (!%p316_p2)  ;;  %v1958_v31 = vmov (!%p316_p2), 0   ;;  %vm1599_vm7 = vcmask (!%p316_p2), 261120  }
   0x7   : > { %1777 = vmatprep.subr.bf16.mxu0 (!%p316_p2), %v1956_v1  ;;  %v399_v4 = vpack.c.bf16 (!%p316_p2), %v398_v3, %v398_v3  ;;  %1779 = vmatprep.mubr.msk.bf16.mxu0 (!%p316_p2), %vm1957_vm1, %v1956_v1  ;;  %v402_v22 = vld [vmem:[%s2245_s6] sm:$0xff] (!%p316_p2) }
   0x8   : > { %v2032_v5 = vsel (!%p316_p2), %vm431_vm0, %v401_v2, 0  ;;  %v403_v23 = vpack.c.bf16 (!%p316_p2), %v402_v22, %v402_v22  ;;  %v415_v29 = vshrl.u32 (!%p316_p2), %v414_v27, 7  ;;  %v417_v33 = vand.u32 (!%p316_p2), 127, %v414_v27 }
   0x9   : > { %1784 = vmatpush3.bf16.msra.mxu1 (!%p316_p2), %v2032_v5  ;;  %v2039_v6 = vsel (!%p316_p2), %vm431_vm0, %v399_v4, 0 }
   0xa   : > { %1778 = vmatpush3.bf16.msra.mxu0 (!%p316_p2), %v2039_v6  ;;  %1795 = vmatprep.subr.bf16.mxu1 (!%p316_p2), %v1956_v1  ;;  %v2082_v25 = vsel (!%p316_p2), %vm431_vm0, %v403_v23, 0  ;;  %v422_v30 = vsub.s32 (!%p316_p2), 0, %v415_v29  ;;  %vm418_vm4 = vcmp.le.s32.totalorder (!%p316_p2), %v417_v33, %v415_v29 }
   0xb   : > { %1789 = vmatprep.subr.bf16.mxu0 (!%p316_p2), %v1956_v1 }
   0xd   : > { %s2252_s10 = smov (!%p363_p3, %s1687_s10), 1 }
   0xe   : > { %s2036_s15 = sshll.u32 %s2252_s10, 5  ;;  %s380_s29 = scalar_lea.vmem %s2242_s3, %s2252_s10 }
   0xf   : > { %s2045_s18 = scalar_lea.vmem %s2240_s1, %s2036_s15  ;;  %s2052_s21 = scalar_lea.vmem %s2239_s0, %s2036_s15  ;;  %v412_v28 = vld [vmem:[%s380_s29] sm:$0x1] }
  0x10   : > { %v390_v7 = vld [vmem:[%s2045_s18] sm:$0xff]  ;;  %s2078_s26 = scalar_lea.vmem %s2241_s2, %s2036_s15  ;;  %vm413_vm3 = vcmp.ne.f32.partialorder %v412_v28, 0.0  ;;  %v387_v54 = vld [vmem:[%s2052_s21 + $0x8] sm:$0xff]  ;;  %s1698_s19 = sshll.u32 %s2252_s10, 3 }
  0x11   : > { %v386_v8 = vld [vmem:[%s2052_s21] sm:$0xff]  ;;  %v475_v9 = vpack.c.bf16 %v390_v7, %v390_v7  ;;  %v419_v32 = vsel %vm413_vm3, 1, %v1958_v31  ;;  %v679_v55 = vpack.c.bf16 %v387_v54, %v387_v54  ;;  %v391_v60 = vld [vmem:[%s2045_s18 + $0x8] sm:$0xff]  ;;  %s384_s24 = scalar_lea.vmem %s2248_s9, %s1698_s19 }
  0x12   : > { %v426_v10 = vpack.c.bf16 %v386_v8, %v386_v8  ;;  %v394_v24 = vld [vmem:[%s2078_s26] sm:$0xff]  ;;  %v423_v34 = vrot.slane %v419_v32, %v422_v30  ;;  %v723_v61 = vpack.c.bf16 %v391_v60, %v391_v60 }
  0x13   : > { %1786 = vmatmul.mubr.msk.bf16.vlgmr.msra.gmra.mrb[0].mxu1 %vm427_vm2, %v475_v9  ;;  %v522_v26 = vpack.c.bf16 %v394_v24, %v394_v24 }
  0x14   : > { %1780 = vmatmul.mubr.msk.bf16.vlgmr.msra.gmra.mrb[0].mxu0 %vm427_vm2, %v426_v10  ;;  %1797 = vmatprep.mubr.msk.bf16.mxu1 %vm1957_vm1, %v1956_v1  ;;  %vm424_vm5 = vcmp.eq.s32.totalorder %v423_v34, 1 }
  0x15   : > { %1791 = vmatprep.mubr.msk.bf16.mxu0 %vm1957_vm1, %v1956_v1  ;;  %1790 = vmatpush3.bf16.msra.mxu0 %v2082_v25  ;;  %vm2093_vm6 = vmand %vm424_vm5, %vm418_vm4 }
  0x16   : > { %1801 = vmatprep.subr.bf16.mxu0 %v1956_v1 }
  0x1c   : > { %1792 = vmatmul.mubr.msk.bf16.vlgmr.msra.gmra.mrb[4].mxu0 %vm427_vm2, %v522_v26 }
  0x1d   : > { %1803 = vmatprep.mubr.msk.bf16.mxu0 %vm1957_vm1, %v1956_v1 }
  0xe6   : > { %v516_v11 = vpop.f32.mrb[0].mxu1 }
  0xe7   : > { %v469_v12 = vpop.f32.mrb[0].mxu0  ;;  %v570_v13 = vpack.c.bf16 %v516_v11, %v516_v11  ;;  %v1787_v14 = vpop.f32.mrb[1].mxu1 }
  0xe8   : > { %v1781_v15 = vpop.f32.mrb[1].mxu0  ;;  %v519_v16 = vpop.f32.mrb[2].mxu1  ;;  %v569_v21 = vpack.c.bf16 %v469_v12, %v469_v12 }
  0xe9   : > { %v472_v17 = vpop.f32.mrb[2].mxu0  ;;  %v575_v18 = vsel %vm427_vm2, %v570_v13, 0  ;;  %v1788_v19 = vpop.f32.mrb[3].mxu1  ;;  %v395_v16 = vld [vmem:[%s2078_s26 + $0x8] sm:$0xff] }
  0xea   : > { %v1782_v20 = vpop.f32.mrb[3].mxu0  ;;  %1796 = vmatpush3.bf16.xpose.msra.mxu1 %v575_v18  ;;  %v767_v17 = vpack.c.bf16 %v395_v16, %v395_v16 }
  0xeb   : > { %1807 = vmatprep.subr.bf16.mxu1 %v1956_v1 }
  0xef   : > { %v563_v48 = vpop.f32.mrb[4].mxu0 }
  0xf0   : > { %v1793_v49 = vpop.f32.mrb[5].mxu0  ;;  %v631_v52 = vpack.c.bf16 %v563_v48, %v563_v48 }
  0xf1   : > { %1798 = vmatmul.mubr.msk.bf16.vlgmr.msra.gmra.mrb[4].mxu1 %vm427_vm2, %v569_v21  ;;  %v566_v50 = vpop.f32.mrb[6].mxu0  ;;  %v392_v49 = vld [vmem:[%s2045_s18 + $0x10] sm:$0xff] }
  0xf2   : > { %1808 = vmatpush3.bf16.msra.mxu1 %v2039_v6  ;;  %1809 = vmatprep.mubr.msk.bf16.mxu1 %vm1957_vm1, %v1956_v1  ;;  %v1794_v51 = vpop.f32.mrb[7].mxu0  ;;  %v636_v53 = vsel %vm431_vm0, %v631_v52, 0  ;;  %v1057_v50 = vpack.c.bf16 %v392_v49, %v392_v49 }
  0xf3   : > { %1819 = vmatprep.subr.bf16.mxu1 %v1956_v1  ;;  %1802 = vmatpush3.bf16.msra.mxu0 %v636_v53 }
  0xf4   : > { %1813 = vmatprep.subr.bf16.mxu0 %v1956_v1 }
  0xf9   : > { %1810 = vmatmul.mubr.msk.bf16.vlgmr.msra.gmra.mrb[8].mxu1 %vm427_vm2, %v679_v55 }
  0xfa   : > { %1820 = vmatpush3.bf16.msra.mxu1 %v2082_v25  ;;  %1821 = vmatprep.mubr.msk.bf16.mxu1 %vm1957_vm1, %v1956_v1 }
  0xfb   : > { %1831 = vmatprep.subr.bf16.mxu1 %v1956_v1 }
 0x101   : > { %1822 = vmatmul.mubr.msk.bf16.vlgmr.msra.gmra.mrb[12].mxu1 %vm427_vm2, %v767_v17  ;;  %v396_v17 = vld [vmem:[%s2078_s26 + $0x10] sm:$0xff] }
 0x102   : > { %1833 = vmatprep.mubr.msk.bf16.mxu1 %vm1957_vm1, %v1956_v1 }
 0x1c4   : > { %v611_v36 = vpop.f32.mrb[4].mxu1 }
 0x1c5   : > { %v617_v37 = vsel %vm2093_vm6, %v611_v36, -1e+20  ;;  %v1799_v38 = vpop.f32.mrb[5].mxu1 }
 0x1c6   : > { %v618_v39 = vmul.f32 0.17677669, %v617_v37  ;;  %v614_v40 = vpop.f32.mrb[6].mxu1  ;;  %v405_v38 = vld [vmem:[%s2246_s7 + $0x8] sm:$0xff] }
 0x1c7   : > { %v1800_v41 = vpop.f32.mrb[7].mxu1 }
 0x1c8   : > { %v619_v42 = vsel %vm427_vm2, %v618_v39, -inf }
 0x1c9   : > { %620 = vmax.xlane.f32.xlu0 %v619_v42  ;;  %v404_v42 = vld [vmem:[%s2246_s7] sm:$0xff] }
 0x1cc   : > { %v717_v62 = vpop.f32.mrb[8].mxu1 }
 0x1cd   : > { %v1811_v63 = vpop.f32.mrb[9].mxu1  ;;  %v811_v15 = vpack.c.bf16 %v717_v62, %v717_v62 }
 0x1ce   : > { %v720_v0 = vpop.f32.mrb[10].mxu1 }
 0x1cf   : > { %v1812_v2 = vpop.f32.mrb[11].mxu1 }
 0x1d4   : > { %v805_v31 = vpop.f32.mrb[12].mxu1 }
 0x1d5   : > { %v1823_v32 = vpop.f32.mrb[13].mxu1  ;;  %v873_v36 = vpack.c.bf16 %v805_v31, %v805_v31 }
 0x1d6   : > { %v808_v33 = vpop.f32.mrb[14].mxu1 }
 0x1d7   : > { %v1824_v34 = vpop.f32.mrb[15].mxu1  ;;  %v878_v37 = vsel %vm431_vm0, %v873_v36, 0 }
 0x1d8   : > { %1832 = vmatpush3.bf16.msra.mxu1 %v878_v37 }
 0x1d9   : > { %1843 = vmatprep.subr.bf16.mxu1 %v1956_v1 }
 0x256   : > { %v621_v43 = vpop.xlane.xlu0 %620 }
 0x257   : > { %v622_v44 = vsub.f32 %v618_v39, %v621_v43  ;;  %v409_v39 = vpack.c.bf16 %v405_v38, %v405_v38  ;;  %v408_v43 = vpack.c.bf16 %v404_v42, %v404_v42 }
 0x259   : > { %v623_v45 = vmul.f32 1.442695, %v622_v44  ;;  %v925_v40 = vsel %vm431_vm0, %v409_v39, 0  ;;  %v406_v39 = vld [vmem:[%s2246_s7 + $0x10] sm:$0xff] }
 0x25b   : > { %1932 = vpow2.f32 %v623_v45 }
 0x265   : > { %v1933_v46 = vpop.eup %1932 }
 0x266   : > { %v625_v47 = vsel %vm427_vm2, %v1933_v46, 0.0 }
 0x267   : > { %626 = vadd.xlane.f32.xlu0 %v625_v47  ;;  %v971_v47 = vsel %vm431_vm0, %v408_v43, 0 }
 0x2f4   : > { %v627_v56 = vpop.xlane.xlu0 %626 }
 0x2f5   : > { %1934 = vrcp.f32 %v627_v56  ;;  %v388_v56 = vld [vmem:[%s2052_s21 + $0x10] sm:$0xff] }
 0x2ff   : > { %v1935_v57 = vpop.eup %1934 }
 0x300   : > { %v629_v58 = vmul.f32 %v1935_v57, %v1933_v46  ;;  %v1013_v57 = vpack.c.bf16 %v388_v56, %v388_v56 }
 0x302   : > { %v630_v59 = vpack.c.bf16 %v629_v58, %v629_v58 }
 0x304   : > { %1804 = vmatmul.mubr.msk.bf16.vlgmr.msra.gmra.mrb[8].mxu0 %vm427_vm2, %v630_v59 }
 0x305   : > { %1814 = vmatpush3.bf16.msra.mxu0 %v2032_v5  ;;  %1815 = vmatprep.mubr.msk.bf16.mxu0 %vm1957_vm1, %v1956_v1 }
 0x306   : > { %1825 = vmatprep.subr.bf16.mxu0 %v1956_v1 }
 0x30c   : > { %1816 = vmatmul.mubr.msk.bf16.vlgmr.msra.gmra.mrb[12].mxu0 %vm427_vm2, %v723_v61 }
 0x30d   : > { %1827 = vmatprep.mubr.msk.bf16.mxu0 %vm1957_vm1, %v1956_v1 }
 0x3d7   : > { %v672_v3 = vpop.f32.mrb[8].mxu0 }
 0x3d8   : > { %v1805_v4 = vpop.f32.mrb[9].mxu0  ;;  %v678_v48 = vpack.c.bf16 %v672_v3, %v672_v3 }
 0x3d9   : > { %v675_v7 = vpop.f32.mrb[10].mxu0 }
 0x3da   : > { %v1806_v8 = vpop.f32.mrb[11].mxu0 }
 0x3df   : > { %v761_v9 = vpop.f32.mrb[12].mxu0 }
 0x3e0   : > { %v812_v10 = vpack.c.bf16 %v761_v9, %v761_v9  ;;  %v1817_v11 = vpop.f32.mrb[13].mxu0 }
 0x3e1   : > { %v764_v12 = vpop.f32.mrb[14].mxu0 }
 0x3e2   : > { %v817_v13 = vsel %vm427_vm2, %v812_v10, 0  ;;  %v1818_v14 = vpop.f32.mrb[15].mxu0 }
 0x3e3   : > { %1826 = vmatpush3.bf16.xpose.msra.mxu0 %v817_v13 }
 0x3e4   : > { %1837 = vmatprep.subr.bf16.mxu0 %v1956_v1 }
 0x3ea   : > { %1828 = vmatmul.mubr.msk.bf16.vlgmr.msra.gmra.mrb[16].mxu0 %vm427_vm2, %v811_v15 }
 0x3eb   : > { %1839 = vmatprep.mubr.msk.bf16.mxu0 %vm1957_vm1, %v1956_v1  ;;  %1838 = vmatpush3.bf16.msra.mxu0 %v925_v40  ;;  %v410_v40 = vpack.c.bf16 %v406_v39, %v406_v39 }
 0x3ec   : > { %1849 = vmatprep.subr.bf16.mxu0 %v1956_v1 }
 0x4bd   : > { %v853_v18 = vpop.f32.mrb[16].mxu0 }
 0x4be   : > { %v859_v19 = vsel %vm2093_vm6, %v853_v18, -1e+20  ;;  %v1829_v20 = vpop.f32.mrb[17].mxu0  ;;  %v1101_v18 = vpack.c.bf16 %v396_v17, %v396_v17 }
 0x4bf   : > { %v860_v21 = vmul.f32 0.17677669, %v859_v19  ;;  %v856_v22 = vpop.f32.mrb[18].mxu0 }
 0x4c0   : > { %v1830_v23 = vpop.f32.mrb[19].mxu0 }
 0x4c1   : > { %v861_v24 = vsel %vm427_vm2, %v860_v21, -inf }
 0x4c2   : > { %862 = vmax.xlane.f32.xlu1 %v861_v24 }
 0x54f   : > { %v863_v26 = vpop.xlane.xlu1 %862 }
 0x550   : > { %v864_v27 = vsub.f32 %v860_v21, %v863_v26 }
 0x552   : > { %v865_v28 = vmul.f32 1.442695, %v864_v27 }
 0x554   : > { %1936 = vpow2.f32 %v865_v28 }
 0x55e   : > { %v1937_v29 = vpop.eup %1936 }
 0x55f   : > { %v867_v30 = vsel %vm427_vm2, %v1937_v29, 0.0 }
 0x560   : > { %868 = vadd.xlane.f32.xlu1 %v867_v30 }
 0x5ed   : > { %v869_v41 = vpop.xlane.xlu1 %868 }
 0x5ee   : > { %1938 = vrcp.f32 %v869_v41  ;;  %v1259_v41 = vsel %vm431_vm0, %v410_v40, 0  ;;  %v1723_v40 = vld [vmem:[%s2247_s8] ss:$0 sm:$0xff] }
 0x5f8   : > { %v1939_v44 = vpop.eup %1938 }
 0x5f9   : > { %v871_v45 = vmul.f32 %v1939_v44, %v1937_v29 }
 0x5fb   : > { %v872_v46 = vpack.c.bf16 %v871_v45, %v871_v45 }
 0x5fd   : > { %1834 = vmatmul.mubr.msk.bf16.vlgmr.msra.gmra.mrb[16].mxu1 %vm427_vm2, %v872_v46  ;;  %v389_v46 = vld [vmem:[%s2052_s21 + $0x18] sm:$0xff] }
 0x5fe   : > { %1844 = vmatpush3.bf16.msra.mxu1 %v971_v47  ;;  %1845 = vmatprep.mubr.msk.bf16.mxu1 %vm1957_vm1, %v1956_v1  ;;  %v1302_v47 = vpack.c.bf16 %v389_v46, %v389_v46 }
 0x5ff   : > { %1855 = vmatprep.subr.bf16.mxu1 %v1956_v1 }
 0x605   : > { %1846 = vmatmul.mubr.msk.bf16.vlgmr.msra.gmra.mrb[20].mxu1 %vm427_vm2, %v678_v48 }
 0x606   : > { %1856 = vmatpush3.bf16.msra.mxu1 %v2032_v5  ;;  %1857 = vmatprep.mubr.msk.bf16.mxu1 %vm1957_vm1, %v1956_v1 }
 0x607   : > { %1867 = vmatprep.subr.bf16.mxu1 %v1956_v1 }
 0x60d   : > { %1858 = vmatmul.mubr.msk.bf16.vlgmr.msra.gmra.mrb[24].mxu1 %vm427_vm2, %v1057_v50 }
 0x60e   : > { %1869 = vmatprep.mubr.msk.bf16.mxu1 %vm1957_vm1, %v1956_v1 }
 0x6d0   : > { %v914_v51 = vpop.f32.mrb[16].mxu1 }
 0x6d1   : > { %v920_v52 = vpack.c.bf16 %v914_v51, %v914_v51  ;;  %v1835_v53 = vpop.f32.mrb[17].mxu1 }
 0x6d2   : > { %v917_v54 = vpop.f32.mrb[18].mxu1 }
 0x6d3   : > { %v1836_v55 = vpop.f32.mrb[19].mxu1  ;;  %1840 = vmatmul.mubr.msk.bf16.vlgmr.msra.gmra.mrb[20].mxu0 %vm427_vm2, %v920_v52  ;;  %v393_v52 = vld [vmem:[%s2045_s18 + $0x18] sm:$0xff] }
 0x6d4   : > { %1850 = vmatpush3.bf16.msra.mxu0 %v2039_v6  ;;  %1851 = vmatprep.mubr.msk.bf16.mxu0 %vm1957_vm1, %v1956_v1 }
 0x6d5   : > { %1861 = vmatprep.subr.bf16.mxu0 %v1956_v1 }
 0x6d8   : > { %v1007_v58 = vpop.f32.mrb[20].mxu1 }
 0x6d9   : > { %v1847_v59 = vpop.f32.mrb[21].mxu1 }
 0x6da   : > { %v1010_v60 = vpop.f32.mrb[22].mxu1 }
 0x6db   : > { %v1848_v61 = vpop.f32.mrb[23].mxu1  ;;  %1852 = vmatmul.mubr.msk.bf16.vlgmr.msra.gmra.mrb[24].mxu0 %vm427_vm2, %v1013_v57 }
 0x6dc   : > { %1862 = vmatpush3.bf16.msra.mxu0 %v2082_v25  ;;  %1863 = vmatprep.mubr.msk.bf16.mxu0 %vm1957_vm1, %v1956_v1 }
 0x6dd   : > { %1873 = vmatprep.subr.bf16.mxu0 %v1956_v1 }
 0x6e0   : > { %v1095_v62 = vpop.f32.mrb[24].mxu1 }
 0x6e1   : > { %v1146_v63 = vpack.c.bf16 %v1095_v62, %v1095_v62  ;;  %v1859_v0 = vpop.f32.mrb[25].mxu1 }
 0x6e2   : > { %v1098_v2 = vpop.f32.mrb[26].mxu1 }
 0x6e3   : > { %v1151_v3 = vsel %vm427_vm2, %v1146_v63, 0  ;;  %v1860_v4 = vpop.f32.mrb[27].mxu1  ;;  %1864 = vmatmul.mubr.msk.bf16.vlgmr.msra.gmra.mrb[28].mxu0 %vm427_vm2, %v1101_v18 }
 0x6e4   : > { %1868 = vmatpush3.bf16.xpose.msra.mxu1 %v1151_v3  ;;  %1875 = vmatprep.mubr.msk.bf16.mxu0 %vm1957_vm1, %v1956_v1 }
 0x6e5   : > { %1879 = vmatprep.subr.bf16.mxu1 %v1956_v1 }
 0x7a6   : > { %v961_v7 = vpop.f32.mrb[20].mxu0 }
 0x7a7   : > { %v2168_v8 = vadd.f32 %v1007_v58, %v961_v7  ;;  %v1841_v9 = vpop.f32.mrb[21].mxu0  ;;  %v397_v7 = vld [vmem:[%s2078_s26 + $0x18] sm:$0xff] }
 0x7a8   : > { %v964_v10 = vpop.f32.mrb[22].mxu0 }
 0x7a9   : > { %v1842_v11 = vpop.f32.mrb[23].mxu0 }
 0x7ae   : > { %v1051_v12 = vpop.f32.mrb[24].mxu0 }
 0x7af   : > { %v1145_v13 = vpack.c.bf16 %v1051_v12, %v1051_v12  ;;  %v1853_v14 = vpop.f32.mrb[25].mxu0 }
 0x7b0   : > { %v1054_v15 = vpop.f32.mrb[26].mxu0 }
 0x7b1   : > { %v1854_v16 = vpop.f32.mrb[27].mxu0  ;;  %1870 = vmatmul.mubr.msk.bf16.vlgmr.msra.gmra.mrb[28].mxu1 %vm427_vm2, %v1145_v13 }
 0x7b2   : > { %1881 = vmatprep.mubr.msk.bf16.mxu1 %vm1957_vm1, %v1956_v1  ;;  %1880 = vmatpush3.bf16.msra.mxu1 %v1259_v41 }
 0x7b3   : > { %1891 = vmatprep.subr.bf16.mxu1 %v1956_v1 }
 0x7b6   : > { %v1139_v32 = vpop.f32.mrb[28].mxu0 }
 0x7b7   : > { %v1865_v33 = vpop.f32.mrb[29].mxu0  ;;  %v1207_v37 = vpack.c.bf16 %v1139_v32, %v1139_v32 }
 0x7b8   : > { %v1142_v34 = vpop.f32.mrb[30].mxu0 }
 0x7b9   : > { %v1866_v36 = vpop.f32.mrb[31].mxu0  ;;  %v1212_v38 = vsel %vm431_vm0, %v1207_v37, 0 }
 0x7ba   : > { %1874 = vmatpush3.bf16.msra.mxu0 %v1212_v38 }
 0x7bb   : > { %1885 = vmatprep.subr.bf16.mxu0 %v1956_v1 }
 0x884   : > { %v1187_v19 = vpop.f32.mrb[28].mxu1 }
 0x885   : > { %v1193_v20 = vsel %vm2093_vm6, %v1187_v19, -1e+20  ;;  %v1871_v21 = vpop.f32.mrb[29].mxu1 }
 0x886   : > { %v1194_v22 = vmul.f32 0.17677669, %v1193_v20  ;;  %v1190_v23 = vpop.f32.mrb[30].mxu1 }
 0x887   : > { %v1872_v24 = vpop.f32.mrb[31].mxu1 }
 0x888   : > { %v1195_v26 = vsel %vm427_vm2, %v1194_v22, -inf }
 0x889   : > { %1196 = vmax.xlane.f32.xlu0 %v1195_v26  ;;  %v407_v26 = vld [vmem:[%s2246_s7 + $0x18] sm:$0xff] }
 0x916   : > { %v1197_v27 = vpop.xlane.xlu0 %1196 }
 0x917   : > { %v1198_v28 = vsub.f32 %v1194_v22, %v1197_v27  ;;  %v411_v27 = vpack.c.bf16 %v407_v26, %v407_v26 }
 0x919   : > { %v1199_v29 = vmul.f32 1.442695, %v1198_v28  ;;  %v1548_v28 = vsel %vm431_vm0, %v411_v27, 0 }
 0x91b   : > { %1940 = vpow2.f32 %v1199_v29 }
 0x925   : > { %v1941_v30 = vpop.eup %1940 }
 0x926   : > { %v1201_v31 = vsel %vm427_vm2, %v1941_v30, 0.0 }
 0x927   : > { %1202 = vadd.xlane.f32.xlu1 %v1201_v31 }
 0x9b4   : > { %v1203_v42 = vpop.xlane.xlu1 %1202 }
 0x9b5   : > { %1942 = vrcp.f32 %v1203_v42 }
 0x9bf   : > { %v1943_v43 = vpop.eup %1942 }
 0x9c0   : > { %v1205_v44 = vmul.f32 %v1943_v43, %v1941_v30 }
 0x9c2   : > { %v1206_v45 = vpack.c.bf16 %v1205_v44, %v1205_v44 }
 0x9c4   : > { %1876 = vmatmul.mubr.msk.bf16.vlgmr.msra.gmra.mrb[32].mxu0 %vm427_vm2, %v1206_v45 }
 0x9c5   : > { %1886 = vmatpush3.bf16.msra.mxu0 %v2039_v6  ;;  %1887 = vmatprep.mubr.msk.bf16.mxu0 %vm1957_vm1, %v1956_v1 }
 0x9c6   : > { %1897 = vmatprep.subr.bf16.mxu0 %v1956_v1 }
 0x9cc   : > { %1888 = vmatmul.mubr.msk.bf16.vlgmr.msra.gmra.mrb[36].mxu0 %vm427_vm2, %v1302_v47 }
 0x9cd   : > { %1898 = vmatpush3.bf16.msra.mxu0 %v2082_v25  ;;  %1899 = vmatprep.mubr.msk.bf16.mxu0 %vm1957_vm1, %v1956_v1  ;;  %v1346_v25 = vpack.c.bf16 %v393_v52, %v393_v52 }
 0x9ce   : > { %1909 = vmatprep.subr.bf16.mxu0 %v1956_v1 }
 0xa97   : > { %v1248_v48 = vpop.f32.mrb[32].mxu0 }
 0xa98   : > { %v1254_v49 = vpack.c.bf16 %v1248_v48, %v1248_v48  ;;  %v1877_v6 = vpop.f32.mrb[33].mxu0 }
 0xa99   : > { %v1251_v50 = vpop.f32.mrb[34].mxu0 }
 0xa9a   : > { %v1878_v51 = vpop.f32.mrb[35].mxu0  ;;  %1882 = vmatmul.mubr.msk.bf16.vlgmr.msra.gmra.mrb[32].mxu1 %vm427_vm2, %v1254_v49 }
 0xa9b   : > { %1892 = vmatpush3.bf16.msra.mxu1 %v2032_v5  ;;  %1893 = vmatprep.mubr.msk.bf16.mxu1 %vm1957_vm1, %v1956_v1 }
 0xa9c   : > { %1903 = vmatprep.subr.bf16.mxu1 %v1956_v1 }
 0xa9f   : > { %v1340_v53 = vpop.f32.mrb[36].mxu0 }
 0xaa0   : > { %v1889_v54 = vpop.f32.mrb[37].mxu0  ;;  %v1434_v4 = vpack.c.bf16 %v1340_v53, %v1340_v53 }
 0xaa1   : > { %v1343_v55 = vpop.f32.mrb[38].mxu0 }
 0xaa2   : > { %1894 = vmatmul.mubr.msk.bf16.vlgmr.msra.gmra.mrb[36].mxu1 %vm427_vm2, %v1346_v25  ;;  %v1890_v56 = vpop.f32.mrb[39].mxu0 }
 0xaa3   : > { %1905 = vmatprep.mubr.msk.bf16.mxu1 %vm1957_vm1, %v1956_v1 }
 0xb6d   : > { %v1295_v57 = vpop.f32.mrb[32].mxu1 }
 0xb6e   : > { %v1301_v5 = vadd.f32 %v1295_v57, %v2168_v8  ;;  %v1883_v58 = vpop.f32.mrb[33].mxu1  ;;  %v1390_v8 = vpack.c.bf16 %v397_v7, %v397_v7 }
 0xb6f   : > { %v1298_v59 = vpop.f32.mrb[34].mxu1 }
 0xb70   : > { %v1884_v60 = vpop.f32.mrb[35].mxu1  ;;  %1900 = vmatmul.mubr.msk.bf16.vlgmr.msra.gmra.mrb[40].mxu0 %vm427_vm2, %v1390_v8 }
 0xb71   : > { %1911 = vmatprep.mubr.msk.bf16.mxu0 %vm1957_vm1, %v1956_v1 }
 0xb75   : > { %v1384_v61 = vpop.f32.mrb[36].mxu1 }
 0xb76   : > { %v1435_v62 = vpack.c.bf16 %v1384_v61, %v1384_v61  ;;  %v1895_v63 = vpop.f32.mrb[37].mxu1 }
 0xb77   : > { %v1387_v0 = vpop.f32.mrb[38].mxu1 }
 0xb78   : > { %v1440_v2 = vsel %vm427_vm2, %v1435_v62, 0  ;;  %v1896_v3 = vpop.f32.mrb[39].mxu1 }
 0xb79   : > { %1904 = vmatpush3.bf16.xpose.msra.mxu1 %v1440_v2 }
 0xb7a   : > { %1915 = vmatprep.subr.bf16.mxu1 %v1956_v1 }
 0xb80   : > { %1906 = vmatmul.mubr.msk.bf16.vlgmr.msra.gmra.mrb[40].mxu1 %vm427_vm2, %v1434_v4 }
 0xb81   : > { %1917 = vmatprep.mubr.msk.bf16.mxu1 %vm1957_vm1, %v1956_v1  ;;  %1916 = vmatpush3.bf16.msra.mxu1 %v1548_v28 }
 0xc43   : > { %v1428_v1 = vpop.f32.mrb[40].mxu0 }
 0xc44   : > { %v1901_v21 = vpop.f32.mrb[41].mxu0  ;;  %v1496_v23 = vpack.c.bf16 %v1428_v1, %v1428_v1 }
 0xc45   : > { %v1431_v22 = vpop.f32.mrb[42].mxu0 }
 0xc46   : > { %v1902_v35 = vpop.f32.mrb[43].mxu0  ;;  %v1501_v24 = vsel %vm431_vm0, %v1496_v23, 0 }
 0xc47   : > { %1910 = vmatpush3.bf16.msra.mxu0 %v1501_v24 }
 0xc53   : > { %v1476_v9 = vpop.f32.mrb[40].mxu1 }
 0xc54   : > { %v1482_v10 = vsel %vm2093_vm6, %v1476_v9, -1e+20  ;;  %v1907_v11 = vpop.f32.mrb[41].mxu1 }
 0xc55   : > { %v1483_v12 = vmul.f32 0.17677669, %v1482_v10  ;;  %v1479_v13 = vpop.f32.mrb[42].mxu1 }
 0xc56   : > { %v1908_v14 = vpop.f32.mrb[43].mxu1 }
 0xc57   : > { %v1484_v15 = vsel %vm427_vm2, %v1483_v12, -inf }
 0xc58   : > { %1485 = vmax.xlane.f32.xlu0 %v1484_v15 }
 0xce5   : > { %v1486_v16 = vpop.xlane.xlu0 %1485 }
 0xce6   : > { %v1487_v17 = vsub.f32 %v1483_v12, %v1486_v16 }
 0xce8   : > { %v1488_v18 = vmul.f32 1.442695, %v1487_v17 }
 0xcea   : > { %1944 = vpow2.f32 %v1488_v18 }
 0xcf4   : > { %v1945_v19 = vpop.eup %1944 }
 0xcf5   : > { %v1490_v20 = vsel %vm427_vm2, %v1945_v19, 0.0 }
 0xcf6   : > { %1491 = vadd.xlane.f32.xlu1 %v1490_v20 }
 0xd83   : > { %v1492_v29 = vpop.xlane.xlu1 %1491 }
 0xd84   : > { %1946 = vrcp.f32 %v1492_v29 }
 0xd8e   : > { %v1947_v30 = vpop.eup %1946 }
 0xd8f   : > { %v1494_v31 = vmul.f32 %v1947_v30, %v1945_v19 }
 0xd91   : > { %v1495_v32 = vpack.c.bf16 %v1494_v31, %v1494_v31 }
 0xd93   : > { %1912 = vmatmul.mubr.msk.bf16.vlgmr.msra.gmra.mrb[44].mxu0 %vm427_vm2, %v1495_v32 }
 0xe66   : > { %v1537_v33 = vpop.f32.mrb[44].mxu0 }
 0xe67   : > { %v1543_v34 = vpack.c.bf16 %v1537_v33, %v1537_v33  ;;  %v1913_v36 = vpop.f32.mrb[45].mxu0 }
 0xe68   : > { %v1540_v37 = vpop.f32.mrb[46].mxu0 }
 0xe69   : > { %v1914_v38 = vpop.f32.mrb[47].mxu0  ;;  %1918 = vmatmul.mubr.msk.bf16.vlgmr.msra.gmra.mrb[44].mxu1 %vm427_vm2, %v1543_v34 }
 0xf3c   : > { %v1584_v39 = vpop.f32.mrb[44].mxu1 }
 0xf3d   : > { %v1590_v41 = vadd.f32 %v1584_v39, %v1301_v5  ;;  %v1919_v42 = vpop.f32.mrb[45].mxu1 }
 0xf3e   : > { %v1587_v43 = vpop.f32.mrb[46].mxu1 }
 0xf3f   : > { %v1598_v44 = vadd.f32 %v1723_v40, %v1590_v41  ;;  %v1920_v45 = vpop.f32.mrb[47].mxu1 }
 0xf41   : > { %1600 = vst.msk [vmem:[%s384_s24] sm:$0xff] %vm1599_vm7, %v1598_v44 }
 0xf42 PF: > { %s19_s30 = sadd.s32 1, %s1954_s30  }
 0xf43   : > { %p16_p4 = scmp.ge.s32.totalorder %s19_s30, 4  }
 0xf45   :  { %18 = sbr.rel (!%p16_p4) target bundleno = 1 (0x1), region = 95 }

</bundles_post_ra>
